<compile_context>
chip_gen: v5e
topology: v5e:2x2
jax: 0.10.0
libtpu: 0.0.40
codegen_flags: <defaults>
</compile_context>

<pallas_src>
import functools
import math

import jax
import jax.numpy as jnp
from jax import lax
from jax.experimental import pallas as pl
from jax.experimental.pallas import tpu as pltpu


def _flash_attn_kernel(q_ref, k_ref, v_ref, o_ref,
                       m_sc, l_sc, acc_sc,
                       *, norm_factor, coeff, block_q, block_k, causal,
                       precision):
    qi = pl.program_id(1)
    ki = pl.program_id(2)

    @pl.when(ki == 0)
    def _init():
        m_sc[...] = jnp.full_like(m_sc, -jnp.inf)
        l_sc[...] = jnp.zeros_like(l_sc)
        acc_sc[...] = jnp.zeros_like(acc_sc)

    def _compute():
        q = q_ref[0]                      # (block_q, D)
        k = k_ref[0]                      # (block_k, D)
        v = v_ref[0]                      # (block_k, D)

        # Q @ K^T on the MXU, f32 accumulation.
        s = lax.dot_general(q, k, (((1,), (1,)), ((), ())),
                            preferred_element_type=jnp.float32,
                            precision=precision)
        # Matches PyTorch: scores /= norm_factor; scores.float() * coeff
        s = (s / norm_factor) * coeff

        if causal:
            q_idx = qi * block_q + lax.broadcasted_iota(
                jnp.int32, (block_q, block_k), 0)
            k_idx = ki * block_k + lax.broadcasted_iota(
                jnp.int32, (block_q, block_k), 1)
            s = jnp.where(k_idx > q_idx, -jnp.inf, s)

        m_prev = m_sc[...]                                # (block_q, 1)
        m_new = jnp.maximum(m_prev, s.max(axis=-1, keepdims=True))
        alpha = jnp.exp(m_prev - m_new)
        p = jnp.exp(s - m_new)                            # (block_q, block_k)

        l_sc[...] = alpha * l_sc[...] + p.sum(axis=-1, keepdims=True)
        acc_sc[...] = alpha * acc_sc[...] + jnp.dot(
            p.astype(v.dtype), v,
            preferred_element_type=jnp.float32, precision=precision)
        m_sc[...] = m_new

    if causal:
        # Skip key tiles that lie entirely above the causal diagonal.
        @pl.when(ki * block_k <= qi * block_q + (block_q - 1))
        def _():
            _compute()
    else:
        _compute()

    @pl.when(ki == pl.num_programs(2) - 1)
    def _finalize():
        o_ref[0] = (acc_sc[...] / l_sc[...]).astype(o_ref.dtype)


def glm_attention(query, key, value, attention_mask=None, *,
                  layer_number: int = 1,
                  block_q: int = 128, block_k: int = 128,
                  precision=None):
    """GLM-4 core attention. query/key/value: [B, H, S, D] -> [B, Sq, H*D]."""
    B, H, Sq, D = query.shape
    Sk = key.shape[2]
    assert key.shape == (B, H, Sk, D) and value.shape == (B, H, Sk, D)
    # TODO(synk): explicit attention_mask tensors not supported in-kernel.
    assert attention_mask is None, "only the mask=None (causal) path is implemented"
    causal = (Sq == Sk)

    norm_factor = math.sqrt(D) * layer_number
    coeff = float(layer_number)

    # No host-side padding: shrink a block to the full extent if it doesn't divide.
    bq = block_q if Sq % block_q == 0 else Sq
    bk = block_k if Sk % block_k == 0 else Sk

    qf = query.reshape(B * H, Sq, D)
    kf = key.reshape(B * H, Sk, D)
    vf = value.reshape(B * H, Sk, D)

    grid = (B * H, Sq // bq, Sk // bk)

    kernel = functools.partial(
        _flash_attn_kernel,
        norm_factor=norm_factor, coeff=coeff,
        block_q=bq, block_k=bk, causal=causal, precision=precision)

    itemsize = jnp.dtype(query.dtype).itemsize
    cost = pl.CostEstimate(
        flops=int(4 * B * H * Sq * Sk * D),
        transcendentals=int(B * H * Sq * Sk),
        bytes_accessed=int((qf.size + kf.size + vf.size + B * H * Sq * D)
                           * itemsize),
    )

    out = pl.pallas_call(
        kernel,
        out_shape=jax.ShapeDtypeStruct((B * H, Sq, D), value.dtype),
        grid_spec=pltpu.PrefetchScalarGridSpec(
            num_scalar_prefetch=0,
            grid=grid,
            in_specs=[
                pl.BlockSpec((1, bq, D), lambda b, i, j: (b, i, 0)),
                pl.BlockSpec((1, bk, D), lambda b, i, j: (b, j, 0)),
                pl.BlockSpec((1, bk, D), lambda b, i, j: (b, j, 0)),
            ],
            out_specs=pl.BlockSpec((1, bq, D), lambda b, i, j: (b, i, 0)),
            scratch_shapes=[
                pltpu.VMEM((bq, 1), jnp.float32),   # running max
                pltpu.VMEM((bq, 1), jnp.float32),   # running denom
                pltpu.VMEM((bq, D), jnp.float32),   # output accumulator
            ],
        ),
        compiler_params=pltpu.CompilerParams(
            dimension_semantics=("parallel", "parallel", "arbitrary"),
            vmem_limit_bytes=48 * 1024 * 1024,
        ),
        cost_estimate=cost,
    )(qf, kf, vf)

    # [B*H, Sq, D] -> [B, Sq, H*D] (matches module's transpose + reshape)
    ctx = out.reshape(B, H, Sq, D).transpose(0, 2, 1, 3).reshape(B, Sq, H * D)
    return ctx


def attention_ref(query, key, value, attention_mask=None, *,
                  layer_number: int = 1, precision=None):
    """Pure-JAX reference mirroring the PyTorch module (eval mode)."""
    B, H, Sq, D = query.shape
    Sk = key.shape[2]
    norm_factor = math.sqrt(D) * layer_number
    coeff = float(layer_number)

    scores = jnp.einsum("bhqd,bhkd->bhqk", query, key,
                        preferred_element_type=jnp.float32,
                        precision=precision)
    scores = scores / norm_factor
    scores = scores.astype(jnp.float32) * coeff
    if attention_mask is None and Sq == Sk:
        masked = jnp.triu(jnp.ones((Sq, Sk), dtype=bool), k=1)  # True above diag
        scores = jnp.where(masked[None, None, :, :], -jnp.inf, scores)
    probs = jax.nn.softmax(scores, axis=-1).astype(value.dtype)
    ctx = jnp.einsum("bhqk,bhkd->bhqd", probs, value, precision=precision)
    ctx = jnp.transpose(ctx, (0, 2, 1, 3)).reshape(B, Sq, H * D)
    return ctx


if __name__ == "__main__":
    # Small shapes consistent with the module's forward:
    # query/key/value are [batch, num_heads, seq, head_dim].
    B, H, S, D = 2, 4, 256, 128
    layer_number = 3

    key0 = jax.random.PRNGKey(0)
    kq, kk, kv = jax.random.split(key0, 3)
    q = jax.random.normal(kq, (B, H, S, D), dtype=jnp.float32)
    k = jax.random.normal(kk, (B, H, S, D), dtype=jnp.float32)
    v = jax.random.normal(kv, (B, H, S, D), dtype=jnp.float32)

    out = glm_attention(q, k, v, None, layer_number=layer_number,
                        block_q=128, block_k=128,
                        precision=lax.Precision.HIGHEST)
    out = jax.block_until_ready(out)

    expected = attention_ref(q, k, v, None, layer_number=layer_number,
                             precision=lax.Precision.HIGHEST)

    assert out.shape == (B, S, H * D), out.shape
    assert out.dtype == q.dtype, out.dtype
    max_err = float(jnp.max(jnp.abs(out - expected)))
    assert jnp.allclose(out, expected, atol=2e-4, rtol=2e-4), max_err

    print("KERNEL_OK")
</pallas_src>

<mosaic_0001>
module attributes {stable_mosaic.version = 11 : i64} {
  func.func @_flash_attn_kernel(%arg0: i32, %arg1: i32, %arg2: i32, %arg3: memref<1x128x128xf32, #tpu.memory_space<vmem>>, %arg4: memref<1x128x128xf32, #tpu.memory_space<vmem>>, %arg5: memref<1x128x128xf32, #tpu.memory_space<vmem>>, %arg6: memref<1x128x128xf32, #tpu.memory_space<vmem>>, %arg7: memref<128x1xf32, #tpu.memory_space<vmem>>, %arg8: memref<128x1xf32, #tpu.memory_space<vmem>>, %arg9: memref<128x128xf32, #tpu.memory_space<vmem>>) attributes {dimension_semantics = [#tpu.dimension_semantics<parallel>, #tpu.dimension_semantics<parallel>, #tpu.dimension_semantics<arbitrary>], iteration_bounds = array<i64: 8, 2, 2>, scalar_prefetch = 0 : i64, scratch_operands = 3 : i64, tpu.core_type = #tpu.core_type<tc>, window_params = [{transform_indices = @transform_0, window_bounds = array<i64: 1, 128, 128>}, {transform_indices = @transform_1, window_bounds = array<i64: 1, 128, 128>}, {transform_indices = @transform_2, window_bounds = array<i64: 1, 128, 128>}, {transform_indices = @transform_3, window_bounds = array<i64: 1, 128, 128>}]} {
    %c0_i32 = arith.constant 0 : i32
    %0 = arith.cmpi eq, %arg2, %c0_i32 : i32
    %1 = arith.extui %0 : i1 to i32
    %c0_i32_0 = arith.constant 0 : i32
    %2 = arith.cmpi ne, %1, %c0_i32_0 : i32
    scf.if %2 {
      %cst = arith.constant 0xFF800000 : f32
      %12 = vector.broadcast %cst : f32 to vector<128x1xf32>
      %c0 = arith.constant 0 : index
      %c0_4 = arith.constant 0 : index
      %13 = vector.load %arg7[%c0, %c0_4] : memref<128x1xf32, #tpu.memory_space<vmem>>, vector<128x1xf32>
      tpu.vector_store %arg7[%c0, %c0_4], %12 {strides = array<i32>} : memref<128x1xf32, #tpu.memory_space<vmem>>, vector<128x1xf32>,
      %cst_5 = arith.constant 0.000000e+00 : f32
      %14 = vector.broadcast %cst_5 : f32 to vector<128x1xf32>
      %c0_6 = arith.constant 0 : index
      %c0_7 = arith.constant 0 : index
      %15 = vector.load %arg8[%c0_6, %c0_7] : memref<128x1xf32, #tpu.memory_space<vmem>>, vector<128x1xf32>
      tpu.vector_store %arg8[%c0_6, %c0_7], %14 {strides = array<i32>} : memref<128x1xf32, #tpu.memory_space<vmem>>, vector<128x1xf32>,
      %cst_8 = arith.constant 0.000000e+00 : f32
      %16 = vector.broadcast %cst_8 : f32 to vector<128x128xf32>
      %c0_9 = arith.constant 0 : index
      %c0_10 = arith.constant 0 : index
      %17 = vector.load %arg9[%c0_9, %c0_10] : memref<128x128xf32, #tpu.memory_space<vmem>>, vector<128x128xf32>
      tpu.vector_store %arg9[%c0_9, %c0_10], %16 {strides = array<i32>} : memref<128x128xf32, #tpu.memory_space<vmem>>, vector<128x128xf32>,
    } else {
    }
    %c128_i32 = arith.constant 128 : i32
    %3 = arith.muli %arg2, %c128_i32 : i32
    %c128_i32_1 = arith.constant 128 : i32
    %4 = arith.muli %arg1, %c128_i32_1 : i32
    %c127_i32 = arith.constant 127 : i32
    %5 = arith.addi %4, %c127_i32 : i32
    %6 = arith.cmpi sle, %3, %5 : i32
    %7 = arith.extui %6 : i1 to i32
    %c0_i32_2 = arith.constant 0 : i32
    %8 = arith.cmpi ne, %7, %c0_i32_2 : i32
    scf.if %8 {
      %c0 = arith.constant 0 : index
      %c0_4 = arith.constant 0 : index
      %c0_5 = arith.constant 0 : index
      %12 = vector.load %arg3[%c0, %c0_4, %c0_5] : memref<1x128x128xf32, #tpu.memory_space<vmem>>, vector<1x128x128xf32>
      %13 = vector.shape_cast %12 : vector<1x128x128xf32> to vector<128x128xf32>
      %c0_6 = arith.constant 0 : index
      %c0_7 = arith.constant 0 : index
      %c0_8 = arith.constant 0 : index
      %14 = vector.load %arg4[%c0_6, %c0_7, %c0_8] : memref<1x128x128xf32, #tpu.memory_space<vmem>>, vector<1x128x128xf32>
      %15 = vector.shape_cast %14 : vector<1x128x128xf32> to vector<128x128xf32>
      %c0_9 = arith.constant 0 : index
      %c0_10 = arith.constant 0 : index
      %c0_11 = arith.constant 0 : index
      %16 = vector.load %arg5[%c0_9, %c0_10, %c0_11] : memref<1x128x128xf32, #tpu.memory_space<vmem>>, vector<1x128x128xf32>
      %17 = vector.shape_cast %16 : vector<1x128x128xf32> to vector<128x128xf32>
      %cst = arith.constant dense<0.000000e+00> : vector<128x128xf32>
      %18 = tpu.matmul %13, %15, %cst {dimension_numbers = #tpu.dot_dimension_numbers<[1], [1], [0], [0], [0, 0, 1, 0], [], []>, precision = #tpu.contract_precision<fp32>} : vector<128x128xf32>, vector<128x128xf32>, vector<128x128xf32> -> vector<128x128xf32>
      %cst_12 = arith.constant 33.941124 : f32
      %19 = vector.broadcast %cst_12 : f32 to vector<128x128xf32>
      %20 = arith.divf %18, %19 : vector<128x128xf32>
      %cst_13 = arith.constant 3.000000e+00 : f32
      %21 = vector.broadcast %cst_13 : f32 to vector<128x128xf32>
      %22 = arith.mulf %20, %21 : vector<128x128xf32>
      %c128_i32_14 = arith.constant 128 : i32
      %23 = arith.muli %arg1, %c128_i32_14 : i32
      %24 = tpu.iota {dimensions = array<i32: 0>} : vector<128x128xi32>
      %25 = vector.broadcast %23 : i32 to vector<128x128xi32>
      %26 = arith.addi %25, %24 : vector<128x128xi32>
      %c128_i32_15 = arith.constant 128 : i32
      %27 = arith.muli %arg2, %c128_i32_15 : i32
      %28 = tpu.iota {dimensions = array<i32: 1>} : vector<128x128xi32>
      %29 = vector.broadcast %27 : i32 to vector<128x128xi32>
      %30 = arith.addi %29, %28 : vector<128x128xi32>
      %31 = arith.cmpi sgt, %30, %26 : vector<128x128xi32>
      %cst_16 = arith.constant 0xFF800000 : f32
      %32 = vector.broadcast %cst_16 : f32 to vector<128x128xf32>
      %33 = arith.select %31, %32, %22 : vector<128x128xi1>, vector<128x128xf32>
      %c0_17 = arith.constant 0 : index
      %c0_18 = arith.constant 0 : index
      %34 = vector.load %arg7[%c0_17, %c0_18] : memref<128x1xf32, #tpu.memory_space<vmem>>, vector<128x1xf32>
      %cst_19 = arith.constant dense<0xFF800000> : vector<128xf32>
      %35 = vector.multi_reduction <maximumf>, %33, %cst_19 [1] : vector<128x128xf32> to vector<128xf32>
      %36 = vector.shape_cast %35 : vector<128xf32> to vector<128x1xf32>
      %37 = arith.maximumf %34, %36 : vector<128x1xf32>
      %38 = arith.subf %34, %37 : vector<128x1xf32>
      %39 = math.exp %38 : vector<128x1xf32>
      %40 = vector.broadcast %37 : vector<128x1xf32> to vector<128x128xf32>
      %41 = arith.subf %33, %40 : vector<128x128xf32>
      %42 = math.exp %41 : vector<128x128xf32>
      %c0_20 = arith.constant 0 : index
      %c0_21 = arith.constant 0 : index
      %43 = vector.load %arg8[%c0_20, %c0_21] : memref<128x1xf32, #tpu.memory_space<vmem>>, vector<128x1xf32>
      %44 = arith.mulf %39, %43 : vector<128x1xf32>
      %cst_22 = arith.constant dense<0.000000e+00> : vector<128xf32>
      %45 = vector.multi_reduction <add>, %42, %cst_22 [1] : vector<128x128xf32> to vector<128xf32>
      %46 = vector.shape_cast %45 : vector<128xf32> to vector<128x1xf32>
      %47 = arith.addf %44, %46 : vector<128x1xf32>
      %c0_23 = arith.constant 0 : index
      %c0_24 = arith.constant 0 : index
      %48 = vector.load %arg8[%c0_23, %c0_24] : memref<128x1xf32, #tpu.memory_space<vmem>>, vector<128x1xf32>
      tpu.vector_store %arg8[%c0_23, %c0_24], %47 {strides = array<i32>} : memref<128x1xf32, #tpu.memory_space<vmem>>, vector<128x1xf32>,
      %c0_25 = arith.constant 0 : index
      %c0_26 = arith.constant 0 : index
      %49 = vector.load %arg9[%c0_25, %c0_26] : memref<128x128xf32, #tpu.memory_space<vmem>>, vector<128x128xf32>
      %50 = vector.broadcast %39 : vector<128x1xf32> to vector<128x128xf32>
      %51 = arith.mulf %50, %49 : vector<128x128xf32>
      %cst_27 = arith.constant dense<0.000000e+00> : vector<128x128xf32>
      %52 = tpu.matmul %42, %17, %cst_27 {dimension_numbers = #tpu.dot_dimension_numbers<[1], [0], [0], [1], [0, 0, 1, 1], [], []>, precision = #tpu.contract_precision<fp32>} : vector<128x128xf32>, vector<128x128xf32>, vector<128x128xf32> -> vector<128x128xf32>
      %53 = arith.addf %51, %52 : vector<128x128xf32>
      %c0_28 = arith.constant 0 : index
      %c0_29 = arith.constant 0 : index
      %54 = vector.load %arg9[%c0_28, %c0_29] : memref<128x128xf32, #tpu.memory_space<vmem>>, vector<128x128xf32>
      tpu.vector_store %arg9[%c0_28, %c0_29], %53 {strides = array<i32>} : memref<128x128xf32, #tpu.memory_space<vmem>>, vector<128x128xf32>,
      %c0_30 = arith.constant 0 : index
      %c0_31 = arith.constant 0 : index
      %55 = vector.load %arg7[%c0_30, %c0_31] : memref<128x1xf32, #tpu.memory_space<vmem>>, vector<128x1xf32>
      tpu.vector_store %arg7[%c0_30, %c0_31], %37 {strides = array<i32>} : memref<128x1xf32, #tpu.memory_space<vmem>>, vector<128x1xf32>,
    } else {
    }
    %c1_i32 = arith.constant 1 : i32
    %9 = arith.cmpi eq, %arg2, %c1_i32 : i32
    %10 = arith.extui %9 : i1 to i32
    %c0_i32_3 = arith.constant 0 : i32
    %11 = arith.cmpi ne, %10, %c0_i32_3 : i32
    scf.if %11 {
      %c0 = arith.constant 0 : index
      %c0_4 = arith.constant 0 : index
      %12 = vector.load %arg9[%c0, %c0_4] : memref<128x128xf32, #tpu.memory_space<vmem>>, vector<128x128xf32>
      %c0_5 = arith.constant 0 : index
      %c0_6 = arith.constant 0 : index
      %13 = vector.load %arg8[%c0_5, %c0_6] : memref<128x1xf32, #tpu.memory_space<vmem>>, vector<128x1xf32>
      %14 = vector.broadcast %13 : vector<128x1xf32> to vector<128x128xf32>
      %15 = arith.divf %12, %14 : vector<128x128xf32>
      %c0_7 = arith.constant 0 : index
      %c0_8 = arith.constant 0 : index
      %c0_9 = arith.constant 0 : index
      %16 = vector.load %arg6[%c0_7, %c0_8, %c0_9] : memref<1x128x128xf32, #tpu.memory_space<vmem>>, vector<1x128x128xf32>
      %17 = vector.shape_cast %16 : vector<1x128x128xf32> to vector<128x128xf32>
      %18 = vector.shape_cast %15 : vector<128x128xf32> to vector<1x128x128xf32>
      tpu.vector_store %arg6[%c0_7, %c0_8, %c0_9], %18 {strides = array<i32>} : memref<1x128x128xf32, #tpu.memory_space<vmem>>, vector<1x128x128xf32>,
    } else {
    }
    return
  }
  func.func @transform_0(%arg0: i32, %arg1: i32, %arg2: i32) -> (i32, i32, i32) {
    %c0_i32 = arith.constant 0 : i32
    %c0_i32_0 = arith.constant 0 : i32
    return %arg0, %arg1, %c0_i32 : i32, i32, i32
  }
  func.func @transform_1(%arg0: i32, %arg1: i32, %arg2: i32) -> (i32, i32, i32) {
    %c0_i32 = arith.constant 0 : i32
    %c0_i32_0 = arith.constant 0 : i32
    return %arg0, %arg2, %c0_i32 : i32, i32, i32
  }
  func.func @transform_2(%arg0: i32, %arg1: i32, %arg2: i32) -> (i32, i32, i32) {
    %c0_i32 = arith.constant 0 : i32
    %c0_i32_0 = arith.constant 0 : i32
    return %arg0, %arg2, %c0_i32 : i32, i32, i32
  }
  func.func @transform_3(%arg0: i32, %arg1: i32, %arg2: i32) -> (i32, i32, i32) {
    %c0_i32 = arith.constant 0 : i32
    %c0_i32_0 = arith.constant 0 : i32
    return %arg0, %arg1, %c0_i32 : i32, i32, i32
  }
}

</mosaic_0001>

<bundles_post_ra>
// kernel: tpu_custom_call.1
= control target key start
LH: loop header
LB: loop body
LE: loop exit
PB: predicated region body
PF: predicated region fallthrough
CT: control target
= control target key end

     0   :  { %s5585_s0 = inlined_call_operand.hbm [shape: f32[8,256,128], index: 0, kind: input, shape index: {}]   ;;  %s5586_s1 = inlined_call_operand.hbm [shape: f32[8,256,128], index: 1, kind: input, shape index: {}]   ;;  %s5587_s2 = inlined_call_operand.hbm [shape: f32[8,256,128], index: 2, kind: input, shape index: {}]   ;;  %s5588_s3 = inlined_call_operand.hbm [shape: f32[8,256,128], index: 3, kind: output, shape index: {}]  }
   0x1   :  { %5648 = sst [smem:[#allocation51_spill]] %s5586_s1 }
   0x2   :  { %5649 = sst [smem:[#allocation52_spill]] %s5587_s2 }
   0x3   :  { %5650 = sst [smem:[#allocation53_spill]] %s5588_s3 }
   0x4   :  { %8 = vsyncpa [#allocation6], 0 }
   0x5   :  { %10 = vsyncpa [#allocation6 + $0x1], 0 }
   0x6   :  { %11 = vsyncpa [#allocation9], 0 }
   0x7   :  { %13 = vsyncpa [#allocation9 + $0x1], 0 }
   0x8   :  { %14 = vsyncpa [#allocation7], 0 }
   0x9   :  { %16 = vsyncpa [#allocation7 + $0x1], 0  ;;  %s3706_s12 = smov 0   ;;  %s3708_s13 = smov 0  }
   0xa   :  { %s3710_s14 = smov 0   ;;  %s3712_s15 = smov 0  }
   0xb   :  { %s3714_s16 = smov 0   ;;  %s3716_s17 = smov 0  }
   0xc   :  { %s3718_s18 = smov 0   ;;  %s3720_s19 = smov 0  }
   0xd   :  { %s3722_s20 = smov 0   ;;  %s3724_s21 = smov 0  }
   0xe   :  { %s3726_s22 = smov 0   ;;  %s3728_s23 = smov 0  }
   0xf   :  { %s3730_s24 = smov 0  }
  0x10 LB: > { %5651 = sst [smem:[#allocation15_spill]] %s3631_s13  ;;  %s3770_s25 = sadd.s32 4294967295, %s3675_s24   ;;  %s3675_s24 = sphi %s3730_s24, %s22_s24   ;;  %s3671_s23 = sphi %s3728_s23, %s5804_s23   ;;  %s3667_s22 = sphi %s3726_s22, %s5794_s22   ;;  %s3663_s21 = sphi %s3724_s21, %s5803_s21   ;;  %s3659_s20 = sphi %s3722_s20, %s5802_s20   ;;  %s3655_s19 = sphi %s3720_s19, %s5793_s19   ;;  %s3651_s18 = sphi %s3718_s18, %s5801_s18   ;;  %s3647_s17 = sphi %s3716_s17, %s5800_s17   ;;  %s3643_s16 = sphi %s3714_s16, %s5799_s16   ;;  %s3639_s15 = sphi %s3712_s15, %s5798_s15   ;;  %s3635_s14 = sphi %s3710_s14, %s5797_s14   ;;  %s3631_s13 = sphi %s3708_s13, %s5796_s13   ;;  %s3627_s12 = sphi %s3706_s12, %s5790_s12  }
  0x11   : > { %5652 = sst [smem:[#allocation16_spill]] %s3639_s15  ;;  %s34_s26 = sadd.s32 1, %s3663_s21 }
  0x12   : > { %5653 = sst [smem:[#allocation17_spill]] %s3643_s16  ;;  %p3773_p0 = scmp.ge.s32.totalorder %s34_s26, 2 }
  0x13   : > { %5654 = sst [smem:[#allocation18_spill]] %s3651_s18  ;;  %p58_p1 = scmp.eq.s32.totalorder %s3675_s24, 0 }
  0x14   : > { %5655 = sst [smem:[#allocation19_spill]] %s3655_s19  ;;  %p64_p2 = scmp.eq.s32.totalorder %s3770_s25, 0 }
  0x15   : > { %5656 = sst [smem:[#allocation20_spill]] %s3659_s20  ;;  %s5806_s26 = smov (%p3773_p0, %s34_s26), 0 }
  0x16   : > { %5657 = sst [smem:[#allocation21_spill]] %s3667_s22  ;;  %p85_p3 = scmp.ne.s32.totalorder %s3635_s14, %s3631_s13 }
  0x17   : > { %5658 = sst [smem:[#allocation22_spill]] %s3770_s25  ;;  %p91_p4 = scmp.ne.s32.totalorder %s3631_s13, %s3627_s12 }
  0x18   : > { %p3790_p5 = por %p85_p3, %p58_p1  ;;  %p3224_p7 = scmp.lt.s32.totalorder %s3675_s24, 32 }
  0x19   : > { %p3796_p6 = por %p91_p4, %p64_p2  ;;  %s5595_s5 = sshll.u32 %s3671_s23, 5 }
  0x1a   : > { %s195_s6 = sand.u32 1, %s3675_s24   ;;  %s197_s7 = sand.u32 1, %s3635_s14  }
  0x1b   : > { %s5661_s4 = scalar_select %p3796_p6, 1, 0 }
  0x1c   : > { %s3178_s8 = sshll.u32 %s197_s7, 7  ;;  %s3179_s9 = sshll.u32 %s3663_s21, 4 }
  0x1d   : > { %5662 = sst [smem:[#allocation23_spill]] %s5661_s4  ;;  %s204_s10 = sadd.s32 %s3179_s9, %s5595_s5 }
  0x1e   : > { %s3181_s11 = sshll.u32 %s204_s10, 3  ;;  %s199_s12 = scalar_lea.vmem [#allocation8], %s3178_s8 }
  0x1f   : > { %s209_s29 = sshll.u32 %s199_s12, 4  ;;  %s5663_s1 = sld [smem:[#allocation51_spill]]  ;;  %s210_s29 = int_to_ptr.vmem [resolvable:$true] %s209_s29 }
  0x20   : > { %p3814_p8 = pnand %p3224_p7, %p3790_p5  ;;  %s5665_s2 = sld [smem:[#allocation52_spill]] }
  0x21   : > { %s3821_s28 = scalar_lea.sflag [#allocation9], %s195_s6  ;;  %s5593_s30 = smov 8  }
  0x22   : > { %s223_s6 = scalar_lea.vmem [#allocation10], %s3178_s8  ;;  %p3186_p9 = scmp.ge.s32.totalorder %s3675_s24, 1 }
  0x23   : > { %s3833_s9 = sshll.u32 %s223_s6, 4  ;;  %p241_p10 = scmp.lt.s32.totalorder %s3675_s24, 33  ;;  %s234_s9 = int_to_ptr.vmem [resolvable:$true] %s3833_s9 }
  0x24   : > { %p57_p12 = scmp.ne.s32.totalorder %s3647_s17, %s3643_s16  ;;  %p63_p13 = scmp.ne.s32.totalorder %s3643_s16, %s3639_s15 }
  0x25   : > { %s206_s20 = scalar_lea.hbm %s5663_s1, %s3181_s11  ;;  %p3837_p11 = pnand %p3186_p9, %p241_p10 }
  0x26   : > { %s207_s19 = sshll.u32 %s206_s20, 4  ;;  %s230_s3 = scalar_lea.hbm %s5665_s2, %s3181_s11  ;;  %s208_s19 = int_to_ptr.hbm [resolvable:$true] %s207_s19 }
  0x27   : > { %s5591_s20 = smov 128   ;;  %s231_s11 = sshll.u32 %s230_s3, 4  ;;  %s3831_s11 = int_to_ptr.hbm [resolvable:$true] %s231_s11 }
  0x28   : > { %3216 = dma.hbm_to_vmem [thread:$0]  (!%p3814_p8), %s208_s19, 2048, %s210_s29, %s3821_s28, %s5591_s20, %s5591_s20, %s5593_s30  }
  0x29   : > { %s5666_s10 = scalar_select %p3837_p11, 1, 0 }
  0x2a   : > { %s3171_s19 = sadd.s32 4294967294, %s3675_s24   ;;  %s37_s29 = sadd.s32 1, %s3667_s22 }
  0x2b   : > { %5667 = sst [smem:[#allocation24_spill]] %s5666_s10  ;;  %s50_s3 = sadd.s32 1, %s3647_s17 }
  0x2c   : > { %s5808_s29 = smov (!%p3773_p0, %s37_s29), %s3667_s22  ;;  %p145_p4 = scmp.eq.s32.totalorder %s3770_s25, 31 }
  0x2d   : > { %p39_p3 = scmp.ge.s32.totalorder %s5808_s29, 2  ;;  %p3854_p5 = por %p58_p1, %p57_p12 }
  0x2e   : > { %p3863_p9 = por %p64_p2, %p63_p13  ;;  %s5672_s27 = sadd.s32 1, %s3671_s23 }
  0x2f   : > { %s5810_s29 = smov (%p39_p3, %s5808_s29), 0  ;;  %s5812_s27 = smov (!%p39_p3, %s5672_s27), %s3671_s23 }
  0x30   : > { %s5669_s6 = scalar_select %p3863_p9, 1, 0 }
  0x31   : > { %5671 = sst [smem:[#allocation26_spill]] %s5810_s29  ;;  %s46_s20 = ssub.s32 %s3667_s22, %s5810_s29 }
  0x32   : > { %5670 = sst [smem:[#allocation25_spill]] %s5669_s6  ;;  %p3874_p0 = por %p145_p4, %p57_p12 }
  0x33   : > { %p43_p1 = scmp.ge.s32.totalorder %s5812_s27, 8  ;;  %p151_p10 = scmp.eq.s32.totalorder %s3171_s19, 31 }
  0x34   : > { %s5673_s30 = scalar_select %p3874_p0, 1, 0 }
  0x35   : > { %s171_s5 = sand.u32 1, %s3647_s17   ;;  %s3175_s12 = sshll.u32 %s3667_s22, 4 }
  0x36   : > { %5674 = sst [smem:[#allocation27_spill]] %s5673_s30  ;;  %s5814_s27 = smov (%p43_p1, %s5812_s27), 0 }
  0x37   : > { %5675 = sst [smem:[#allocation28_spill]] %s5814_s27  ;;  %p3885_p2 = por %p151_p10, %p63_p13 }
  0x38   : > { %s45_s2 = ssub.s32 %s3671_s23, %s5814_s27  ;;  %s3174_s29 = sshll.u32 %s171_s5, 7 }
  0x39   : > { %s5676_s1 = scalar_select %p3885_p2, 1, 0 }
  0x3a   : > { %s47_s18 = sor.u32 %s46_s20, %s45_s2  ;;  %s5678_s4 = ssub.s32 %s3663_s21, %s5806_s26 }
  0x3b   : > { %5677 = sst [smem:[#allocation29_spill]] %s5676_s1  ;;  %s75_s30 = sor.u32 %s5678_s4, %s45_s2 }
  0x3c   : > { %p48_p12 = scmp.eq.s32.totalorder %s47_s18, 0  ;;  %p76_p3 = scmp.eq.s32.totalorder %s75_s30, 0 }
  0x3d   : > { %s5679_s19 = sshll.u32 %s3671_s23, 5  ;;  %s5680_s13 = sadd.s32 1, %s3635_s14 }
  0x3e   : > { %s180_s22 = sadd.s32 %s5679_s19, %s3175_s12  ;;  %s175_s6 = scalar_lea.vmem [#allocation5], %s3174_s29 }
  0x3f   : > { %s3897_s15 = scalar_select %p48_p12, %s3647_s17, %s50_s3  }
  0x40   : > { %s3902_s25 = scalar_select %p76_p3, %s3635_s14, %s5680_s13  }
  0x41   : > { %s3177_s1 = sshll.u32 %s180_s22, 3  ;;  %s185_s27 = sshll.u32 %s175_s6, 4  ;;  %s186_s27 = int_to_ptr.vmem [resolvable:$true] %s185_s27 }
  0x42   : > { %s182_s20 = scalar_lea.hbm %s5585_s0, %s3177_s1  ;;  %p3211_p13 = pnand %p3224_p7, %p3854_p5 }
  0x43   : > { %s183_s2 = sshll.u32 %s182_s20, 4  ;;  %s172_s18 = scalar_lea.sflag [#allocation6], %s171_s5  ;;  %s184_s2 = int_to_ptr.hbm [resolvable:$true] %s183_s2 }
  0x44   : > { %s5681_s4 = smov 8   ;;  %s5682_s30 = smov 128  }
  0x45   : > { %3213 = dma.hbm_to_vmem [thread:$0]  (!%p3211_p13), %s184_s2, 2048, %s186_s27, %s172_s18, %s5682_s30, %s5682_s30, %s5681_s4  }
  0x46   : > { %3219 = dma.hbm_to_vmem [thread:$0]  (!%p3814_p8), %s3831_s11, 2048, %s234_s9, %s3821_s28, %s5682_s30, %s5682_s30, %s5681_s4  }
  0x47   : > { %245 = sbr.rel (%p3837_p11) target bundleno = 1571 (0x623), region = 32  ;;  %s5684_s1 = sld [smem:[#allocation17_spill]] (!%p3837_p11) }
  0x4d   : > { %s3925_s22 = sand.u32 1, %s5684_s1  }
  0x4e   : > { %s3187_s12 = sshll.u32 %s3925_s22, 7  ;;  %s248_s5 = scalar_lea.sflag [#allocation6], %s3925_s22 }
  0x4f   : > { %s3929_s10 = scalar_lea.vmem [#allocation5], %s3187_s12 }
  0x50   : > { %3614 = dma.done.wait (%p3863_p9), %s248_s5, 2048  }
  0x51   : > { %3616 = vsyncadd (%p3863_p9), %s248_s5, 4294965248  ;;  %s5686_s7 = sld [smem:[#allocation22_spill]] }
  0x52   : > { %s5687_s28 = sld [smem:[#allocation15_spill]] }
  0x57   : > { %s257_s9 = sand.u32 1, %s5686_s7  }
  0x58   : > { %s259_s29 = sand.u32 1, %s5687_s28   ;;  %s258_s8 = scalar_lea.sflag [#allocation9], %s257_s9 }
  0x59   : > { %s3188_s3 = sshll.u32 %s259_s29, 7 }
  0x5a   : > { %s3937_s6 = scalar_lea.vmem [#allocation8], %s3188_s3 }
  0x5b   : > { %3618 = dma.done.wait (%p3796_p6), %s258_s8, 4096  }
  0x5c   : > { %3620 = vsyncadd (%p3796_p6), %s258_s8, 4294963200  ;;  %s3943_s27 = scalar_lea.vmem [#allocation10], %s3188_s3  ;;  %s3945_s19 = scalar_lea.vmem [#allocation11], %s3187_s12 }
  0x5d   : > { %s5689_s20 = sld [smem:[#allocation18_spill]] }
  0x63   : > { %p3191_p7 = scmp.ne.s32.totalorder %s5689_s20, 0 }
  0x65   : > { %312 = sbr.rel (%p3191_p7) target bundleno = 155 (0x9b), region = 48 }
  0x6a   : > { %vm313_vm0 = vcmask 7168   ;;  %v3679_v0 = vmov -inf   ;;  %v3680_v1 = vmov 0.0  }
  0x6b   : > { %314 = vst.msk [vmem:[#allocation2] sm:$0xff] %vm313_vm0, %v3679_v0 }
  0x6c   : > { %315 = vst.msk [vmem:[#allocation2 + $0x8] sm:$0xff] %vm313_vm0, %v3679_v0 }
  0x6d   : > { %316 = vst.msk [vmem:[#allocation2 + $0x10] sm:$0xff] %vm313_vm0, %v3679_v0 }
  0x6e   : > { %317 = vst.msk [vmem:[#allocation2 + $0x18] sm:$0xff] %vm313_vm0, %v3679_v0 }
  0x6f   : > { %318 = vst.msk [vmem:[#allocation2 + $0x20] sm:$0xff] %vm313_vm0, %v3679_v0 }
  0x70   : > { %319 = vst.msk [vmem:[#allocation2 + $0x28] sm:$0xff] %vm313_vm0, %v3679_v0 }
  0x71   : > { %320 = vst.msk [vmem:[#allocation2 + $0x30] sm:$0xff] %vm313_vm0, %v3679_v0 }
  0x72   : > { %321 = vst.msk [vmem:[#allocation2 + $0x38] sm:$0xff] %vm313_vm0, %v3679_v0 }
  0x73   : > { %322 = vst.msk [vmem:[#allocation2 + $0x40] sm:$0xff] %vm313_vm0, %v3679_v0 }
  0x74   : > { %323 = vst.msk [vmem:[#allocation2 + $0x48] sm:$0xff] %vm313_vm0, %v3679_v0 }
  0x75   : > { %324 = vst.msk [vmem:[#allocation2 + $0x50] sm:$0xff] %vm313_vm0, %v3679_v0 }
  0x76   : > { %325 = vst.msk [vmem:[#allocation2 + $0x58] sm:$0xff] %vm313_vm0, %v3679_v0 }
  0x77   : > { %326 = vst.msk [vmem:[#allocation2 + $0x60] sm:$0xff] %vm313_vm0, %v3679_v0 }
  0x78   : > { %327 = vst.msk [vmem:[#allocation2 + $0x68] sm:$0xff] %vm313_vm0, %v3679_v0 }
  0x79   : > { %328 = vst.msk [vmem:[#allocation2 + $0x70] sm:$0xff] %vm313_vm0, %v3679_v0 }
  0x7a   : > { %329 = vst.msk [vmem:[#allocation2 + $0x78] sm:$0xff] %vm313_vm0, %v3679_v0 }
  0x7b   : > { %330 = vst.msk [vmem:[#allocation3] sm:$0xff] %vm313_vm0, %v3680_v1 }
  0x7c   : > { %331 = vst.msk [vmem:[#allocation3 + $0x8] sm:$0xff] %vm313_vm0, %v3680_v1 }
  0x7d   : > { %332 = vst.msk [vmem:[#allocation3 + $0x10] sm:$0xff] %vm313_vm0, %v3680_v1 }
  0x7e   : > { %333 = vst.msk [vmem:[#allocation3 + $0x18] sm:$0xff] %vm313_vm0, %v3680_v1 }
  0x7f   : > { %334 = vst.msk [vmem:[#allocation3 + $0x20] sm:$0xff] %vm313_vm0, %v3680_v1 }
  0x80   : > { %335 = vst.msk [vmem:[#allocation3 + $0x28] sm:$0xff] %vm313_vm0, %v3680_v1 }
  0x81   : > { %336 = vst.msk [vmem:[#allocation3 + $0x30] sm:$0xff] %vm313_vm0, %v3680_v1 }
  0x82   : > { %337 = vst.msk [vmem:[#allocation3 + $0x38] sm:$0xff] %vm313_vm0, %v3680_v1 }
  0x83   : > { %338 = vst.msk [vmem:[#allocation3 + $0x40] sm:$0xff] %vm313_vm0, %v3680_v1 }
  0x84   : > { %339 = vst.msk [vmem:[#allocation3 + $0x48] sm:$0xff] %vm313_vm0, %v3680_v1 }
  0x85   : > { %340 = vst.msk [vmem:[#allocation3 + $0x50] sm:$0xff] %vm313_vm0, %v3680_v1 }
  0x86   : > { %341 = vst.msk [vmem:[#allocation3 + $0x58] sm:$0xff] %vm313_vm0, %v3680_v1 }
  0x87   : > { %342 = vst.msk [vmem:[#allocation3 + $0x60] sm:$0xff] %vm313_vm0, %v3680_v1 }
  0x88   : > { %343 = vst.msk [vmem:[#allocation3 + $0x68] sm:$0xff] %vm313_vm0, %v3680_v1 }
  0x89   : > { %344 = vst.msk [vmem:[#allocation3 + $0x70] sm:$0xff] %vm313_vm0, %v3680_v1 }
  0x8a   : > { %345 = vst.msk [vmem:[#allocation3 + $0x78] sm:$0xff] %vm313_vm0, %v3680_v1 }
  0x8b   : > { %346 = vst [vmem:[#allocation4 + $0x30] sm:$0xff] %v3680_v1 }
  0x8c   : > { %347 = vst [vmem:[#allocation4] sm:$0xff] %v3680_v1 }
  0x8d   : > { %348 = vst [vmem:[#allocation4 + $0x58] sm:$0xff] %v3680_v1 }
  0x8e   : > { %349 = vst [vmem:[#allocation4 + $0x18] sm:$0xff] %v3680_v1 }
  0x8f   : > { %350 = vst [vmem:[#allocation4 + $0x50] sm:$0xff] %v3680_v1 }
  0x90   : > { %351 = vst [vmem:[#allocation4 + $0x68] sm:$0xff] %v3680_v1 }
  0x91   : > { %352 = vst [vmem:[#allocation4 + $0x8] sm:$0xff] %v3680_v1 }
  0x92   : > { %353 = vst [vmem:[#allocation4 + $0x48] sm:$0xff] %v3680_v1 }
  0x93   : > { %354 = vst [vmem:[#allocation4 + $0x40] sm:$0xff] %v3680_v1 }
  0x94   : > { %355 = vst [vmem:[#allocation4 + $0x20] sm:$0xff] %v3680_v1 }
  0x95   : > { %356 = vst [vmem:[#allocation4 + $0x10] sm:$0xff] %v3680_v1 }
  0x96   : > { %357 = vst [vmem:[#allocation4 + $0x38] sm:$0xff] %v3680_v1 }
  0x97   : > { %358 = vst [vmem:[#allocation4 + $0x60] sm:$0xff] %v3680_v1 }
  0x98   : > { %359 = vst [vmem:[#allocation4 + $0x70] sm:$0xff] %v3680_v1 }
  0x99   : > { %360 = vst [vmem:[#allocation4 + $0x78] sm:$0xff] %v3680_v1 }
  0x9a   : > { %361 = vst [vmem:[#allocation4 + $0x28] sm:$0xff] %v3680_v1 }
  0x9b PF: > { %s5690_s2 = sld [smem:[#allocation18_spill]] }
  0x9c   : > { %s5691_s18 = sld [smem:[#allocation19_spill]] }
  0xa1   : > { %s3192_s4 = sshll.u32 %s5690_s2, 7 }
  0xa2   : > { %s3193_s30 = sshll.u32 %s5691_s18, 7 }
  0xa3   : > { %s364_s13 = sadd.s32 127, %s3193_s30 }
  0xa4   : > { %p3194_p6 = scmp.gt.s32.totalorder %s3192_s4, %s364_s13 }
  0xa6   : > { %368 = sbr.rel (%p3194_p6) target bundleno = 1355 (0x54b), region = 52 }
  0xab   : > { %v400_v2 = vld [vmem:[%s3937_s6 + $0x78] sm:$0xff]  ;;  %v399_v3 = vld [vmem:[%s3937_s6 + $0x70] sm:$0xff]  ;;  %v398_v4 = vld [vmem:[%s3937_s6 + $0x68] sm:$0xff]  ;;  %vm1652_vm13 = vcmask 7168  }
  0xac   : > { %v3989_v5 = vand.u32 4294901760, %v400_v2  ;;  %v3991_v6 = vand.u32 4294901760, %v399_v3  ;;  %v3993_v7 = vand.u32 4294901760, %v398_v4  ;;  %v397_v8 = vld [vmem:[%s3937_s6 + $0x60] sm:$0xff]  ;;  %v396_v13 = vld [vmem:[%s3937_s6 + $0x58] sm:$0xff]  ;;  %v395_v21 = vld [vmem:[%s3937_s6 + $0x50] sm:$0xff] }
  0xad   : > { %v4004_v11 = vand.u32 4294901760, %v397_v8  ;;  %v4013_v16 = vand.u32 4294901760, %v396_v13  ;;  %v4029_v23 = vand.u32 4294901760, %v395_v21  ;;  %v394_v28 = vld [vmem:[%s3937_s6 + $0x48] sm:$0xff]  ;;  %v393_v34 = vld [vmem:[%s3937_s6 + $0x40] sm:$0xff]  ;;  %v392_v40 = vld [vmem:[%s3937_s6 + $0x38] sm:$0xff] }
  0xae   : > { %418 = vmatpush.xpose.msra.mxu0 %v3989_v5  ;;  %v3998_v9 = vsub.f32 %v400_v2, %v3989_v5  ;;  %869 = vmatpush.xpose.msra.mxu3 %v3989_v5  ;;  %v4002_v10 = vsub.f32 %v399_v3, %v3991_v6  ;;  %v4007_v12 = vsub.f32 %v398_v4, %v3993_v7  ;;  %v4042_v29 = vand.u32 4294901760, %v394_v28  ;;  %v391_v46 = vld [vmem:[%s3937_s6 + $0x30] sm:$0xff]  ;;  %v390_v52 = vld [vmem:[%s3937_s6 + $0x28] sm:$0xff]  ;;  %v389_v58 = vld [vmem:[%s3937_s6 + $0x20] sm:$0xff] }
  0xaf   : > { %v4025_v20 = vsub.f32 %v397_v8, %v4004_v11  ;;  %v4037_v27 = vsub.f32 %v396_v13, %v4013_v16  ;;  %v4050_v33 = vsub.f32 %v395_v21, %v4029_v23  ;;  %v4062_v38 = vand.u32 4294901760, %v393_v34  ;;  %v388_v0 = vld [vmem:[%s3937_s6 + $0x18] sm:$0xff]  ;;  %v387_v13 = vld [vmem:[%s3937_s6 + $0x10] sm:$0xff] }
  0xb0   : > { %741 = vmatpush.xpose.msra.mxu2 %v3998_v9  ;;  %v580_v14 = vand.u32 4294901760, %v3998_v9  ;;  %v586_v15 = vand.u32 4294901760, %v4002_v10  ;;  %v592_v19 = vand.u32 4294901760, %v4007_v12  ;;  %v4056_v35 = vsub.f32 %v394_v28, %v4042_v29  ;;  %v386_v28 = vld [vmem:[%s3937_s6 + $0x8] sm:$0xff] }
  0xb1   : > { %v598_v26 = vand.u32 4294901760, %v4025_v20  ;;  %v604_v32 = vand.u32 4294901760, %v4037_v27  ;;  %v610_v39 = vand.u32 4294901760, %v4050_v33  ;;  %v4073_v44 = vand.u32 4294901760, %v392_v40 }
  0xb2   : > { %420 = vmatpush.xpose.msra.mxu0 %v3991_v6  ;;  %v581_v17 = vsub.f32 %v3998_v9, %v580_v14  ;;  %871 = vmatpush.xpose.msra.mxu3 %v3991_v6  ;;  %v587_v18 = vsub.f32 %v4002_v10, %v586_v15  ;;  %v593_v25 = vsub.f32 %v4007_v12, %v592_v19  ;;  %v616_v41 = vand.u32 4294901760, %v4056_v35 }
  0xb3   : > { %v599_v31 = vsub.f32 %v4025_v20, %v598_v26  ;;  %v605_v37 = vsub.f32 %v4037_v27, %v604_v32  ;;  %v611_v43 = vsub.f32 %v4050_v33, %v610_v39  ;;  %v4076_v45 = vsub.f32 %v393_v34, %v4062_v38 }
  0xb4   : > { %v582_v22 = vand.u32 4294901760, %v581_v17  ;;  %744 = vmatpush.xpose.msra.mxu2 %v4002_v10  ;;  %v588_v24 = vand.u32 4294901760, %v587_v18  ;;  %v594_v30 = vand.u32 4294901760, %v593_v25  ;;  %v617_v47 = vsub.f32 %v4056_v35, %v616_v41  ;;  %v369_v25 = vld [vmem:[%s3929_s10] sm:$0xff] }
  0xb5   : > { %v600_v36 = vand.u32 4294901760, %v599_v31  ;;  %v606_v42 = vand.u32 4294901760, %v605_v37  ;;  %v612_v48 = vand.u32 4294901760, %v611_v43  ;;  %v4085_v49 = vand.u32 4294901760, %v391_v46  ;;  %v373_v10 = vld [vmem:[%s3929_s10 + $0x20] sm:$0xff] }
  0xb6   : > { %422 = vmatpush.xpose.msra.mxu0 %v3993_v7  ;;  %583 = vmatpush.xpose.msra.mxu1 %v582_v22  ;;  %v622_v50 = vand.u32 4294901760, %v4076_v45  ;;  %v4089_v51 = vsub.f32 %v392_v40, %v4073_v44  ;;  %v618_v53 = vand.u32 4294901760, %v617_v47  ;;  %v4098_v55 = vand.u32 4294901760, %v390_v52 }
  0xb7   : > { %873 = vmatpush.xpose.msra.mxu3 %v3993_v7  ;;  %v4102_v57 = vsub.f32 %v391_v46, %v4085_v49  ;;  %v4107_v59 = vand.u32 4294901760, %v389_v58  ;;  %v4127_v4 = vand.u32 4294901760, %v388_v0  ;;  %v4138_v22 = vand.u32 4294901760, %v387_v13 }
  0xb8   : > { %747 = vmatpush.xpose.msra.mxu2 %v4007_v12  ;;  %v623_v54 = vsub.f32 %v4076_v45, %v622_v50  ;;  %v628_v56 = vand.u32 4294901760, %v4089_v51  ;;  %v4115_v63 = vsub.f32 %v390_v52, %v4098_v55  ;;  %v4150_v31 = vand.u32 4294901760, %v369_v25 }
  0xb9   : > { %v634_v62 = vand.u32 4294901760, %v4102_v57  ;;  %v4121_v1 = vsub.f32 %v389_v58, %v4107_v59  ;;  %v4157_v40 = vsub.f32 %v387_v13, %v4138_v22 }
  0xba   : > { %424 = vmatpush.xpose.msra.mxu0 %v4004_v11  ;;  %589 = vmatpush.xpose.msra.mxu1 %v588_v24  ;;  %v624_v60 = vand.u32 4294901760, %v623_v54  ;;  %v629_v61 = vsub.f32 %v4089_v51, %v628_v56  ;;  %v640_v8 = vand.u32 4294901760, %v4115_v63  ;;  %v4141_v24 = vsub.f32 %v388_v0, %v4127_v4  ;;  %v370_v54 = vld [vmem:[%s3929_s10 + $0x8] sm:$0xff] }
  0xbb   : > { %875 = vmatpush.xpose.msra.mxu3 %v4004_v11  ;;  %v635_v3 = vsub.f32 %v4102_v57, %v634_v62  ;;  %v646_v17 = vand.u32 4294901760, %v4121_v1  ;;  %v450_v46 = vsub.f32 %v369_v25, %v4150_v31  ;;  %v658_v52 = vand.u32 4294901760, %v4157_v40 }
  0xbc   : > { %750 = vmatpush.xpose.msra.mxu2 %v4025_v20  ;;  %v630_v2 = vand.u32 4294901760, %v629_v61  ;;  %v641_v21 = vsub.f32 %v4115_v63, %v640_v8  ;;  %v652_v37 = vand.u32 4294901760, %v4141_v24 }
  0xbd   : > { %v636_v18 = vand.u32 4294901760, %v635_v3  ;;  %v451_v58 = vand.u32 4294901760, %v450_v46  ;;  %v659_v0 = vsub.f32 %v4157_v40, %v658_v52 }
  0xbe   : > { %426 = vmatpush.xpose.msra.mxu0 %v4013_v16  ;;  %595 = vmatpush.xpose.msra.mxu1 %v594_v30  ;;  %v647_v30 = vsub.f32 %v4121_v1, %v646_v17  ;;  %v642_v34 = vand.u32 4294901760, %v641_v21  ;;  %v653_v47 = vsub.f32 %v4141_v24, %v652_v37 }
  0xbf   : > { %877 = vmatpush.xpose.msra.mxu3 %v4013_v16  ;;  %v452_v13 = vsub.f32 %v450_v46, %v451_v58  ;;  %v660_v21 = vand.u32 4294901760, %v659_v0 }
  0xc0   : > { %753 = vmatpush.xpose.msra.mxu2 %v4037_v27  ;;  %v648_v43 = vand.u32 4294901760, %v647_v30  ;;  %v654_v61 = vand.u32 4294901760, %v653_v47  ;;  %v371_v30 = vld [vmem:[%s3929_s10 + $0x10] sm:$0xff] }
  0xc2   : > { %428 = vmatpush.xpose.msra.mxu0 %v4029_v23  ;;  %601 = vmatpush.xpose.msra.mxu1 %v600_v36  ;;  %v4153_v36 = vand.u32 4294901760, %v386_v28 }
  0xc3   : > { %879 = vmatpush.xpose.msra.mxu3 %v4029_v23 }
  0xc4   : > { %756 = vmatpush.xpose.msra.mxu2 %v4050_v33 }
  0xc6   : > { %430 = vmatpush.xpose.msra.mxu0 %v4042_v29  ;;  %607 = vmatpush.xpose.msra.mxu1 %v606_v42  ;;  %v385_v42 = vld [vmem:[%s3937_s6] sm:$0xff] }
  0xc7   : > { %881 = vmatpush.xpose.msra.mxu3 %v4042_v29 }
  0xc8   : > { %759 = vmatpush.xpose.msra.mxu2 %v4056_v35 }
  0xca   : > { %432 = vmatpush.xpose.msra.mxu0 %v4062_v38  ;;  %613 = vmatpush.xpose.msra.mxu1 %v612_v48  ;;  %v4167_v48 = vand.u32 4294901760, %v385_v42 }
  0xcb   : > { %883 = vmatpush.xpose.msra.mxu3 %v4062_v38 }
  0xcc   : > { %762 = vmatpush.xpose.msra.mxu2 %v4076_v45  ;;  %v4184_v3 = vsub.f32 %v385_v42, %v4167_v48 }
  0xce   : > { %434 = vmatpush.xpose.msra.mxu0 %v4073_v44  ;;  %619 = vmatpush.xpose.msra.mxu1 %v618_v53  ;;  %v4171_v53 = vsub.f32 %v386_v28, %v4153_v36  ;;  %v5612_v28 = vand.u32 4294901760, %v4184_v3 }
  0xcf   : > { %885 = vmatpush.xpose.msra.mxu3 %v4073_v44 }
  0xd0   : > { %765 = vmatpush.xpose.msra.mxu2 %v4089_v51 }
  0xd2   : > { %436 = vmatpush.xpose.msra.mxu0 %v4085_v49  ;;  %625 = vmatpush.xpose.msra.mxu1 %v624_v60  ;;  %v4176_v60 = vand.u32 4294901760, %v370_v54 }
  0xd3   : > { %887 = vmatpush.xpose.msra.mxu3 %v4085_v49 }
  0xd4   : > { %768 = vmatpush.xpose.msra.mxu2 %v4102_v57 }
  0xd6   : > { %438 = vmatpush.xpose.msra.mxu0 %v4098_v55  ;;  %631 = vmatpush.xpose.msra.mxu1 %v630_v2  ;;  %v5613_v2 = vand.u32 4294901760, %v4171_v53 }
  0xd7   : > { %889 = vmatpush.xpose.msra.mxu3 %v4098_v55 }
  0xd8   : > { %771 = vmatpush.xpose.msra.mxu2 %v4115_v63  ;;  %v665_v25 = vsub.f32 %v4171_v53, %v5613_v2 }
  0xda   : > { %440 = vmatpush.xpose.msra.mxu0 %v4107_v59  ;;  %637 = vmatpush.xpose.msra.mxu1 %v636_v18  ;;  %v458_v18 = vsub.f32 %v370_v54, %v4176_v60  ;;  %v666_v47 = vand.u32 4294901760, %v665_v25  ;;  %v671_v54 = vsub.f32 %v4184_v3, %v5612_v28 }
  0xdb   : > { %891 = vmatpush.xpose.msra.mxu3 %v4107_v59 }
  0xdc   : > { %774 = vmatpush.xpose.msra.mxu2 %v4121_v1  ;;  %v459_v42 = vand.u32 4294901760, %v458_v18 }
  0xde   : > { %442 = vmatpush.xpose.msra.mxu0 %v4127_v4  ;;  %643 = vmatpush.xpose.msra.mxu1 %v642_v34  ;;  %v453_v34 = vand.u32 4294901760, %v452_v13  ;;  %v672_v13 = vand.u32 4294901760, %v671_v54 }
  0xdf   : > { %893 = vmatpush.xpose.msra.mxu3 %v4127_v4 }
  0xe0   : > { %777 = vmatpush.xpose.msra.mxu2 %v4141_v24  ;;  %v5692_v24 = vand.u32 4294901760, %v4171_v53 }
  0xe2   : > { %444 = vmatpush.xpose.msra.mxu0 %v4138_v22  ;;  %649 = vmatpush.xpose.msra.mxu1 %v648_v43  ;;  %v4197_v43 = vand.u32 4294901760, %v371_v30 }
  0xe3   : > { %895 = vmatpush.xpose.msra.mxu3 %v4138_v22 }
  0xe4   : > { %780 = vmatpush.xpose.msra.mxu2 %v4157_v40  ;;  %v466_v0 = vsub.f32 %v371_v30, %v4197_v43  ;;  %v5693_v40 = vand.u32 4294901760, %v4184_v3  ;;  %v380_v30 = vld [vmem:[%s3929_s10 + $0x58] sm:$0xff] }
  0xe6   : > { %446 = vmatpush.xpose.msra.mxu0 %v4153_v36  ;;  %655 = vmatpush.xpose.msra.mxu1 %v654_v61  ;;  %v460_v61 = vsub.f32 %v458_v18, %v459_v42  ;;  %v467_v28 = vand.u32 4294901760, %v466_v0 }
  0xe7   : > { %897 = vmatpush.xpose.msra.mxu3 %v4153_v36 }
  0xe8   : > { %783 = vmatpush.xpose.msra.mxu2 %v4171_v53  ;;  %v461_v25 = vand.u32 4294901760, %v460_v61  ;;  %v468_v9 = vsub.f32 %v466_v0, %v467_v28 }
  0xea   : > { %448 = vmatpush.xpose.msra.mxu0 %v4167_v48  ;;  %661 = vmatpush.xpose.msra.mxu1 %v660_v21  ;;  %v372_v21 = vld [vmem:[%s3929_s10 + $0x18] sm:$0xff] }
  0xeb   : > { %899 = vmatpush.xpose.msra.mxu3 %v4167_v48  ;;  %v4211_v2 = vand.u32 4294901760, %v372_v21 }
  0xec   : > { %786 = vmatpush.xpose.msra.mxu2 %v4184_v3 }
  0xed   : > { %454 = vmatmul.f32.vlgmr.msra.gmra.mxu0 %v453_v34  ;;  %v4295_v34 = vand.u32 4294901760, %v380_v30 }
  0xee   : > { %1000 = vmatpush.xpose.msrb.mxu0 %v580_v14  ;;  %667 = vmatpush.xpose.msra.mxu1 %v666_v47  ;;  %v474_v14 = vsub.f32 %v372_v21, %v4211_v2  ;;  %v381_v47 = vld [vmem:[%s3929_s10 + $0x60] sm:$0xff]  ;;  %v382_v21 = vld [vmem:[%s3929_s10 + $0x68] sm:$0xff] }
  0xef   : > { %903 = vmatmul.f32.vlgmr.msra.gmra.mxu3 %v451_v58  ;;  %789 = vmatmul.f32.vlgmr.msra.gmra.mxu2 %v450_v46  ;;  %v4222_v46 = vand.u32 4294901760, %v373_v10 }
  0xf2   : > { %1004 = vmatpush.xpose.msrb.mxu0 %v586_v15  ;;  %673 = vmatpush.xpose.msra.mxu1 %v672_v13  ;;  %v469_v15 = vand.u32 4294901760, %v468_v9 }
  0xf5   : > { %462 = vmatmul.f32.gmra.mxu0 %v461_v25  ;;  %675 = vmatmul.f32.vlgmr.msra.gmra.mxu1 %v4150_v31 }
  0xf6   : > { %1127 = vmatpush.xpose.msrb.mxu1 %v3989_v5  ;;  %1008 = vmatpush.xpose.msrb.mxu0 %v592_v19  ;;  %v475_v5 = vand.u32 4294901760, %v474_v14  ;;  %v482_v19 = vsub.f32 %v373_v10, %v4222_v46 }
  0xf7   : > { %909 = vmatmul.f32.gmra.mxu3 %v459_v42  ;;  %794 = vmatmul.f32.gmra.mxu2 %v458_v18  ;;  %v538_v42 = vsub.f32 %v380_v30, %v4295_v34  ;;  %v3681_v30 = vmov 33.941124  }
  0xf8   : > { %v476_v12 = vsub.f32 %v474_v14, %v475_v5  ;;  %3342 = vrcp.f32 %v3681_v30 }
  0xf9   : > { %v539_v61 = vand.u32 4294901760, %v538_v42 }
  0xfa   : > { %1129 = vmatpush.xpose.msrb.mxu1 %v3991_v6  ;;  %1012 = vmatpush.xpose.msrb.mxu0 %v598_v26  ;;  %v374_v6 = vld [vmem:[%s3929_s10 + $0x28] sm:$0xff]  ;;  %v477_v20 = vand.u32 4294901760, %v476_v12 }
  0xfb   : > { %v4233_v26 = vand.u32 4294901760, %v374_v6 }
  0xfd   : > { %470 = vmatmul.f32.gmra.mxu0 %v469_v15  ;;  %679 = vmatmul.f32.gmra.mxu1 %v4176_v60 }
  0xfe   : > { %1131 = vmatpush.xpose.msrb.mxu1 %v3993_v7  ;;  %1016 = vmatpush.xpose.msrb.mxu0 %v604_v32  ;;  %v483_v7 = vand.u32 4294901760, %v482_v19  ;;  %v490_v32 = vsub.f32 %v374_v6, %v4233_v26 }
  0xff   : > { %915 = vmatmul.f32.gmra.mxu3 %v467_v28  ;;  %799 = vmatmul.f32.gmra.mxu2 %v466_v0  ;;  %v4300_v0 = vand.u32 4294901760, %v381_v47 }
 0x100   : > { %v484_v27 = vsub.f32 %v482_v19, %v483_v7 }
 0x101   : > { %v546_v13 = vsub.f32 %v381_v47, %v4300_v0 }
 0x102   : > { %1133 = vmatpush.xpose.msrb.mxu1 %v4004_v11  ;;  %1020 = vmatpush.xpose.msrb.mxu0 %v610_v39  ;;  %v375_v11 = vld [vmem:[%s3929_s10 + $0x30] sm:$0xff]  ;;  %v485_v33 = vand.u32 4294901760, %v484_v27  ;;  %v384_v27 = vld [vmem:[%s3929_s10 + $0x78] sm:$0xff] }
 0x103   : > { %v4244_v39 = vand.u32 4294901760, %v375_v11  ;;  %v547_v9 = vand.u32 4294901760, %v546_v13 }
 0x105   : > { %478 = vmatmul.f32.gmra.mxu0 %v477_v20  ;;  %683 = vmatmul.f32.gmra.mxu1 %v4197_v43  ;;  %v548_v10 = vsub.f32 %v546_v13, %v547_v9 }
 0x106   : > { %1135 = vmatpush.xpose.msrb.mxu1 %v4013_v16  ;;  %1024 = vmatpush.xpose.msrb.mxu0 %v616_v41  ;;  %v491_v16 = vand.u32 4294901760, %v490_v32  ;;  %v498_v41 = vsub.f32 %v375_v11, %v4244_v39 }
 0x107   : > { %921 = vmatmul.f32.gmra.mxu3 %v475_v5  ;;  %804 = vmatmul.f32.gmra.mxu2 %v474_v14  ;;  %v4305_v14 = vand.u32 4294901760, %v382_v21  ;;  %v383_v5 = vld [vmem:[%s3929_s10 + $0x70] sm:$0xff]  ;;  %v549_v12 = vand.u32 4294901760, %v548_v10  ;;  %v1262_v10 = vlaneseq }
 0x108   : > { %v492_v35 = vsub.f32 %v490_v32, %v491_v16  ;;  %v4310_v6 = vand.u32 4294901760, %v383_v5 }
 0x109   : > { %v554_v15 = vsub.f32 %v382_v21, %v4305_v14 }
 0x10a   : > { %1137 = vmatpush.xpose.msrb.mxu1 %v4029_v23  ;;  %1028 = vmatpush.xpose.msrb.mxu0 %v622_v50  ;;  %v376_v23 = vld [vmem:[%s3929_s10 + $0x38] sm:$0xff]  ;;  %v493_v45 = vand.u32 4294901760, %v492_v35 }
 0x10b   : > { %v4255_v50 = vand.u32 4294901760, %v376_v23 }
 0x10d   : > { %486 = vmatmul.f32.gmra.mxu0 %v485_v33  ;;  %687 = vmatmul.f32.gmra.mxu1 %v4211_v2  ;;  %v4315_v33 = vand.u32 4294901760, %v384_v27 }
 0x10e   : > { %1139 = vmatpush.xpose.msrb.mxu1 %v4042_v29  ;;  %1032 = vmatpush.xpose.msrb.mxu0 %v628_v56  ;;  %v499_v29 = vand.u32 4294901760, %v498_v41  ;;  %v506_v56 = vsub.f32 %v376_v23, %v4255_v50 }
 0x10f   : > { %927 = vmatmul.f32.gmra.mxu3 %v483_v7  ;;  %809 = vmatmul.f32.gmra.mxu2 %v482_v19  ;;  %v555_v19 = vand.u32 4294901760, %v554_v15  ;;  %v562_v7 = vsub.f32 %v383_v5, %v4310_v6  ;;  %v570_v35 = vsub.f32 %v384_v27, %v4315_v33  ;;  %v1298_v27 = vstv %s3192_s4 }
 0x110   : > { %v500_v51 = vsub.f32 %v498_v41, %v499_v29 }
 0x111   : > { %v556_v20 = vsub.f32 %v554_v15, %v555_v19  ;;  %v563_v11 = vand.u32 4294901760, %v562_v7  ;;  %v571_v23 = vand.u32 4294901760, %v570_v35 }
 0x112   : > { %1141 = vmatpush.xpose.msrb.mxu1 %v4062_v38  ;;  %1036 = vmatpush.xpose.msrb.mxu0 %v634_v62  ;;  %v377_v38 = vld [vmem:[%s3929_s10 + $0x40] sm:$0xff]  ;;  %v501_v57 = vand.u32 4294901760, %v500_v51 }
 0x113   : > { %v4266_v62 = vand.u32 4294901760, %v377_v38 }
 0x115   : > { %494 = vmatmul.f32.gmra.mxu0 %v493_v45  ;;  %691 = vmatmul.f32.gmra.mxu1 %v4222_v46  ;;  %v572_v45 = vsub.f32 %v570_v35, %v571_v23 }
 0x116   : > { %1143 = vmatpush.xpose.msrb.mxu1 %v4073_v44  ;;  %1040 = vmatpush.xpose.msrb.mxu0 %v640_v8  ;;  %v507_v44 = vand.u32 4294901760, %v506_v56  ;;  %v514_v8 = vsub.f32 %v377_v38, %v4266_v62 }
 0x117   : > { %933 = vmatmul.f32.gmra.mxu3 %v491_v16  ;;  %814 = vmatmul.f32.gmra.mxu2 %v490_v32  ;;  %v557_v32 = vand.u32 4294901760, %v556_v20  ;;  %v564_v16 = vsub.f32 %v562_v7, %v563_v11 }
 0x118   : > { %v508_v63 = vsub.f32 %v506_v56, %v507_v44 }
 0x11a   : > { %1145 = vmatpush.xpose.msrb.mxu1 %v4085_v49  ;;  %1044 = vmatpush.xpose.msrb.mxu0 %v646_v17  ;;  %v378_v49 = vld [vmem:[%s3929_s10 + $0x48] sm:$0xff]  ;;  %v509_v1 = vand.u32 4294901760, %v508_v63 }
 0x11b   : > { %v4277_v17 = vand.u32 4294901760, %v378_v49 }
 0x11d   : > { %502 = vmatmul.f32.gmra.mxu0 %v501_v57  ;;  %695 = vmatmul.f32.gmra.mxu1 %v4233_v26  ;;  %v522_v58 = vsub.f32 %v378_v49, %v4277_v17 }
 0x11e   : > { %1147 = vmatpush.xpose.msrb.mxu1 %v4098_v55  ;;  %1048 = vmatpush.xpose.msrb.mxu0 %v652_v37  ;;  %v515_v55 = vand.u32 4294901760, %v514_v8 }
 0x11f   : > { %939 = vmatmul.f32.gmra.mxu3 %v499_v29  ;;  %819 = vmatmul.f32.gmra.mxu2 %v498_v41  ;;  %v565_v41 = vand.u32 4294901760, %v564_v16  ;;  %v573_v29 = vand.u32 4294901760, %v572_v45 }
 0x120   : > { %v516_v37 = vsub.f32 %v514_v8, %v515_v55 }
 0x122   : > { %1149 = vmatpush.xpose.msrb.mxu1 %v4107_v59  ;;  %1052 = vmatpush.xpose.msrb.mxu0 %v658_v52  ;;  %v379_v59 = vld [vmem:[%s3929_s10 + $0x50] sm:$0xff]  ;;  %v517_v52 = vand.u32 4294901760, %v516_v37 }
 0x123   : > { %v4288_v18 = vand.u32 4294901760, %v379_v59 }
 0x125   : > { %510 = vmatmul.f32.gmra.mxu0 %v509_v1  ;;  %699 = vmatmul.f32.gmra.mxu1 %v4244_v39  ;;  %v530_v28 = vsub.f32 %v379_v59, %v4288_v18 }
 0x126   : > { %1151 = vmatpush.xpose.msrb.mxu1 %v4127_v4  ;;  %1056 = vmatpush.xpose.msrb.mxu0 %v5692_v24  ;;  %v523_v4 = vand.u32 4294901760, %v522_v58 }
 0x127   : > { %945 = vmatmul.f32.gmra.mxu3 %v507_v44  ;;  %824 = vmatmul.f32.gmra.mxu2 %v506_v56  ;;  %v531_v3 = vand.u32 4294901760, %v530_v28 }
 0x128   : > { %v524_v53 = vsub.f32 %v522_v58, %v523_v4 }
 0x12a   : > { %1153 = vmatpush.xpose.msrb.mxu1 %v4138_v22  ;;  %1060 = vmatpush.xpose.msrb.mxu0 %v5693_v40  ;;  %v525_v22 = vand.u32 4294901760, %v524_v53 }
 0x12d   : > { %518 = vmatmul.f32.gmra.mxu0 %v517_v52  ;;  %703 = vmatmul.f32.gmra.mxu1 %v4255_v50 }
 0x12e   : > { %1155 = vmatpush.xpose.msrb.mxu1 %v4153_v36  ;;  %v532_v36 = vsub.f32 %v530_v28, %v531_v3 }
 0x12f   : > { %951 = vmatmul.f32.gmra.mxu3 %v515_v55  ;;  %829 = vmatmul.f32.gmra.mxu2 %v514_v8 }
 0x130   : > { %v533_v54 = vand.u32 4294901760, %v532_v36 }
 0x132   : > { %1157 = vmatpush.xpose.msrb.mxu1 %v4167_v48  ;;  %v540_v48 = vsub.f32 %v538_v42, %v539_v61 }
 0x134   : > { %v541_v25 = vand.u32 4294901760, %v540_v48 }
 0x135   : > { %526 = vmatmul.f32.gmra.mxu0 %v525_v22  ;;  %707 = vmatmul.f32.gmra.mxu1 %v4266_v62 }
 0x137   : > { %957 = vmatmul.f32.gmra.mxu3 %v523_v4  ;;  %834 = vmatmul.f32.gmra.mxu2 %v522_v58 }
 0x13d   : > { %534 = vmatmul.f32.gmra.mxu0 %v533_v54  ;;  %711 = vmatmul.f32.gmra.mxu1 %v4277_v17 }
 0x13f   : > { %963 = vmatmul.f32.gmra.mxu3 %v531_v3  ;;  %839 = vmatmul.f32.gmra.mxu2 %v530_v28 }
 0x145   : > { %542 = vmatmul.f32.gmra.mxu0 %v541_v25  ;;  %715 = vmatmul.f32.gmra.mxu1 %v4288_v18 }
 0x147   : > { %969 = vmatmul.f32.gmra.mxu3 %v539_v61  ;;  %844 = vmatmul.f32.gmra.mxu2 %v538_v42 }
 0x14d   : > { %550 = vmatmul.f32.gmra.mxu0 %v549_v12  ;;  %719 = vmatmul.f32.gmra.mxu1 %v4295_v34  ;;  %v4420_v12 = vshrl.u32 %v1262_v10, 7 }
 0x14f   : > { %975 = vmatmul.f32.gmra.mxu3 %v547_v9  ;;  %849 = vmatmul.f32.gmra.mxu2 %v546_v13 }
 0x155   : > { %558 = vmatmul.f32.gmra.mxu0 %v557_v32  ;;  %723 = vmatmul.f32.gmra.mxu1 %v4300_v0 }
 0x157   : > { %981 = vmatmul.f32.gmra.mxu3 %v555_v19  ;;  %854 = vmatmul.f32.gmra.mxu2 %v554_v15  ;;  %v1297_v19 = vand.u32 127, %v1262_v10 }
 0x15d   : > { %566 = vmatmul.f32.gmra.mxu0 %v565_v41  ;;  %727 = vmatmul.f32.gmra.mxu1 %v4305_v14  ;;  %v4434_v41 = vadd.s32 %v1298_v27, %v1297_v19 }
 0x15f   : > { %987 = vmatmul.f32.gmra.mxu3 %v563_v11  ;;  %859 = vmatmul.f32.gmra.mxu2 %v562_v7  ;;  %v4426_v7 = vstv %s3193_s30 }
 0x165   : > { %574 = vmatmul.f32.gmra.mxu0 %v573_v29  ;;  %731 = vmatmul.f32.gmra.mxu1 %v4310_v6 }
 0x167   : > { %993 = vmatmul.f32.gmra.mxu3 %v571_v23  ;;  %864 = vmatmul.f32.gmra.mxu2 %v570_v35 }
 0x16a   : > { %v4321_v51 = vpop.f32.mrf.mxu0 }
 0x16d   : > { %735 = vmatmul.f32.gmra.mxu1 %v4315_v33  ;;  %1062 = vmatmul.f32.vlgmr.msrb.gmra.mxu0 %v4150_v31 }
 0x172   : > { %v4325_v56 = vpop.f32.mrf.mxu0  ;;  %v4327_v38 = vpop.f32.mrf.mxu1 }
 0x173   : > { %v904_v28 = vpop.f32.mrf.mxu3 }
 0x175   : > { %1066 = vmatmul.f32.gmra.mxu0 %v4176_v60  ;;  %1159 = vmatmul.f32.vlgmr.msrb.gmra.mxu1 %v4150_v31 }
 0x17a   : > { %v4331_v57 = vpop.f32.mrf.mxu0  ;;  %v4333_v44 = vpop.f32.mrf.mxu1 }
 0x17b   : > { %v910_v36 = vpop.f32.mrf.mxu3 }
 0x17d   : > { %1070 = vmatmul.f32.gmra.mxu0 %v4197_v43  ;;  %1163 = vmatmul.f32.gmra.mxu1 %v4176_v60 }
 0x182   : > { %v4337_v63 = vpop.f32.mrf.mxu0  ;;  %v4339_v8 = vpop.f32.mrf.mxu1 }
 0x183   : > { %v916_v13 = vpop.f32.mrf.mxu3 }
 0x185   : > { %1074 = vmatmul.f32.gmra.mxu0 %v4211_v2  ;;  %1167 = vmatmul.f32.gmra.mxu1 %v4197_v43 }
 0x18a   : > { %v4343_v49 = vpop.f32.mrf.mxu0  ;;  %v4345_v1 = vpop.f32.mrf.mxu1 }
 0x18b   : > { %v922_v45 = vpop.f32.mrf.mxu3 }
 0x18d   : > { %1078 = vmatmul.f32.gmra.mxu0 %v4222_v46  ;;  %1171 = vmatmul.f32.gmra.mxu1 %v4211_v2 }
 0x192   : > { %v4349_v31 = vpop.f32.mrf.mxu0  ;;  %v4351_v55 = vpop.f32.mrf.mxu1 }
 0x195   : > { %1082 = vmatmul.f32.gmra.mxu0 %v4233_v26  ;;  %1175 = vmatmul.f32.gmra.mxu1 %v4222_v46 }
 0x19a   : > { %v4355_v60 = vpop.f32.mrf.mxu0  ;;  %v4357_v24 = vpop.f32.mrf.mxu1 }
 0x19d   : > { %1086 = vmatmul.f32.gmra.mxu0 %v4244_v39  ;;  %1179 = vmatmul.f32.gmra.mxu1 %v4233_v26 }
 0x1a2   : > { %v4361_v43 = vpop.f32.mrf.mxu0  ;;  %v4363_v37 = vpop.f32.mrf.mxu1 }
 0x1a5   : > { %1090 = vmatmul.f32.gmra.mxu0 %v4255_v50  ;;  %1183 = vmatmul.f32.gmra.mxu1 %v4244_v39 }
 0x1aa   : > { %v4367_v2 = vpop.f32.mrf.mxu0  ;;  %v4369_v58 = vpop.f32.mrf.mxu1 }
 0x1ad   : > { %1094 = vmatmul.f32.gmra.mxu0 %v4266_v62  ;;  %1187 = vmatmul.f32.gmra.mxu1 %v4255_v50 }
 0x1b2   : > { %v4373_v46 = vpop.f32.mrf.mxu0  ;;  %v4375_v59 = vpop.f32.mrf.mxu1 }
 0x1b5   : > { %1098 = vmatmul.f32.gmra.mxu0 %v4277_v17  ;;  %1191 = vmatmul.f32.gmra.mxu1 %v4266_v62  ;;  %v790_v62 = vpop.f32.mrf.mxu2 }
 0x1ba   : > { %v4379_v26 = vpop.f32.mrf.mxu0  ;;  %v4381_v40 = vpop.f32.mrf.mxu1 }
 0x1bd   : > { %1102 = vmatmul.f32.gmra.mxu0 %v4288_v18  ;;  %1195 = vmatmul.f32.gmra.mxu1 %v4277_v17  ;;  %v795_v3 = vpop.f32.mrf.mxu2 }
 0x1c2   : > { %v4385_v39 = vpop.f32.mrf.mxu0  ;;  %v4387_v52 = vpop.f32.mrf.mxu1 }
 0x1c5   : > { %1106 = vmatmul.f32.gmra.mxu0 %v4295_v34  ;;  %1199 = vmatmul.f32.gmra.mxu1 %v4288_v18  ;;  %v800_v61 = vpop.f32.mrf.mxu2 }
 0x1ca   : > { %v4391_v50 = vpop.f32.mrf.mxu0  ;;  %v4393_v4 = vpop.f32.mrf.mxu1 }
 0x1cd   : > { %1110 = vmatmul.f32.gmra.mxu0 %v4300_v0  ;;  %1203 = vmatmul.f32.gmra.mxu1 %v4295_v34  ;;  %v3343_v34 = vpop.eup %3342  ;;  %v805_v20 = vpop.f32.mrf.mxu2 }
 0x1ce   : > { %v1224_v54 = vmul.f32 33.941124, %v3343_v34  ;;  %vm1228_vm1 = vweird.f32 %v3343_v34 }
 0x1d0   : > { %v1225_v48 = vsub.f32 1.0, %v1224_v54 }
 0x1d2   : > { %v4397_v53 = vpop.f32.mrf.mxu0  ;;  %v4399_v17 = vpop.f32.mrf.mxu1 }
 0x1d5   : > { %1114 = vmatmul.f32.gmra.mxu0 %v4305_v14  ;;  %1207 = vmatmul.f32.gmra.mxu1 %v4300_v0  ;;  %v677_v0 = vadd.f32 %v4327_v38, %v4321_v51 }
 0x1d7   : > { %v791_v21 = vadd.f32 %v790_v62, %v677_v0 }
 0x1d9   : > { %v905_v15 = vadd.f32 %v904_v28, %v791_v21  ;;  %v810_v28 = vpop.f32.mrf.mxu2 }
 0x1da   : > { %v4403_v18 = vpop.f32.mrf.mxu0  ;;  %v4405_v22 = vpop.f32.mrf.mxu1 }
 0x1dd   : > { %1118 = vmatmul.f32.gmra.mxu0 %v4310_v6  ;;  %1211 = vmatmul.f32.gmra.mxu1 %v4305_v14  ;;  %v1226_v14 = vmul.f32 %v3343_v34, %v1225_v48 }
 0x1df   : > { %v1227_v5 = vadd.f32 %v3343_v34, %v1226_v14 }
 0x1e1   : > { %v4430_v35 = vsel %vm1228_vm1, %v3343_v34, %v1227_v5 }
 0x1e2   : > { %v4409_v42 = vpop.f32.mrf.mxu0  ;;  %v4411_v47 = vpop.f32.mrf.mxu1 }
 0x1e5   : > { %1122 = vmatmul.f32.gmra.mxu0 %v4315_v33  ;;  %1215 = vmatmul.f32.gmra.mxu1 %v4310_v6  ;;  %v681_v6 = vadd.f32 %v4333_v44, %v4325_v56  ;;  %v1264_v56 = vadd.s32 8, %v4420_v12  ;;  %v685_v44 = vadd.f32 %v4339_v8, %v4331_v57  ;;  %v1265_v57 = vadd.s32 16, %v4420_v12 }
 0x1e7   : > { %v796_v23 = vadd.f32 %v795_v3, %v681_v6  ;;  %v1281_v3 = vadd.s32 %v4426_v7, %v1264_v56  ;;  %v801_v48 = vadd.f32 %v800_v61, %v685_v44  ;;  %v1282_v61 = vadd.s32 %v4426_v7, %v1265_v57 }
 0x1e9   : > { %v911_v38 = vadd.f32 %v910_v36, %v796_v23  ;;  %vm1301_vm3 = vcmp.gt.s32.totalorder %v4434_v41, %v1281_v3  ;;  %v917_v8 = vadd.f32 %v916_v13, %v801_v48  ;;  %v689_v36 = vadd.f32 %v4345_v1, %v4337_v63 }
 0x1ea   : > { %v4417_v25 = vpop.f32.mrf.mxu1  ;;  %v1063_v9 = vpop.f32.mrf.mxu0  ;;  %vm1302_vm4 = vcmp.gt.s32.totalorder %v4434_v41, %v1282_v61  ;;  %v1266_v13 = vadd.s32 24, %v4420_v12  ;;  %v693_v1 = vadd.f32 %v4351_v55, %v4343_v49  ;;  %v1267_v49 = vadd.s32 32, %v4420_v12 }
 0x1eb   : > { %v1064_v32 = vadd.f32 %v1063_v9, %v905_v15  ;;  %v928_v9 = vpop.f32.mrf.mxu3  ;;  %v806_v27 = vadd.f32 %v805_v20, %v689_v36 }
 0x1ec   : > { %v1283_v20 = vadd.s32 %v4426_v7, %v1266_v13  ;;  %v811_v44 = vadd.f32 %v810_v28, %v693_v1  ;;  %v1284_v28 = vadd.s32 %v4426_v7, %v1267_v49 }
 0x1ed   : > { %1219 = vmatmul.f32.gmra.mxu1 %v4315_v33  ;;  %v1280_v33 = vadd.s32 %v4426_v7, %v4420_v12  ;;  %v923_v63 = vadd.f32 %v922_v45, %v806_v27  ;;  %v697_v45 = vadd.f32 %v4357_v24, %v4349_v31  ;;  %v701_v24 = vadd.f32 %v4363_v37, %v4355_v60 }
 0x1ee   : > { %vm1303_vm5 = vcmp.gt.s32.totalorder %v4434_v41, %v1283_v20  ;;  %v929_v55 = vadd.f32 %v928_v9, %v811_v44  ;;  %vm1304_vm6 = vcmp.gt.s32.totalorder %v4434_v41, %v1284_v28  ;;  %v1268_v9 = vadd.s32 40, %v4420_v12 }
 0x1ef   : > { %vm1300_vm2 = vcmp.gt.s32.totalorder %v4434_v41, %v1280_v33  ;;  %v1269_v60 = vadd.s32 48, %v4420_v12 }
 0x1f2   : > { %v1067_v11 = vpop.f32.mrf.mxu0  ;;  %v1160_v16 = vpop.f32.mrf.mxu1 }
 0x1f3   : > { %v1161_v29 = vadd.f32 %v1160_v16, %v1064_v32  ;;  %v1068_v30 = vadd.f32 %v1067_v11, %v911_v38  ;;  %v815_v32 = vpop.f32.mrf.mxu2  ;;  %v934_v33 = vpop.f32.mrf.mxu3 }
 0x1f5   : > { %v1230_v51 = vmul.f32 %v4430_v35, %v1161_v29 }
 0x1f7   : > { %v1246_v62 = vmul.f32 3.0, %v1230_v51 }
 0x1f9   : > { %v4441_v34 = vsel %vm1300_vm2, -inf, %v1246_v62 }
 0x1fa   : > { %v1071_v54 = vpop.f32.mrf.mxu0  ;;  %v1164_v0 = vpop.f32.mrf.mxu1  ;;  %1348 = vmax.xlane.f32.xlu0 %v4441_v34 }
 0x1fb   : > { %v1165_v21 = vadd.f32 %v1164_v0, %v1068_v30  ;;  %v1072_v15 = vadd.f32 %v1071_v54, %v917_v8  ;;  %v820_v30 = vpop.f32.mrf.mxu2  ;;  %v940_v3 = vpop.f32.mrf.mxu3  ;;  %v816_v8 = vadd.f32 %v815_v32, %v697_v45  ;;  %v1285_v32 = vadd.s32 %v4426_v7, %v1268_v9 }
 0x1fc   : > { %v709_v45 = vadd.f32 %v4375_v59, %v4367_v2  ;;  %v713_v2 = vadd.f32 %v4381_v40, %v4373_v46 }
 0x1fd   : > { %v1231_v14 = vmul.f32 %v4430_v35, %v1165_v21  ;;  %v935_v31 = vadd.f32 %v934_v33, %v816_v8  ;;  %vm1305_vm7 = vcmp.gt.s32.totalorder %v4434_v41, %v1285_v32  ;;  %v705_v33 = vadd.f32 %v4369_v58, %v4361_v43 }
 0x1fe   : > { %v1270_v43 = vadd.s32 56, %v4420_v12 }
 0x1ff   : > { %v1247_v10 = vmul.f32 3.0, %v1231_v14 }
 0x200   : > { %v1287_v28 = vadd.s32 %v4426_v7, %v1270_v43 }
 0x201   : > { %v4450_v5 = vsel %vm1301_vm3, -inf, %v1247_v10 }
 0x202   : > { %v1075_v19 = vpop.f32.mrf.mxu0  ;;  %v1168_v6 = vpop.f32.mrf.mxu1  ;;  %1350 = vmax.xlane.f32.xlu0 %v4450_v5  ;;  %vm1307_vm9 = vcmp.gt.s32.totalorder %v4434_v41, %v1287_v28 }
 0x203   : > { %v1169_v11 = vadd.f32 %v1168_v6, %v1072_v15  ;;  %v1076_v29 = vadd.f32 %v1075_v19, %v923_v63  ;;  %v825_v15 = vpop.f32.mrf.mxu2  ;;  %v946_v63 = vpop.f32.mrf.mxu3 }
 0x205   : > { %v1232_v16 = vmul.f32 %v4430_v35, %v1169_v11 }
 0x207   : > { %v1248_v23 = vmul.f32 3.0, %v1232_v16  ;;  %v821_v16 = vadd.f32 %v820_v30, %v701_v24  ;;  %v826_v30 = vadd.f32 %v825_v15, %v705_v33 }
 0x209   : > { %v4459_v51 = vsel %vm1302_vm4, -inf, %v1248_v23  ;;  %v941_v37 = vadd.f32 %v940_v3, %v821_v16  ;;  %v947_v58 = vadd.f32 %v946_v63, %v826_v30 }
 0x20a   : > { %v1079_v56 = vpop.f32.mrf.mxu0  ;;  %v1172_v38 = vpop.f32.mrf.mxu1  ;;  %1352 = vmax.xlane.f32.xlu1 %v4459_v51 }
 0x20b   : > { %v1173_v62 = vadd.f32 %v1172_v38, %v1076_v29  ;;  %v1080_v48 = vadd.f32 %v1079_v56, %v929_v55  ;;  %v830_v29 = vpop.f32.mrf.mxu2  ;;  %v952_v55 = vpop.f32.mrf.mxu3 }
 0x20c   : > { %v831_v8 = vadd.f32 %v830_v29, %v709_v45 }
 0x20d   : > { %v1233_v54 = vmul.f32 %v4430_v35, %v1173_v62  ;;  %v1286_v62 = vadd.s32 %v4426_v7, %v1269_v60 }
 0x20f   : > { %v1249_v0 = vmul.f32 3.0, %v1233_v54  ;;  %vm1306_vm8 = vcmp.gt.s32.totalorder %v4434_v41, %v1286_v62  ;;  %v721_v62 = vadd.f32 %v4393_v4, %v4385_v39  ;;  %v1274_v39 = vadd.s32 88, %v4420_v12 }
 0x211   : > { %v4468_v21 = vsel %vm1303_vm5, -inf, %v1249_v0 }
 0x212   : > { %v1083_v14 = vpop.f32.mrf.mxu0  ;;  %v1176_v57 = vpop.f32.mrf.mxu1  ;;  %1354 = vmax.xlane.f32.xlu1 %v4468_v21 }
 0x213   : > { %v1177_v36 = vadd.f32 %v1176_v57, %v1080_v48  ;;  %v1084_v6 = vadd.f32 %v1083_v14, %v935_v31  ;;  %v953_v31 = vadd.f32 %v952_v55, %v831_v8  ;;  %v958_v24 = vpop.f32.mrf.mxu3 }
 0x215   : > { %v1234_v10 = vmul.f32 %v4430_v35, %v1177_v36 }
 0x217   : > { %v1250_v19 = vmul.f32 3.0, %v1234_v10  ;;  %v835_v10 = vpop.f32.mrf.mxu2 }
 0x219   : > { %v4477_v61 = vsel %vm1304_vm6, -inf, %v1250_v19 }
 0x21a   : > { %v1087_v27 = vpop.f32.mrf.mxu0  ;;  %v1180_v11 = vpop.f32.mrf.mxu1  ;;  %1356 = vmax.xlane.f32.xlu2 %v4477_v61 }
 0x21b   : > { %v1181_v13 = vadd.f32 %v1180_v11, %v1084_v6  ;;  %v1088_v56 = vadd.f32 %v1087_v27, %v941_v37  ;;  %v836_v11 = vadd.f32 %v835_v10, %v713_v2  ;;  %v964_v40 = vpop.f32.mrf.mxu3  ;;  %v3682_v2 = vmov 0  }
 0x21c   : > { %3340 = vset.pattern.permute.xlu0 %v3682_v2  ;;  %3339 = vset.pattern.permute.xlu2 %v3682_v2 }
 0x21d   : > { %v1235_v1 = vmul.f32 %v4430_v35, %v1181_v13  ;;  %v1272_v13 = vadd.s32 72, %v4420_v12  ;;  %v959_v63 = vadd.f32 %v958_v24, %v836_v11  ;;  %3341 = vset.pattern.permute.xlu1 %v3682_v2  ;;  %v4533_v24 = vld [vmem:[#allocation2] sm:$0xff]  ;;  %v4543_v11 = vld [vmem:[#allocation2 + $0x8] sm:$0xff] }
 0x21e   : > { %5699 = vst [vmem:[#allocation33_spill] sm:$0xff] %v4533_v24 }
 0x21f   : > { %v1251_v23 = vmul.f32 3.0, %v1235_v1  ;;  %v840_v16 = vpop.f32.mrf.mxu2  ;;  %v717_v1 = vadd.f32 %v4387_v52, %v4379_v26  ;;  %v1289_v37 = vadd.s32 %v4426_v7, %v1272_v13  ;;  %5701 = vst [vmem:[#allocation35_spill] sm:$0xff] %v4543_v11 }
 0x221   : > { %v4486_v38 = vsel %vm1305_vm7, -inf, %v1251_v23  ;;  %v841_v33 = vadd.f32 %v840_v16, %v717_v1  ;;  %vm1309_vm10 = vcmp.gt.s32.totalorder %v4434_v41, %v1289_v37  ;;  %v4553_v1 = vld [vmem:[#allocation2 + $0x10] sm:$0xff]  ;;  %v4563_v37 = vld [vmem:[#allocation2 + $0x18] sm:$0xff] }
 0x222   : > { %v1091_v20 = vpop.f32.mrf.mxu0  ;;  %v1184_v44 = vpop.f32.mrf.mxu1  ;;  %1358 = vmax.xlane.f32.xlu2 %v4486_v38  ;;  %5703 = vst [vmem:[#allocation37_spill] sm:$0xff] %v4563_v37 }
 0x223   : > { %v1185_v54 = vadd.f32 %v1184_v44, %v1088_v56  ;;  %v1092_v3 = vadd.f32 %v1091_v20, %v947_v58  ;;  %v1273_v20 = vadd.s32 80, %v4420_v12  ;;  %v965_v44 = vadd.f32 %v964_v40, %v841_v33  ;;  %v970_v45 = vpop.f32.mrf.mxu3 }
 0x225   : > { %v1236_v49 = vmul.f32 %v4430_v35, %v1185_v54  ;;  %v1290_v55 = vadd.s32 %v4426_v7, %v1273_v20 }
 0x227   : > { %v1252_v0 = vmul.f32 3.0, %v1236_v49  ;;  %v845_v26 = vpop.f32.mrf.mxu2  ;;  %vm1310_vm11 = vcmp.gt.s32.totalorder %v4434_v41, %v1290_v55 }
 0x228   : > { %v846_v43 = vadd.f32 %v845_v26, %v721_v62 }
 0x229   : > { %v4495_v48 = vsel %vm1306_vm8, -inf, %v1252_v0 }
 0x22a   : > { %v1095_v14 = vpop.f32.mrf.mxu0  ;;  %v1188_v57 = vpop.f32.mrf.mxu1  ;;  %1360 = vmax.xlane.f32.xlu1 %v4495_v48  ;;  %v971_v4 = vadd.f32 %v970_v45, %v846_v43  ;;  %v1271_v43 = vadd.s32 64, %v4420_v12 }
 0x22b   : > { %v1189_v36 = vadd.f32 %v1188_v57, %v1092_v3  ;;  %v1096_v15 = vadd.f32 %v1095_v14, %v953_v31 }
 0x22d   : > { %v1237_v9 = vmul.f32 %v4430_v35, %v1189_v36  ;;  %v1291_v36 = vadd.s32 %v4426_v7, %v1274_v39 }
 0x22f   : > { %v1253_v59 = vmul.f32 3.0, %v1237_v9  ;;  %vm1311_vm12 = vcmp.gt.s32.totalorder %v4434_v41, %v1291_v36  ;;  %v850_v26 = vpop.f32.mrf.mxu2 }
 0x231   : > { %v4503_v19 = vsel %vm1307_vm9, -inf, %v1253_v59 }
 0x232   : > { %v1099_v6 = vpop.f32.mrf.mxu0  ;;  %v1192_v27 = vpop.f32.mrf.mxu1  ;;  %1362 = vmax.xlane.f32.xlu1 %v4503_v19 }
 0x233   : > { %v4506_v32 = vadd.f32 %v1192_v27, %v1096_v15  ;;  %v1100_v46 = vadd.f32 %v1099_v6, %v959_v63 }
 0x23a   : > { %v1196_v60 = vpop.f32.mrf.mxu1  ;;  %v1103_v29 = vpop.f32.mrf.mxu0 }
 0x23b   : > { %v1197_v23 = vadd.f32 %v1196_v60, %v1100_v46  ;;  %v1104_v52 = vadd.f32 %v1103_v29, %v965_v44 }
 0x23d   : > { %v1239_v56 = vmul.f32 %v4430_v35, %v1197_v23 }
 0x23f   : > { %v1255_v30 = vmul.f32 3.0, %v1239_v56  ;;  %v4573_v56 = vld [vmem:[#allocation2 + $0x20] sm:$0xff] }
 0x240   : > { %5705 = vst [vmem:[#allocation39_spill] sm:$0xff] %v4573_v56 }
 0x241   : > { %v4517_v54 = vsel %vm1309_vm10, -inf, %v1255_v30  ;;  %v725_v30 = vadd.f32 %v4399_v17, %v4391_v50  ;;  %v1288_v17 = vadd.s32 %v4426_v7, %v1271_v43 }
 0x242   : > { %5696 = vst [vmem:[#allocation30_spill] sm:$0xff] %v4517_v54  ;;  %v1200_v49 = vpop.f32.mrf.mxu1  ;;  %1366 = vmax.xlane.f32.xlu1 %v4517_v54  ;;  %v1107_v3 = vpop.f32.mrf.mxu0 }
 0x243   : > { %v1201_v58 = vadd.f32 %v1200_v49, %v1104_v52  ;;  %v1108_v57 = vadd.f32 %v1107_v3, %v971_v4  ;;  %v4585_v52 = vld [vmem:[#allocation2 + $0x28] sm:$0xff]  ;;  %v851_v49 = vadd.f32 %v850_v26, %v725_v30  ;;  %vm1308_vm14 = vcmp.gt.s32.totalorder %v4434_v41, %v1288_v17 }
 0x244   : > { %5707 = vst [vmem:[#allocation41_spill] sm:$0xff] %v4585_v52 }
 0x245   : > { %v1240_v0 = vmul.f32 %v4430_v35, %v1201_v58  ;;  %v976_v58 = vpop.f32.mrf.mxu3 }
 0x246   : > { %v977_v50 = vadd.f32 %v976_v58, %v851_v49 }
 0x247   : > { %v1256_v14 = vmul.f32 3.0, %v1240_v0  ;;  %v1238_v0 = vmul.f32 %v4430_v35, %v4506_v32 }
 0x249   : > { %v4524_v28 = vsel %vm1310_vm11, -inf, %v1256_v14 }
 0x24a   : > { %5697 = vst [vmem:[#allocation31_spill] sm:$0xff] %v4524_v28  ;;  %v1204_v8 = vpop.f32.mrf.mxu1  ;;  %1368 = vmax.xlane.f32.xlu0 %v4524_v28  ;;  %v1111_v3 = vpop.f32.mrf.mxu0 }
 0x24b   : > { %v1205_v10 = vadd.f32 %v1204_v8, %v1108_v57  ;;  %v1112_v14 = vadd.f32 %v1111_v3, %v977_v50  ;;  %v4598_v57 = vld [vmem:[#allocation2 + $0x30] sm:$0xff]  ;;  %v1254_v8 = vmul.f32 3.0, %v1238_v0 }
 0x24c   : > { %5709 = vst [vmem:[#allocation43_spill] sm:$0xff] %v4598_v57  ;;  %v415_v50 = vld [vmem:[%s3943_s27 + $0x70] sm:$0xff] }
 0x24d   : > { %v1241_v9 = vmul.f32 %v4430_v35, %v1205_v10 }
 0x24f   : > { %v1257_v31 = vmul.f32 3.0, %v1241_v9  ;;  %v1275_v9 = vadd.s32 96, %v4420_v12 }
 0x251   : > { %v4530_v59 = vsel %vm1311_vm12, -inf, %v1257_v31  ;;  %v729_v31 = vadd.f32 %v4405_v22, %v4397_v53  ;;  %v982_v53 = vpop.f32.mrf.mxu3 }
 0x252   : > { %5698 = vst [vmem:[#allocation32_spill] sm:$0xff] %v4530_v59  ;;  %1370 = vmax.xlane.f32.xlu1 %v4530_v59  ;;  %v1208_v4 = vpop.f32.mrf.mxu1  ;;  %v1115_v43 = vpop.f32.mrf.mxu0 }
 0x253   : > { %v1209_v36 = vadd.f32 %v1208_v4, %v1112_v14 }
 0x25a   : > { %v1212_v17 = vpop.f32.mrf.mxu1 }
 0x26d   : > { %v1349_v15 = vpop.xlane.xlu0 %1348 }
 0x26e   : > { %v4536_v6 = vmax.f32 %v4533_v24, %v1349_v15  ;;  %v4611_v15 = vsel %vm1308_vm14, -inf, %v1254_v8  ;;  %v4635_v8 = vand.u32 4294901760, %v415_v50  ;;  %v405_v24 = vld [vmem:[%s3943_s27 + $0x20] sm:$0xff] }
 0x26f   : > { %5711 = vst [vmem:[#allocation45_spill] sm:$0xff] %v4611_v15  ;;  %v4780_v59 = vand.u32 4294901760, %v405_v24 }
 0x270   : > { %5700 = vst [vmem:[#allocation34_spill] sm:$0xff] %v4536_v6  ;;  %1446 = vperm.xlu0 %3340, %v4536_v6  }
 0x271   : > { %2619 = vst.msk [vmem:[#allocation2] sm:$0xff] %vm1652_vm13, %v4536_v6 }
 0x275   : > { %v1351_v16 = vpop.xlane.xlu0 %1350 }
 0x276   : > { %v4546_v13 = vmax.f32 %v4543_v11, %v1351_v16  ;;  %v855_v16 = vpop.f32.mrf.mxu2 }
 0x277   : > { %v856_v30 = vadd.f32 %v855_v16, %v729_v31  ;;  %v4643_v31 = vsub.f32 %v415_v50, %v4635_v8 }
 0x278   : > { %5702 = vst [vmem:[#allocation36_spill] sm:$0xff] %v4546_v13  ;;  %1451 = vperm.xlu2 %3339, %v4546_v13  }
 0x279   : > { %2620 = vst.msk [vmem:[#allocation2 + $0x8] sm:$0xff] %vm1652_vm13, %v4546_v13  ;;  %v983_v0 = vadd.f32 %v982_v53, %v856_v30  ;;  %v413_v30 = vld [vmem:[%s3943_s27 + $0x60] sm:$0xff]  ;;  %v4819_v13 = vld [vmem:[#allocation2 + $0x58] sm:$0xff] }
 0x27d   : > { %v1353_v46 = vpop.xlane.xlu1 %1352 }
 0x27e   : > { %v4556_v40 = vmax.f32 %v4553_v1, %v1353_v46  ;;  %v1242_v46 = vmul.f32 %v4430_v35, %v1209_v36  ;;  %v1116_v36 = vadd.f32 %v1115_v43, %v983_v0  ;;  %v412_v43 = vld [vmem:[%s3943_s27 + $0x58] sm:$0xff] }
 0x27f   : > { %v4676_v39 = vand.u32 4294901760, %v412_v43 }
 0x280   : > { %2621 = vst.msk [vmem:[#allocation2 + $0x10] sm:$0xff] %vm1652_vm13, %v4556_v40  ;;  %1456 = vperm.xlu1 %3341, %v4556_v40   ;;  %v1258_v26 = vmul.f32 3.0, %v1242_v46  ;;  %v1213_v46 = vadd.f32 %v1212_v17, %v1116_v36 }
 0x285   : > { %v1355_v33 = vpop.xlane.xlu1 %1354 }
 0x286   : > { %v4566_v23 = vmax.f32 %v4563_v37, %v1355_v33  ;;  %v1292_v33 = vadd.s32 %v4426_v7, %v1275_v9 }
 0x288   : > { %5704 = vst [vmem:[#allocation38_spill] sm:$0xff] %v4566_v23  ;;  %1461 = vperm.xlu0 %3340, %v4566_v23   ;;  %vm1312_vm15 = vcmp.gt.s32.totalorder %v4434_v41, %v1292_v33  ;;  %v1276_v33 = vadd.s32 104, %v4420_v12 }
 0x289   : > { %2622 = vst.msk [vmem:[#allocation2 + $0x18] sm:$0xff] %vm1652_vm13, %v4566_v23  ;;  %v4630_v4 = vsel %vm1312_vm15, -inf, %v1258_v26 }
 0x28a   : > { %5713 = vst [vmem:[#allocation47_spill] sm:$0xff] %v4630_v4  ;;  %v1293_v3 = vadd.s32 %v4426_v7, %v1276_v33  ;;  %v410_v33 = vld [vmem:[%s3943_s27 + $0x48] sm:$0xff] }
 0x28b   : > { %v4701_v60 = vand.u32 4294901760, %v410_v33 }
 0x28c   : > { %vm1313_vm0 = vcmp.gt.s32.totalorder %v4434_v41, %v1293_v3 }
 0x28d   : > { %v1357_v20 = vpop.xlane.xlu2 %1356 }
 0x28e   : > { %v4576_v44 = vmax.f32 %v4573_v56, %v1357_v20  ;;  %v4616_v20 = vld [vmem:[#allocation2 + $0x38] sm:$0xff] }
 0x28f   : > { %5712 = vst [vmem:[#allocation46_spill] sm:$0xff] %v4616_v20 }
 0x290   : > { %5706 = vst [vmem:[#allocation40_spill] sm:$0xff] %v4576_v44  ;;  %1466 = vperm.xlu0 %3340, %v4576_v44  }
 0x291   : > { %2623 = vst.msk [vmem:[#allocation2 + $0x20] sm:$0xff] %vm1652_vm13, %v4576_v44 }
 0x295   : > { %v1359_v55 = vpop.xlane.xlu2 %1358 }
 0x296   : > { %v4589_v45 = vmax.f32 %v4585_v52, %v1359_v55  ;;  %v416_v55 = vld [vmem:[%s3943_s27 + $0x78] sm:$0xff] }
 0x297   : > { %v4623_v58 = vand.u32 4294901760, %v416_v55 }
 0x298   : > { %5708 = vst [vmem:[#allocation42_spill] sm:$0xff] %v4589_v45 }
 0x299   : > { %2624 = vst.msk [vmem:[#allocation2 + $0x28] sm:$0xff] %vm1652_vm13, %v4589_v45  ;;  %v4633_v14 = vsub.f32 %v416_v55, %v4623_v58  ;;  %2233 = vmatpush.msra.mxu1 %v4623_v58  ;;  %1782 = vmatpush.msrb.mxu2 %v4623_v58  ;;  %v4660_v55 = vand.u32 4294901760, %v413_v30 }
 0x29b   : > { %v5617_v9 = vand.u32 4294901760, %v4633_v14  ;;  %2105 = vmatpush.msra.mxu0 %v4633_v14  ;;  %2235 = vmatpush.msra.mxu1 %v4635_v8  ;;  %v4670_v36 = vsub.f32 %v413_v30, %v4660_v55 }
 0x29c   : > { %1784 = vmatpush.msrb.mxu2 %v4635_v8 }
 0x29d   : > { %v1361_v10 = vpop.xlane.xlu1 %1360  ;;  %v1945_v53 = vsub.f32 %v4633_v14, %v5617_v9  ;;  %2108 = vmatpush.msra.mxu0 %v4643_v31  ;;  %v5616_v27 = vand.u32 4294901760, %v4670_v36 }
 0x29e   : > { %v4602_v32 = vmax.f32 %v4598_v57, %v1361_v10  ;;  %v414_v10 = vld [vmem:[%s3943_s27 + $0x68] sm:$0xff] }
 0x29f   : > { %v4646_v16 = vand.u32 4294901760, %v414_v10  ;;  %v1946_v0 = vand.u32 4294901760, %v1945_v53  ;;  %v411_v53 = vld [vmem:[%s3943_s27 + $0x50] sm:$0xff]  ;;  %v1963_v2 = vsub.f32 %v4670_v36, %v5616_v27 }
 0x2a0   : > { %5710 = vst [vmem:[#allocation44_spill] sm:$0xff] %v4602_v32  ;;  %v4685_v63 = vand.u32 4294901760, %v411_v53 }
 0x2a1   : > { %2625 = vst.msk [vmem:[#allocation2 + $0x30] sm:$0xff] %vm1652_vm13, %v4602_v32  ;;  %1364 = vmax.xlane.f32.xlu2 %v4611_v15  ;;  %v4657_v26 = vsub.f32 %v414_v10, %v4646_v16  ;;  %2237 = vmatpush.msra.mxu1 %v4646_v16  ;;  %v1243_v10 = vmul.f32 %v4430_v35, %v1213_v46 }
 0x2a2   : > { %1786 = vmatpush.msrb.mxu2 %v4646_v16  ;;  %1947 = vmatpush.msrb.mxu3 %v1946_v0  ;;  %v4688_v46 = vsub.f32 %v412_v43, %v4676_v39  ;;  %v4693_v0 = vld [vmem:[#allocation2 + $0x48] sm:$0xff]  ;;  %v4699_v62 = vsub.f32 %v411_v53, %v4685_v63  ;;  %v4710_v53 = vsub.f32 %v410_v33, %v4701_v60 }
 0x2a3   : > { %v5614_v17 = vand.u32 4294901760, %v4657_v26  ;;  %2111 = vmatpush.msra.mxu0 %v4657_v26  ;;  %2239 = vmatpush.msra.mxu1 %v4660_v55  ;;  %5714 = vst [vmem:[#allocation48_spill] sm:$0xff] %v4693_v0  ;;  %v1259_v43 = vmul.f32 3.0, %v1243_v10 }
 0x2a4   : > { %1788 = vmatpush.msrb.mxu2 %v4660_v55  ;;  %v5621_v27 = vand.u32 4294901760, %v4699_v62  ;;  %v5716_v23 = vand.u32 4294901760, %v4710_v53 }
 0x2a5   : > { %v1363_v22 = vpop.xlane.xlu1 %1362  ;;  %v1957_v30 = vsub.f32 %v4657_v26, %v5614_v17  ;;  %2114 = vmatpush.msra.mxu0 %v4670_v36  ;;  %2241 = vmatpush.msra.mxu1 %v4676_v39  ;;  %v5620_v17 = vand.u32 4294901760, %v4688_v46 }
 0x2a6   : > { %v4619_v49 = vmax.f32 %v4616_v20, %v1363_v22  ;;  %v5615_v22 = vand.u32 4294901760, %v4643_v31  ;;  %1790 = vmatpush.msrb.mxu2 %v4676_v39  ;;  %v1975_v33 = vsub.f32 %v4699_v62, %v5621_v27 }
 0x2a7   : > { %2117 = vmatpush.msra.mxu0 %v4688_v46  ;;  %2243 = vmatpush.msra.mxu1 %v4685_v63  ;;  %v1969_v20 = vsub.f32 %v4688_v46, %v5620_v17  ;;  %v1981_v17 = vsub.f32 %v4710_v53, %v5716_v23 }
 0x2a8   : > { %2626 = vst.msk [vmem:[#allocation2 + $0x38] sm:$0xff] %vm1652_vm13, %v4619_v49  ;;  %v1951_v50 = vsub.f32 %v4643_v31, %v5615_v22  ;;  %v409_v22 = vld [vmem:[%s3943_s27 + $0x40] sm:$0xff]  ;;  %1792 = vmatpush.msrb.mxu2 %v4685_v63 }
 0x2a9   : > { %v4712_v9 = vand.u32 4294901760, %v409_v22  ;;  %2120 = vmatpush.msra.mxu0 %v4699_v62  ;;  %2245 = vmatpush.msra.mxu1 %v4701_v60  ;;  %v1970_v27 = vand.u32 4294901760, %v1969_v20 }
 0x2aa   : > { %1372 = vmax.xlane.f32.xlu1 %v4630_v4  ;;  %v1952_v29 = vand.u32 4294901760, %v1951_v50  ;;  %v1958_v50 = vand.u32 4294901760, %v1957_v30  ;;  %v1964_v30 = vand.u32 4294901760, %v1963_v2  ;;  %v408_v2 = vld [vmem:[%s3943_s27 + $0x38] sm:$0xff]  ;;  %1794 = vmatpush.msrb.mxu2 %v4701_v60 }
 0x2ab   : > { %v4731_v52 = vand.u32 4294901760, %v408_v2  ;;  %2123 = vmatpush.msra.mxu0 %v4710_v53  ;;  %2247 = vmatpush.msra.mxu1 %v4712_v9 }
 0x2ac   : > { %1953 = vmatpush.msrb.mxu3 %v1952_v29  ;;  %1796 = vmatpush.msrb.mxu2 %v4712_v9 }
 0x2ad   : > { %v4751_v3 = vsub.f32 %v408_v2, %v4731_v52  ;;  %2249 = vmatpush.msra.mxu1 %v4731_v52 }
 0x2ae   : > { %1959 = vmatpush.msrb.mxu3 %v1958_v50  ;;  %v1976_v50 = vand.u32 4294901760, %v1975_v33  ;;  %v1982_v33 = vand.u32 4294901760, %v1981_v17  ;;  %1798 = vmatpush.msrb.mxu2 %v4731_v52 }
 0x2af   : > { %v5631_v6 = vand.u32 4294901760, %v4751_v3 }
 0x2b0   : > { %1965 = vmatpush.msrb.mxu3 %v1964_v30  ;;  %v4740_v30 = vsel %vm1313_vm0, -inf, %v1259_v43  ;;  %v406_v43 = vld [vmem:[%s3943_s27 + $0x28] sm:$0xff] }
 0x2b1   : > { %5715 = vst [vmem:[#allocation49_spill] sm:$0xff] %v4740_v30  ;;  %v4765_v2 = vand.u32 4294901760, %v406_v43 }
 0x2b2   : > { %1971 = vmatpush.msrb.mxu3 %v1970_v27 }
 0x2b3   : > { %v4778_v4 = vsub.f32 %v406_v43, %v4765_v2  ;;  %v4792_v43 = vsub.f32 %v405_v24, %v4780_v59 }
 0x2b4   : > { %1977 = vmatpush.msrb.mxu3 %v1976_v50 }
 0x2b5   : > { %v1367_v29 = vpop.xlane.xlu1 %1366  ;;  %v5639_v28 = vand.u32 4294901760, %v4778_v4  ;;  %v5642_v54 = vand.u32 4294901760, %v4792_v43 }
 0x2b6   : > { %v4716_v10 = vmax.f32 %v4693_v0, %v1367_v29  ;;  %v4729_v29 = vsub.f32 %v409_v22, %v4712_v9  ;;  %v407_v22 = vld [vmem:[%s3943_s27 + $0x30] sm:$0xff]  ;;  %1983 = vmatpush.msrb.mxu3 %v1982_v33 }
 0x2b7   : > { %v4755_v20 = vand.u32 4294901760, %v407_v22  ;;  %v2005_v24 = vsub.f32 %v4778_v4, %v5639_v28  ;;  %v2011_v28 = vsub.f32 %v4792_v43, %v5642_v54 }
 0x2b8   : > { %2628 = vst.msk [vmem:[#allocation2 + $0x48] sm:$0xff] %vm1652_vm13, %v4716_v10  ;;  %v5628_v37 = vand.u32 4294901760, %v4729_v29  ;;  %2126 = vmatpush.msra.mxu0 %v4729_v29 }
 0x2b9   : > { %1471 = vperm.xlu2 %3339, %v4589_v45   ;;  %v4758_v45 = vld [vmem:[#allocation2 + $0x50] sm:$0xff]  ;;  %v4769_v27 = vsub.f32 %v407_v22, %v4755_v20  ;;  %2251 = vmatpush.msra.mxu1 %v4755_v20  ;;  %v2006_v11 = vand.u32 4294901760, %v2005_v24 }
 0x2ba   : > { %1374 = vmax.xlane.f32.xlu0 %v4740_v30  ;;  %5717 = vst [vmem:[#allocation50_spill] sm:$0xff] %v4758_v45  ;;  %v1987_v23 = vsub.f32 %v4729_v29, %v5628_v37  ;;  %v1993_v37 = vsub.f32 %v4751_v3, %v5631_v6  ;;  %2129 = vmatpush.msra.mxu0 %v4751_v3 }
 0x2bb   : > { %v5635_v22 = vand.u32 4294901760, %v4769_v27  ;;  %1800 = vmatpush.msrb.mxu2 %v4755_v20  ;;  %2253 = vmatpush.msra.mxu1 %v4765_v2 }
 0x2bc   : > { %v1988_v30 = vand.u32 4294901760, %v1987_v23  ;;  %v404_v23 = vld [vmem:[%s3943_s27 + $0x18] sm:$0xff]  ;;  %v1994_v6 = vand.u32 4294901760, %v1993_v37  ;;  %2132 = vmatpush.msra.mxu0 %v4769_v27 }
 0x2bd   : > { %v1369_v17 = vpop.xlane.xlu0 %1368  ;;  %v4794_v15 = vand.u32 4294901760, %v404_v23  ;;  %v1999_v37 = vsub.f32 %v4769_v27, %v5635_v22  ;;  %1802 = vmatpush.msrb.mxu2 %v4765_v2  ;;  %2255 = vmatpush.msra.mxu1 %v4780_v59 }
 0x2be   : > { %v4784_v50 = vmax.f32 %v4758_v45, %v1369_v17  ;;  %1989 = vmatpush.msrb.mxu3 %v1988_v30  ;;  %v403_v17 = vld [vmem:[%s3943_s27 + $0x10] sm:$0xff]  ;;  %2135 = vmatpush.msra.mxu0 %v4778_v4  ;;  %v402_v45 = vld [vmem:[%s3943_s27 + $0x8] sm:$0xff] }
 0x2bf   : > { %v4813_v33 = vsub.f32 %v404_v23, %v4794_v15  ;;  %v4815_v30 = vand.u32 4294901760, %v403_v17  ;;  %v2000_v22 = vand.u32 4294901760, %v1999_v37  ;;  %1804 = vmatpush.msrb.mxu2 %v4780_v59  ;;  %2257 = vmatpush.msra.mxu1 %v4794_v15  ;;  %v401_v37 = vld [vmem:[%s3943_s27] sm:$0xff] }
 0x2c0   : > { %2629 = vst.msk [vmem:[#allocation2 + $0x50] sm:$0xff] %vm1652_vm13, %v4784_v50  ;;  %1995 = vmatpush.msrb.mxu3 %v1994_v6  ;;  %2138 = vmatpush.msra.mxu0 %v4792_v43  ;;  %v4830_v6 = vand.u32 4294901760, %v402_v45 }
 0x2c1   : > { %1476 = vperm.xlu2 %3339, %v4602_v32   ;;  %v5645_v0 = vand.u32 4294901760, %v4813_v33  ;;  %v4827_v23 = vsub.f32 %v403_v17, %v4815_v30  ;;  %v2012_v32 = vand.u32 4294901760, %v2011_v28  ;;  %v4839_v17 = vand.u32 4294901760, %v401_v37  ;;  %1806 = vmatpush.msrb.mxu2 %v4794_v15 }
 0x2c2   : > { %2001 = vmatpush.msrb.mxu3 %v2000_v22  ;;  %2141 = vmatpush.msra.mxu0 %v4813_v33  ;;  %v4846_v44 = vsub.f32 %v402_v45, %v4830_v6 }
 0x2c3   : > { %v2017_v54 = vsub.f32 %v4813_v33, %v5645_v0  ;;  %v2022_v57 = vand.u32 4294901760, %v4827_v23  ;;  %2259 = vmatpush.msra.mxu1 %v4815_v30  ;;  %v4854_v56 = vsub.f32 %v401_v37, %v4839_v17  ;;  %1808 = vmatpush.msrb.mxu2 %v4815_v30 }
 0x2c4   : > { %2007 = vmatpush.msrb.mxu3 %v2006_v11  ;;  %2144 = vmatpush.msra.mxu0 %v4827_v23 }
 0x2c5   : > { %v1371_v24 = vpop.xlane.xlu1 %1370  ;;  %v2018_v28 = vand.u32 4294901760, %v2017_v54  ;;  %v2023_v0 = vsub.f32 %v4827_v23, %v2022_v57  ;;  %v2028_v54 = vand.u32 4294901760, %v4846_v44  ;;  %2261 = vmatpush.msra.mxu1 %v4830_v6  ;;  %1810 = vmatpush.msrb.mxu2 %v4830_v6 }
 0x2c6   : > { %v4843_v22 = vmax.f32 %v4819_v13, %v1371_v24  ;;  %2013 = vmatpush.msrb.mxu3 %v2012_v32  ;;  %v5647_v24 = vand.u32 4294901760, %v4854_v56  ;;  %2147 = vmatpush.msra.mxu0 %v4846_v44 }
 0x2c7   : > { %v2024_v45 = vand.u32 4294901760, %v2023_v0  ;;  %v2029_v37 = vsub.f32 %v4846_v44, %v2028_v54  ;;  %2263 = vmatpush.msra.mxu1 %v4839_v17  ;;  %1812 = vmatpush.msrb.mxu2 %v4839_v17 }
 0x2c8   : > { %2630 = vst.msk [vmem:[#allocation2 + $0x58] sm:$0xff] %vm1652_vm13, %v4843_v22  ;;  %2019 = vmatpush.msrb.mxu3 %v2018_v28  ;;  %v2035_v32 = vsub.f32 %v4854_v56, %v5647_v24  ;;  %2150 = vmatpush.msra.mxu0 %v4854_v56  ;;  %v5718_v28 = vand.u32 4294901760, %v4633_v14  ;;  %v5719_v24 = vand.u32 4294901760, %v4643_v31  ;;  %v5722_v14 = vand.u32 4294901760, %v4688_v46  ;;  %v860_v31 = vpop.f32.mrf.mxu2 }
 0x2c9   : > { %1481 = vperm.xlu2 %3339, %v4619_v49   ;;  %v2030_v0 = vand.u32 4294901760, %v2029_v37  ;;  %v5721_v37 = vand.u32 4294901760, %v4670_v36  ;;  %v5725_v46 = vand.u32 4294901760, %v4729_v29 }
 0x2ca   : > { %2025 = vmatpush.msrb.mxu3 %v2024_v45  ;;  %v2036_v11 = vand.u32 4294901760, %v2035_v32  ;;  %2364 = vmatpush.msra.mxu2 %v5718_v28  ;;  %v5720_v45 = vand.u32 4294901760, %v4657_v26  ;;  %v5724_v26 = vand.u32 4294901760, %v4710_v53 }
 0x2cc   : > { %2031 = vmatpush.msrb.mxu3 %v2030_v0  ;;  %2368 = vmatpush.msra.mxu2 %v5719_v24 }
 0x2ce   : > { %1491 = vperm.xlu0 %3340, %v4716_v10   ;;  %2037 = vmatpush.msrb.mxu3 %v2036_v11 }
 0x2cf   : > { %2372 = vmatpush.msra.mxu2 %v5720_v45 }
 0x2d0   : > { %2491 = vmatpush.msra.mxu3 %v4623_v58  ;;  %v733_v58 = vadd.f32 %v4411_v47, %v4403_v18  ;;  %v988_v18 = vpop.f32.mrf.mxu3  ;;  %v5726_v47 = vand.u32 4294901760, %v4751_v3 }
 0x2d1   : > { %2376 = vmatpush.msra.mxu2 %v5721_v37 }
 0x2d2   : > { %2493 = vmatpush.msra.mxu3 %v4635_v8  ;;  %v5723_v8 = vand.u32 4294901760, %v4699_v62  ;;  %v861_v36 = vadd.f32 %v860_v31, %v733_v58 }
 0x2d3   : > { %2380 = vmatpush.msra.mxu2 %v5722_v14 }
 0x2d4   : > { %2495 = vmatpush.msra.mxu3 %v4646_v16  ;;  %v1452_v16 = vpop.permute.xlu2 %1451  ;;  %v989_v62 = vadd.f32 %v988_v18, %v861_v36 }
 0x2d5   : > { %2384 = vmatpush.msra.mxu2 %v5723_v8 }
 0x2d6   : > { %1496 = vperm.xlu0 %3340, %v4784_v50   ;;  %2497 = vmatpush.msra.mxu3 %v4660_v55  ;;  %v1525_v55 = vsub.f32 %v4450_v5, %v1452_v16  ;;  %v5727_v5 = vand.u32 4294901760, %v4769_v27  ;;  %v1277_v27 = vadd.s32 112, %v4420_v12 }
 0x2d7   : > { %2388 = vmatpush.msra.mxu2 %v5724_v26 }
 0x2d8   : > { %2499 = vmatpush.msra.mxu3 %v4676_v39  ;;  %v1542_v39 = vmul.f32 1.442695, %v1525_v55 }
 0x2d9   : > { %2392 = vmatpush.msra.mxu2 %v5725_v46 }
 0x2da   : > { %2501 = vmatpush.msra.mxu3 %v4685_v63  ;;  %v1119_v63 = vpop.f32.mrf.mxu0  ;;  %3344 = vpow2.f32 %v1542_v39 }
 0x2db   : > { %2396 = vmatpush.msra.mxu2 %v5726_v47  ;;  %v1120_v29 = vadd.f32 %v1119_v63, %v989_v62 }
 0x2dc   : > { %2503 = vmatpush.msra.mxu3 %v4701_v60  ;;  %v1216_v60 = vpop.f32.mrf.mxu1 }
 0x2dd   : > { %2400 = vmatpush.msra.mxu2 %v5727_v5  ;;  %v1217_v3 = vadd.f32 %v1216_v60, %v1120_v29 }
 0x2de   : > { %1501 = vperm.xlu0 %3340, %v4843_v22   ;;  %2505 = vmatpush.msra.mxu3 %v4712_v9  ;;  %v5728_v9 = vand.u32 4294901760, %v4778_v4  ;;  %v1294_v4 = vadd.s32 %v4426_v7, %v1277_v27 }
 0x2e0   : > { %2507 = vmatpush.msra.mxu3 %v4731_v52  ;;  %2404 = vmatpush.msra.mxu2 %v5728_v9  ;;  %v5729_v52 = vand.u32 4294901760, %v4792_v43  ;;  %vm1314_vm1 = vcmp.gt.s32.totalorder %v4434_v41, %v1294_v4 }
 0x2e2   : > { %v1447_v53 = vpop.permute.xlu0 %1446  ;;  %2509 = vmatpush.msra.mxu3 %v4755_v20  ;;  %2408 = vmatpush.msra.mxu2 %v5729_v52  ;;  %v1244_v20 = vmul.f32 %v4430_v35, %v1217_v3 }
 0x2e3   : > { %v1524_v11 = vsub.f32 %v4441_v34, %v1447_v53  ;;  %v5730_v34 = vand.u32 4294901760, %v4813_v33  ;;  %v5731_v33 = vand.u32 4294901760, %v4854_v56 }
 0x2e4   : > { %2511 = vmatpush.msra.mxu3 %v4765_v2  ;;  %v4927_v2 = vpop.eup %3344  ;;  %v1260_v43 = vmul.f32 3.0, %v1244_v20  ;;  %v4991_v20 = vld [vmem:[#allocation2 + $0x60] sm:$0xff] }
 0x2e5   : > { %v1540_v24 = vmul.f32 1.442695, %v1524_v11  ;;  %2412 = vmatpush.msra.mxu2 %v5730_v34  ;;  %v4981_v11 = vld [vmem:[#allocation2 + $0x40] sm:$0xff] }
 0x2e6   : > { %2513 = vmatpush.msra.mxu3 %v4780_v59 }
 0x2e7   : > { %3346 = vpow2.f32 %v1540_v24  ;;  %2416 = vmatpush.msra.mxu2 %v2022_v57  ;;  %v4942_v57 = vand.u32 4294901760, %v4927_v2 }
 0x2e8   : > { %2515 = vmatpush.msra.mxu3 %v4794_v15 }
 0x2e9   : > { %2420 = vmatpush.msra.mxu2 %v2028_v54 }
 0x2ea   : > { %2517 = vmatpush.msra.mxu3 %v4815_v30  ;;  %v4948_v30 = vsel %vm1314_vm1, -inf, %v1260_v43 }
 0x2eb   : > { %2424 = vmatpush.msra.mxu2 %v5731_v33 }
 0x2ec   : > { %2519 = vmatpush.msra.mxu3 %v4830_v6  ;;  %v1822_v6 = vsub.f32 %v4927_v2, %v4942_v57 }
 0x2ed   : > { %v4932_v59 = vpop.eup %3346 }
 0x2ee   : > { %v4938_v15 = vand.u32 4294901760, %v4932_v59  ;;  %2521 = vmatpush.msra.mxu3 %v4839_v17  ;;  %v1823_v28 = vand.u32 4294901760, %v1822_v6 }
 0x2f0   : > { %2039 = vmatmul.f32.vlgmr.msrb.gmra.mxu3 %v4938_v15  ;;  %v1814_v44 = vsub.f32 %v4932_v59, %v4938_v15  ;;  %v1824_v37 = vsub.f32 %v1822_v6, %v1823_v28 }
 0x2f2   : > { %v1457_v23 = vpop.permute.xlu1 %1456  ;;  %1376 = vmax.xlane.f32.xlu2 %v4948_v30  ;;  %2153 = vmatmul.f32.vlgmr.msra.gmra.mxu0 %v1814_v44  ;;  %v1815_v56 = vand.u32 4294901760, %v1814_v44  ;;  %v1825_v31 = vand.u32 4294901760, %v1824_v37  ;;  %v5011_v37 = vld [vmem:[#allocation2 + $0x68] sm:$0xff] }
 0x2f3   : > { %v1526_v54 = vsub.f32 %v4459_v51, %v1457_v23 }
 0x2f4   : > { %2267 = vmatmul.f32.vlgmr.msra.gmra.mxu1 %v1815_v56  ;;  %v1816_v32 = vsub.f32 %v1814_v44, %v1815_v56 }
 0x2f5   : > { %v1544_v17 = vmul.f32 1.442695, %v1526_v54 }
 0x2f6   : > { %v1817_v0 = vand.u32 4294901760, %v1816_v32  ;;  %v737_v32 = vadd.f32 %v4417_v25, %v4409_v42 }
 0x2f7   : > { %3348 = vpow2.f32 %v1544_v17  ;;  %v865_v17 = vpop.f32.mrf.mxu2 }
 0x2f8   : > { %1818 = vmatmul.f32.vlgmr.msrb.gmra.mxu2 %v1817_v0  ;;  %2043 = vmatmul.f32.gmra.mxu3 %v4942_v57 }
 0x2fa   : > { %2158 = vmatmul.f32.gmra.mxu0 %v1822_v6  ;;  %v1462_v45 = vpop.permute.xlu0 %1461 }
 0x2fb   : > { %v1527_v14 = vsub.f32 %v4468_v21, %v1462_v45  ;;  %v866_v45 = vadd.f32 %v865_v17, %v737_v32 }
 0x2fc   : > { %2273 = vmatmul.f32.gmra.mxu1 %v1823_v28 }
 0x2fd   : > { %v4956_v58 = vpop.eup %3348  ;;  %v1546_v8 = vmul.f32 1.442695, %v1527_v14  ;;  %v5732_v14 = vsub.f32 %v4553_v1, %v4556_v40 }
 0x2fe   : > { %v4959_v51 = vand.u32 4294901760, %v4956_v58 }
 0x2ff   : > { %3350 = vpow2.f32 %v1546_v8  ;;  %v1416_v8 = vmul.f32 1.442695, %v5732_v14 }
 0x300   : > { %1826 = vmatmul.f32.gmra.mxu2 %v1825_v31  ;;  %2047 = vmatmul.f32.gmra.mxu3 %v4959_v51  ;;  %v1830_v16 = vsub.f32 %v4956_v58, %v4959_v51 }
 0x302   : > { %2163 = vmatmul.f32.gmra.mxu0 %v1830_v16  ;;  %v1467_v26 = vpop.permute.xlu0 %1466  ;;  %v1831_v36 = vand.u32 4294901760, %v1830_v16 }
 0x303   : > { %v1528_v21 = vsub.f32 %v4477_v61, %v1467_v26 }
 0x304   : > { %2279 = vmatmul.f32.gmra.mxu1 %v1831_v36  ;;  %v1832_v55 = vsub.f32 %v1830_v16, %v1831_v36 }
 0x305   : > { %v4965_v46 = vpop.eup %3350  ;;  %v1548_v18 = vmul.f32 1.442695, %v1528_v21 }
 0x306   : > { %v1833_v47 = vand.u32 4294901760, %v1832_v55  ;;  %v4968_v63 = vand.u32 4294901760, %v4965_v46 }
 0x307   : > { %3352 = vpow2.f32 %v1548_v18  ;;  %v1123_v18 = vpop.f32.mrf.mxu0 }
 0x308   : > { %1834 = vmatmul.f32.gmra.mxu2 %v1833_v47  ;;  %2051 = vmatmul.f32.gmra.mxu3 %v4968_v63  ;;  %v1838_v62 = vsub.f32 %v4965_v46, %v4968_v63 }
 0x30a   : > { %2168 = vmatmul.f32.gmra.mxu0 %v1838_v62  ;;  %v1839_v39 = vand.u32 4294901760, %v1838_v62 }
 0x30c   : > { %2285 = vmatmul.f32.gmra.mxu1 %v1839_v39  ;;  %v1840_v61 = vsub.f32 %v1838_v62, %v1839_v39  ;;  %v1220_v62 = vpop.f32.mrf.mxu1 }
 0x30d   : > { %v4973_v5 = vpop.eup %3352 }
 0x30e   : > { %v1841_v60 = vand.u32 4294901760, %v1840_v61  ;;  %v4976_v53 = vand.u32 4294901760, %v4973_v5 }
 0x310   : > { %1842 = vmatmul.f32.gmra.mxu2 %v1841_v60  ;;  %2055 = vmatmul.f32.gmra.mxu3 %v4976_v53  ;;  %v1846_v29 = vsub.f32 %v4973_v5, %v4976_v53 }
 0x312   : > { %2173 = vmatmul.f32.gmra.mxu0 %v1846_v29  ;;  %v1847_v9 = vand.u32 4294901760, %v1846_v29 }
 0x314   : > { %v1365_v3 = vpop.xlane.xlu2 %1364  ;;  %2291 = vmatmul.f32.gmra.mxu1 %v1847_v9  ;;  %v1848_v24 = vsub.f32 %v1846_v29, %v1847_v9  ;;  %v5733_v9 = vld [vmem:[#allocation39_spill] sm:$0xff] }
 0x315   : > { %v4984_v52 = vmax.f32 %v4981_v11, %v1365_v3  ;;  %v5734_v3 = vld [vmem:[#allocation40_spill] sm:$0xff] }
 0x316   : > { %v1849_v27 = vand.u32 4294901760, %v1848_v24  ;;  %v5735_v24 = vsub.f32 %v5733_v9, %v5734_v3  ;;  %v1346_v3 = vld [vmem:[#allocation2 + $0x70] sm:$0xff] }
 0x317   : > { %v1404_v34 = vsub.f32 %v4981_v11, %v4984_v52  ;;  %2627 = vst.msk [vmem:[#allocation2 + $0x40] sm:$0xff] %vm1652_vm13, %v4984_v52  ;;  %1486 = vperm.xlu1 %3341, %v4984_v52  }
 0x318   : > { %1850 = vmatmul.f32.gmra.mxu2 %v1849_v27  ;;  %v1420_v27 = vmul.f32 1.442695, %v5735_v24 }
 0x31c   : > { %v1472_v4 = vpop.permute.xlu2 %1471 }
 0x31d   : > { %v1529_v43 = vsub.f32 %v4486_v38, %v1472_v4  ;;  %v1373_v33 = vpop.xlane.xlu1 %1372  ;;  %v1278_v4 = vadd.s32 120, %v4420_v12 }
 0x31e   : > { %v4995_v44 = vmax.f32 %v4991_v20, %v1373_v33 }
 0x31f   : > { %v1550_v23 = vmul.f32 1.442695, %v1529_v43 }
 0x320   : > { %2631 = vst.msk [vmem:[#allocation2 + $0x60] sm:$0xff] %vm1652_vm13, %v4995_v44  ;;  %1506 = vperm.xlu0 %3340, %v4995_v44  }
 0x321   : > { %3354 = vpow2.f32 %v1550_v23 }
 0x324   : > { %v1477_v56 = vpop.permute.xlu2 %1476 }
 0x325   : > { %v1530_v6 = vsub.f32 %v4495_v48, %v1477_v56  ;;  %v994_v48 = vpop.f32.mrf.mxu3 }
 0x326   : > { %v995_v55 = vadd.f32 %v994_v48, %v866_v45  ;;  %v5736_v45 = vld [vmem:[#allocation43_spill] sm:$0xff] }
 0x327   : > { %v5001_v54 = vpop.eup %3354  ;;  %v1552_v38 = vmul.f32 1.442695, %v1530_v6 }
 0x328   : > { %v5006_v0 = vand.u32 4294901760, %v5001_v54  ;;  %v1124_v39 = vadd.f32 %v1123_v18, %v995_v55 }
 0x329   : > { %3356 = vpow2.f32 %v1552_v38  ;;  %v1295_v38 = vadd.s32 %v4426_v7, %v1278_v4  ;;  %v5745_v4 = vld [vmem:[#allocation30_spill] sm:$0xff] }
 0x32a   : > { %2059 = vmatmul.f32.gmra.mxu3 %v5006_v0  ;;  %v1854_v28 = vsub.f32 %v5001_v54, %v5006_v0  ;;  %3358 = vpow2.f32 %v1416_v8  ;;  %v1221_v60 = vadd.f32 %v1220_v62, %v1124_v39  ;;  %v5742_v62 = vld [vmem:[#allocation36_spill] sm:$0xff] }
 0x32b   : > { %vm1315_vm2 = vcmp.gt.s32.totalorder %v4434_v41, %v1295_v38  ;;  %v1408_v41 = vsub.f32 %v4991_v20, %v4995_v44  ;;  %v5744_v44 = vsub.f32 %v4819_v13, %v4843_v22 }
 0x32c   : > { %v1482_v42 = vpop.permute.xlu2 %1481  ;;  %2178 = vmatmul.f32.gmra.mxu0 %v1854_v28  ;;  %v1855_v25 = vand.u32 4294901760, %v1854_v28  ;;  %v1245_v56 = vmul.f32 %v4430_v35, %v1221_v60  ;;  %v5737_v35 = vld [vmem:[#allocation44_spill] sm:$0xff]  ;;  %v1428_v60 = vmul.f32 1.442695, %v1404_v34 }
 0x32d   : > { %v1531_v31 = vsub.f32 %v4503_v19, %v1482_v42  ;;  %v1375_v16 = vpop.xlane.xlu0 %1374  ;;  %v5738_v48 = vsub.f32 %v5736_v45, %v5737_v35  ;;  %v1436_v18 = vmul.f32 1.442695, %v1408_v41 }
 0x32e   : > { %v5018_v26 = vmax.f32 %v5011_v37, %v1375_v16  ;;  %2297 = vmatmul.f32.gmra.mxu1 %v1855_v25  ;;  %v1856_v36 = vsub.f32 %v1854_v28, %v1855_v25  ;;  %v1261_v28 = vmul.f32 3.0, %v1245_v56 }
 0x32f   : > { %v5020_v21 = vpop.eup %3356  ;;  %v1554_v47 = vmul.f32 1.442695, %v1531_v31  ;;  %v1424_v14 = vmul.f32 1.442695, %v5738_v48  ;;  %v5739_v31 = vld [vmem:[#allocation48_spill] sm:$0xff] }
 0x330   : > { %v1409_v1 = vsub.f32 %v5011_v37, %v5018_v26  ;;  %2632 = vst.msk [vmem:[#allocation2 + $0x68] sm:$0xff] %vm1652_vm13, %v5018_v26  ;;  %1511 = vperm.xlu2 %3339, %v5018_v26   ;;  %v1857_v19 = vand.u32 4294901760, %v1856_v36  ;;  %v5028_v40 = vand.u32 4294901760, %v5020_v21  ;;  %v5037_v43 = vpop.eup %3358  ;;  %v5057_v7 = vsel %vm1315_vm2, -inf, %v1261_v28  ;;  %v5747_v28 = vld [vmem:[#allocation31_spill] sm:$0xff] }
 0x331   : > { %3360 = vpow2.f32 %v1554_v47  ;;  %v5740_v16 = vsub.f32 %v5739_v31, %v4716_v10  ;;  %v5748_v31 = vld [vmem:[#allocation32_spill] sm:$0xff] }
 0x332   : > { %1858 = vmatmul.f32.gmra.mxu2 %v1857_v19  ;;  %2063 = vmatmul.f32.gmra.mxu3 %v5028_v40  ;;  %v1862_v61 = vsub.f32 %v5020_v21, %v5028_v40  ;;  %3362 = vpow2.f32 %v1420_v27  ;;  %v5741_v19 = vld [vmem:[#allocation35_spill] sm:$0xff] }
 0x333   : > { %3364 = vpow2.f32 %v1424_v14  ;;  %v1430_v36 = vmul.f32 1.442695, %v5740_v16  ;;  %v5743_v39 = vsub.f32 %v5741_v19, %v5742_v62 }
 0x334   : > { %2183 = vmatmul.f32.gmra.mxu0 %v1862_v61  ;;  %v1863_v29 = vand.u32 4294901760, %v1862_v61 }
 0x335   : > { %3366 = vpow2.f32 %v1430_v36 }
 0x336   : > { %2303 = vmatmul.f32.gmra.mxu1 %v1863_v29  ;;  %v1864_v33 = vsub.f32 %v1862_v61, %v1863_v29  ;;  %v1414_v61 = vmul.f32 1.442695, %v5743_v39  ;;  %3368 = vpow2.f32 %v1436_v18  ;;  %v1434_v29 = vmul.f32 1.442695, %v5744_v44 }
 0x337   : > { %v5039_v23 = vpop.eup %3360 }
 0x338   : > { %1697 = vperm.xlu2 %3339, %v5037_v43   ;;  %v1865_v6 = vand.u32 4294901760, %v1864_v33  ;;  %v5044_v32 = vand.u32 4294901760, %v5039_v23  ;;  %v5054_v42 = vpop.eup %3362  ;;  %3370 = vpow2.f32 %v1414_v61 }
 0x339   : > { %v5063_v55 = vpop.eup %3364  ;;  %3372 = vpow2.f32 %v1428_v60 }
 0x33a   : > { %1866 = vmatmul.f32.gmra.mxu2 %v1865_v6  ;;  %2067 = vmatmul.f32.gmra.mxu3 %v5044_v32  ;;  %v1870_v12 = vsub.f32 %v5039_v23, %v5044_v32  ;;  %3374 = vpow2.f32 %v1434_v29  ;;  %v5749_v29 = vld [vmem:[#allocation47_spill] sm:$0xff] }
 0x33b   : > { %v5068_v47 = vpop.eup %3366 }
 0x33c   : > { %2188 = vmatmul.f32.gmra.mxu0 %v1870_v12  ;;  %v1871_v17 = vand.u32 4294901760, %v1870_v12  ;;  %v5074_v10 = vpop.eup %3368 }
 0x33e   : > { %2309 = vmatmul.f32.gmra.mxu1 %v1871_v17  ;;  %v1872_v8 = vsub.f32 %v1870_v12, %v1871_v17  ;;  %v5080_v20 = vpop.eup %3370  ;;  %v5746_v12 = vld [vmem:[#allocation45_spill] sm:$0xff] }
 0x33f   : > { %v5086_v9 = vpop.eup %3372 }
 0x340   : > { %1707 = vperm.xlu2 %3339, %v5054_v42   ;;  %v1873_v25 = vand.u32 4294901760, %v1872_v8  ;;  %v5090_v34 = vpop.eup %3374  ;;  %v1492_v22 = vpop.permute.xlu0 %1491 }
 0x341   : > { %1378 = vmax.xlane.f32.xlu1 %v5057_v7  ;;  %v1533_v33 = vsub.f32 %v5745_v4, %v1492_v22 }
 0x342   : > { %1874 = vmatmul.f32.gmra.mxu2 %v1873_v25 }
 0x343   : > { %v1558_v6 = vmul.f32 1.442695, %v1533_v33 }
 0x348   : > { %1717 = vperm.xlu2 %3339, %v5063_v55   ;;  %v1497_v56 = vpop.permute.xlu0 %1496 }
 0x349   : > { %v1534_v45 = vsub.f32 %v5747_v28, %v1497_v56 }
 0x34b   : > { %v1560_v48 = vmul.f32 1.442695, %v1534_v45 }
 0x350   : > { %1732 = vperm.xlu2 %3339, %v5068_v47   ;;  %v1502_v14 = vpop.permute.xlu0 %1501 }
 0x351   : > { %v1535_v16 = vsub.f32 %v5748_v31, %v1502_v14 }
 0x353   : > { %v1562_v19 = vmul.f32 1.442695, %v1535_v16 }
 0x358   : > { %1747 = vperm.xlu2 %3339, %v5074_v10  }
 0x35a   : > { %1692 = vperm.xlu1 %3341, %v5080_v20  }
 0x362   : > { %1727 = vperm.xlu1 %3341, %v5086_v9  }
 0x365   : > { %v1377_v24 = vpop.xlane.xlu2 %1376 }
 0x366   : > { %v1394_v11 = vmax.f32 %v1346_v3, %v1377_v24 }
 0x368   : > { %v1410_v52 = vsub.f32 %v1346_v3, %v1394_v11  ;;  %2633 = vst.msk [vmem:[#allocation2 + $0x70] sm:$0xff] %vm1652_vm13, %v1394_v11  ;;  %1516 = vperm.xlu0 %3340, %v1394_v11  }
 0x36a   : > { %v1440_v27 = vmul.f32 1.442695, %v1410_v52  ;;  %1742 = vperm.xlu1 %3341, %v5090_v34  }
 0x36c   : > { %3376 = vpow2.f32 %v1440_v27 }
 0x36d   : > { %3378 = vpow2.f32 %v1558_v6  ;;  %v5750_v6 = vld [vmem:[#allocation49_spill] sm:$0xff] }
 0x372   : > { %v5093_v13 = vpop.eup %3376 }
 0x373   : > { %1757 = vperm.xlu1 %3341, %v5093_v13   ;;  %v5099_v8 = vpop.eup %3378 }
 0x374   : > { %v5108_v41 = vand.u32 4294901760, %v5099_v8 }
 0x376   : > { %v1886_v61 = vsub.f32 %v5099_v8, %v5108_v41 }
 0x378   : > { %v1887_v11 = vand.u32 4294901760, %v1886_v61 }
 0x37a   : > { %v1888_v4 = vsub.f32 %v1886_v61, %v1887_v11 }
 0x389   : > { %v1487_v38 = vpop.permute.xlu1 %1486 }
 0x38a   : > { %v1532_v17 = vsub.f32 %v5746_v12, %v1487_v38  ;;  %v1512_v22 = vpop.permute.xlu2 %1511 }
 0x38b   : > { %v1537_v38 = vsub.f32 %v5750_v6, %v1512_v22 }
 0x38c   : > { %v1556_v35 = vmul.f32 1.442695, %v1532_v17 }
 0x38d   : > { %v1566_v28 = vmul.f32 1.442695, %v1537_v38  ;;  %v5755_v38 = vld [vmem:[#allocation38_spill] sm:$0xff] }
 0x38e   : > { %3380 = vpow2.f32 %v1556_v35 }
 0x38f   : > { %3382 = vpow2.f32 %v1560_v48 }
 0x390   : > { %3384 = vpow2.f32 %v1562_v19 }
 0x392   : > { %v1507_v62 = vpop.permute.xlu0 %1506 }
 0x393   : > { %v1536_v3 = vsub.f32 %v5749_v29, %v1507_v62  ;;  %v1347_v62 = vld [vmem:[#allocation2 + $0x78] sm:$0xff] }
 0x394   : > { %v5101_v25 = vpop.eup %3380 }
 0x395   : > { %v5105_v36 = vand.u32 4294901760, %v5101_v25  ;;  %v3383_v60 = vpop.eup %3382  ;;  %v1564_v27 = vmul.f32 1.442695, %v1536_v3 }
 0x396   : > { %v5117_v52 = vand.u32 4294901760, %v3383_v60  ;;  %v5121_v56 = vpop.eup %3384 }
 0x397   : > { %2071 = vmatmul.f32.gmra.mxu3 %v5105_v36  ;;  %v1878_v18 = vsub.f32 %v5101_v25, %v5105_v36  ;;  %3386 = vpow2.f32 %v1564_v27  ;;  %v5126_v17 = vand.u32 4294901760, %v5121_v56 }
 0x398   : > { %v1894_v33 = vsub.f32 %v3383_v60, %v5117_v52  ;;  %3388 = vpow2.f32 %v1566_v28 }
 0x399   : > { %2193 = vmatmul.f32.gmra.mxu0 %v1878_v18  ;;  %v1879_v39 = vand.u32 4294901760, %v1878_v18  ;;  %v1902_v35 = vsub.f32 %v5121_v56, %v5126_v17 }
 0x39a   : > { %v1895_v12 = vand.u32 4294901760, %v1894_v33 }
 0x39b   : > { %2315 = vmatmul.f32.gmra.mxu1 %v1879_v39  ;;  %v1880_v44 = vsub.f32 %v1878_v18, %v1879_v39  ;;  %v1903_v14 = vand.u32 4294901760, %v1902_v35  ;;  %v5751_v39 = vld [vmem:[#allocation33_spill] sm:$0xff] }
 0x39c   : > { %v1896_v45 = vsub.f32 %v1894_v33, %v1895_v12 }
 0x39d   : > { %1606 = vadd.xlane.f32.xlu1 %v4927_v2  ;;  %v1881_v24 = vand.u32 4294901760, %v1880_v44  ;;  %v1889_v2 = vand.u32 4294901760, %v1888_v4  ;;  %v5131_v48 = vpop.eup %3386  ;;  %v1904_v16 = vsub.f32 %v1902_v35, %v1903_v14 }
 0x39e   : > { %v5135_v31 = vand.u32 4294901760, %v5131_v48  ;;  %v3389_v19 = vpop.eup %3388 }
 0x39f   : > { %1882 = vmatmul.f32.gmra.mxu2 %v1881_v24  ;;  %2075 = vmatmul.f32.gmra.mxu3 %v5108_v41  ;;  %v1905_v24 = vand.u32 4294901760, %v1904_v16  ;;  %v5143_v27 = vand.u32 4294901760, %v3389_v19  ;;  %v5757_v16 = vld [vmem:[#allocation41_spill] sm:$0xff] }
 0x3a0   : > { %v1910_v18 = vsub.f32 %v5131_v48, %v5135_v31 }
 0x3a1   : > { %2198 = vmatmul.f32.gmra.mxu0 %v1886_v61  ;;  %v5752_v61 = vld [vmem:[#allocation34_spill] sm:$0xff]  ;;  %v1918_v6 = vsub.f32 %v3389_v19, %v5143_v27 }
 0x3a2   : > { %v5753_v44 = vsub.f32 %v5751_v39, %v5752_v61 }
 0x3a3   : > { %2321 = vmatmul.f32.gmra.mxu1 %v1887_v11  ;;  %v1911_v11 = vand.u32 4294901760, %v1910_v18 }
 0x3a5   : > { %1612 = vadd.xlane.f32.xlu1 %v4973_v5  ;;  %v1897_v5 = vand.u32 4294901760, %v1896_v45  ;;  %v1919_v45 = vand.u32 4294901760, %v1918_v6 }
 0x3a7   : > { %1890 = vmatmul.f32.gmra.mxu2 %v1889_v2  ;;  %2079 = vmatmul.f32.gmra.mxu3 %v5117_v52 }
 0x3a9   : > { %2203 = vmatmul.f32.gmra.mxu0 %v1894_v33  ;;  %v1912_v33 = vsub.f32 %v1910_v18, %v1911_v11 }
 0x3ab   : > { %2327 = vmatmul.f32.gmra.mxu1 %v1895_v12  ;;  %v1913_v28 = vand.u32 4294901760, %v1912_v33  ;;  %v5175_v33 = vpop.f32.mrf.mxu2 }
 0x3ad   : > { %1618 = vadd.xlane.f32.xlu1 %v5039_v23  ;;  %v1412_v23 = vmul.f32 1.442695, %v5753_v44  ;;  %v5760_v44 = vld [vmem:[#allocation46_spill] sm:$0xff] }
 0x3af   : > { %1898 = vmatmul.f32.gmra.mxu2 %v1897_v5  ;;  %2083 = vmatmul.f32.gmra.mxu3 %v5126_v17  ;;  %3390 = vpow2.f32 %v1412_v23  ;;  %v5761_v23 = vsub.f32 %v5760_v44, %v4619_v49 }
 0x3b1   : > { %2208 = vmatmul.f32.gmra.mxu0 %v1902_v35 }
 0x3b3   : > { %2333 = vmatmul.f32.gmra.mxu1 %v1903_v14  ;;  %v1920_v14 = vsub.f32 %v1918_v6, %v1919_v45 }
 0x3b4   : > { %v1379_v29 = vpop.xlane.xlu1 %1378 }
 0x3b5   : > { %v1395_v3 = vmax.f32 %v1347_v62, %v1379_v29  ;;  %1624 = vadd.xlane.f32.xlu1 %v3383_v60  ;;  %v5754_v60 = vld [vmem:[#allocation37_spill] sm:$0xff]  ;;  %v5151_v35 = vpop.eup %3390  ;;  %v1921_v39 = vand.u32 4294901760, %v1920_v14  ;;  %v1426_v29 = vmul.f32 1.442695, %v5761_v23 }
 0x3b6   : > { %v5756_v2 = vsub.f32 %v5754_v60, %v5755_v38 }
 0x3b7   : > { %v1411_v22 = vsub.f32 %v1347_v62, %v1395_v3  ;;  %2634 = vst.msk [vmem:[#allocation2 + $0x78] sm:$0xff] %vm1652_vm13, %v1395_v3  ;;  %1906 = vmatmul.f32.gmra.mxu2 %v1905_v24  ;;  %2087 = vmatmul.f32.gmra.mxu3 %v5135_v31 }
 0x3b8   : > { %1521 = vperm.xlu0 %3340, %v1395_v3   ;;  %v1418_v12 = vmul.f32 1.442695, %v5756_v2  ;;  %v5167_v3 = vpop.f32.mrf.mxu3  ;;  %v1438_v2 = vmul.f32 1.442695, %v1409_v1 }
 0x3b9   : > { %v1442_v4 = vmul.f32 1.442695, %v1411_v22  ;;  %2213 = vmatmul.f32.gmra.mxu0 %v1910_v18  ;;  %v5758_v18 = vld [vmem:[#allocation42_spill] sm:$0xff] }
 0x3bb   : > { %3392 = vpow2.f32 %v1442_v4  ;;  %2339 = vmatmul.f32.gmra.mxu1 %v1911_v11  ;;  %v5762_v11 = vld [vmem:[#allocation50_spill] sm:$0xff] }
 0x3bc   : > { %3394 = vpow2.f32 %v1418_v12  ;;  %v5763_v22 = vsub.f32 %v5762_v11, %v4784_v50 }
 0x3bd   : > { %1630 = vadd.xlane.f32.xlu1 %v3389_v19  ;;  %v5759_v19 = vsub.f32 %v5757_v16, %v5758_v18 }
 0x3be   : > { %v1432_v4 = vmul.f32 1.442695, %v5763_v22 }
 0x3bf   : > { %1914 = vmatmul.f32.gmra.mxu2 %v1913_v28  ;;  %2091 = vmatmul.f32.gmra.mxu3 %v5143_v27  ;;  %v1422_v62 = vmul.f32 1.442695, %v5759_v19 }
 0x3c0   : > { %1687 = vperm.xlu0 %3340, %v5151_v35   ;;  %v5177_v60 = vpop.f32.mrf.mxu3 }
 0x3c1   : > { %v5155_v5 = vpop.eup %3392  ;;  %2218 = vmatmul.f32.gmra.mxu0 %v1918_v6  ;;  %3396 = vpow2.f32 %v1422_v62 }
 0x3c2   : > { %1762 = vperm.xlu2 %3339, %v5155_v5   ;;  %v5161_v61 = vpop.eup %3394  ;;  %3398 = vpow2.f32 %v1426_v29 }
 0x3c3   : > { %2345 = vmatmul.f32.gmra.mxu1 %v1919_v45  ;;  %3400 = vpow2.f32 %v1432_v4  ;;  %v5183_v45 = vpop.f32.mrf.mxu2 }
 0x3c7   : > { %1922 = vmatmul.f32.gmra.mxu2 %v1921_v39  ;;  %v5169_v24 = vpop.eup %3396 }
 0x3c8   : > { %1702 = vperm.xlu0 %3340, %v5161_v61   ;;  %v3399_v6 = vpop.eup %3398  ;;  %v5185_v50 = vpop.f32.mrf.mxu3 }
 0x3c9   : > { %v3401_v28 = vpop.eup %3400 }
 0x3cb   : > { %v5194_v37 = vpop.f32.mrf.mxu2 }
 0x3cc   : > { %v5196_v26 = vpop.permute.xlu1 %1692 }
 0x3d0   : > { %1712 = vperm.xlu0 %3340, %v5169_v24   ;;  %v5199_v19 = vpop.f32.mrf.mxu3 }
 0x3d3   : > { %v5201_v44 = vpop.f32.mrf.mxu2 }
 0x3d4   : > { %v5204_v23 = vpop.permute.xlu1 %1727 }
 0x3d5   : > { %5764 = vst [vmem:[#allocation39_spill] sm:$0xff] %v5204_v23 }
 0x3d8   : > { %1722 = vperm.xlu0 %3340, %v3399_v6   ;;  %v5206_v29 = vpop.f32.mrf.mxu3 }
 0x3da   : > { %v1517_v49 = vpop.permute.xlu0 %1516 }
 0x3db   : > { %v1538_v38 = vsub.f32 %v4948_v30, %v1517_v49  ;;  %v5209_v11 = vpop.f32.mrf.mxu2 }
 0x3dd   : > { %v1568_v12 = vmul.f32 1.442695, %v1538_v38 }
 0x3df   : > { %3402 = vpow2.f32 %v1568_v12 }
 0x3e0   : > { %1737 = vperm.xlu0 %3340, %v3401_v28   ;;  %3404 = vpow2.f32 %v1438_v2  ;;  %v5211_v22 = vpop.f32.mrf.mxu3 }
 0x3e3   : > { %v5216_v4 = vpop.f32.mrf.mxu2 }
 0x3e5   : > { %v3403_v14 = vpop.eup %3402 }
 0x3e6   : > { %v5187_v16 = vand.u32 4294901760, %v3403_v14  ;;  %v5189_v18 = vpop.eup %3404 }
 0x3e8   : > { %1752 = vperm.xlu0 %3340, %v5189_v18   ;;  %2095 = vmatmul.f32.gmra.mxu3 %v5187_v16  ;;  %v1926_v30 = vsub.f32 %v3403_v14, %v5187_v16  ;;  %v5218_v49 = vpop.f32.mrf.mxu3 }
 0x3ea   : > { %2223 = vmatmul.f32.gmra.mxu0 %v1926_v30  ;;  %v1927_v1 = vand.u32 4294901760, %v1926_v30 }
 0x3eb   : > { %1608 = vadd.xlane.f32.xlu2 %v4956_v58  ;;  %v5213_v58 = vpop.permute.xlu1 %1742  ;;  %v5223_v12 = vpop.f32.mrf.mxu2 }
 0x3ec   : > { %2351 = vmatmul.f32.gmra.mxu1 %v1927_v1  ;;  %v1928_v62 = vsub.f32 %v1926_v30, %v1927_v1  ;;  %5765 = vst [vmem:[#allocation40_spill] sm:$0xff] %v5213_v58 }
 0x3ee   : > { %v1929_v39 = vand.u32 4294901760, %v1928_v62 }
 0x3f0   : > { %1930 = vmatmul.f32.gmra.mxu2 %v1929_v39  ;;  %v5225_v1 = vpop.f32.mrf.mxu3 }
 0x3f3   : > { %1614 = vadd.xlane.f32.xlu2 %v5001_v54  ;;  %v5220_v38 = vpop.permute.xlu1 %1757  ;;  %v1573_v54 = vld [vmem:[#allocation3 + $0x8] sm:$0xff] }
 0x3f4   : > { %5766 = vst [vmem:[#allocation43_spill] sm:$0xff] %v5220_v38  ;;  %v1589_v2 = vmul.f32 %v5080_v20, %v1573_v54  ;;  %v5230_v38 = vpop.f32.mrf.mxu2 }
 0x3fb   : > { %1620 = vadd.xlane.f32.xlu2 %v5101_v25 }
 0x403   : > { %1626 = vadd.xlane.f32.xlu2 %v5121_v56  ;;  %v1576_v56 = vld [vmem:[#allocation3 + $0x20] sm:$0xff] }
 0x404   : > { %v1592_v62 = vmul.f32 %v5054_v42, %v1576_v56  ;;  %v1582_v56 = vld [vmem:[#allocation3 + $0x50] sm:$0xff] }
 0x40b   : > { %1632 = vadd.xlane.f32.xlu2 %v3403_v14  ;;  %v1579_v14 = vld [vmem:[#allocation3 + $0x38] sm:$0xff] }
 0x40c   : > { %v1595_v54 = vmul.f32 %v3399_v6, %v1579_v14 }
 0x410   : > { %v1607_v25 = vpop.xlane.xlu1 %1606 }
 0x411   : > { %v1637_v30 = vadd.f32 %v1607_v25, %v1589_v2 }
 0x412   : > { %1604 = vadd.xlane.f32.xlu0 %v4932_v59 }
 0x413   : > { %1654 = vst.msk [vmem:[#allocation3 + $0x8] sm:$0xff] %vm1652_vm13, %v1637_v30 }
 0x418   : > { %v1613_v39 = vpop.xlane.xlu1 %1612 }
 0x419   : > { %v1640_v58 = vadd.f32 %v1613_v39, %v1592_v62  ;;  %v5238_v62 = vpop.permute.xlu2 %1697  ;;  %v1598_v39 = vmul.f32 %v3401_v28, %v1582_v56 }
 0x41a   : > { %1610 = vadd.xlane.f32.xlu0 %v4965_v46  ;;  %v2072_v20 = vpop.f32.mrf.mxu3 }
 0x41b   : > { %1657 = vst.msk [vmem:[#allocation3 + $0x20] sm:$0xff] %vm1652_vm13, %v1640_v58 }
 0x420   : > { %v1619_v2 = vpop.xlane.xlu1 %1618 }
 0x421   : > { %v1643_v25 = vadd.f32 %v1619_v2, %v1595_v54  ;;  %v1585_v2 = vld [vmem:[#allocation3 + $0x68] sm:$0xff] }
 0x422   : > { %1616 = vadd.xlane.f32.xlu0 %v5020_v21  ;;  %v1883_v59 = vpop.f32.mrf.mxu2  ;;  %v2076_v30 = vpop.f32.mrf.mxu3 }
 0x423   : > { %1660 = vst.msk [vmem:[#allocation3 + $0x38] sm:$0xff] %vm1652_vm13, %v1643_v25  ;;  %v5236_v42 = vadd.f32 %v2072_v20, %v1883_v59  ;;  %v1601_v25 = vmul.f32 %v5189_v18, %v1585_v2  ;;  %v5246_v59 = vpop.permute.xlu2 %1707 }
 0x428   : > { %v1625_v46 = vpop.xlane.xlu1 %1624 }
 0x429   : > { %v1646_v23 = vadd.f32 %v1625_v46, %v1598_v39 }
 0x42a   : > { %1622 = vadd.xlane.f32.xlu0 %v5099_v8  ;;  %v1522_v58 = vpop.permute.xlu0 %1521  ;;  %v1891_v6 = vpop.f32.mrf.mxu2 }
 0x42b   : > { %1663 = vst.msk [vmem:[#allocation3 + $0x50] sm:$0xff] %vm1652_vm13, %v1646_v23  ;;  %v1539_v21 = vsub.f32 %v5057_v7, %v1522_v58  ;;  %v5243_v14 = vadd.f32 %v2076_v30, %v1891_v6  ;;  %v2080_v54 = vpop.f32.mrf.mxu3  ;;  %v5256_v18 = vpop.permute.xlu2 %1717 }
 0x42d   : > { %v1570_v20 = vmul.f32 1.442695, %v1539_v21 }
 0x42f   : > { %3406 = vpow2.f32 %v1570_v20 }
 0x430   : > { %v1631_v28 = vpop.xlane.xlu1 %1630 }
 0x431   : > { %v1649_v56 = vadd.f32 %v1631_v28, %v1601_v25 }
 0x432   : > { %1628 = vadd.xlane.f32.xlu0 %v5131_v48  ;;  %v1899_v8 = vpop.f32.mrf.mxu2 }
 0x433   : > { %1666 = vst.msk [vmem:[#allocation3 + $0x68] sm:$0xff] %vm1652_vm13, %v1649_v56  ;;  %v5250_v23 = vadd.f32 %v2080_v54, %v1899_v8  ;;  %v2084_v30 = vpop.f32.mrf.mxu3  ;;  %v5263_v28 = vpop.permute.xlu2 %1732 }
 0x435   : > { %v3407_v7 = vpop.eup %3406 }
 0x436   : > { %v5252_v39 = vand.u32 4294901760, %v3407_v7 }
 0x438   : > { %2099 = vmatmul.f32.gmra.mxu3 %v5252_v39  ;;  %v1934_v46 = vsub.f32 %v3407_v7, %v5252_v39 }
 0x43a   : > { %1634 = vadd.xlane.f32.xlu0 %v3407_v7  ;;  %2228 = vmatmul.f32.gmra.mxu0 %v1934_v46  ;;  %v1907_v58 = vpop.f32.mrf.mxu2  ;;  %v1935_v6 = vand.u32 4294901760, %v1934_v46  ;;  %v5267_v7 = vpop.permute.xlu0 %1687 }
 0x43b   : > { %v5258_v48 = vadd.f32 %v2084_v30, %v1907_v58  ;;  %v2088_v2 = vpop.f32.mrf.mxu3 }
 0x43c   : > { %2357 = vmatmul.f32.gmra.mxu1 %v1935_v6  ;;  %v1936_v21 = vsub.f32 %v1934_v46, %v1935_v6  ;;  %v5271_v46 = vpop.permute.xlu2 %1747 }
 0x43e   : > { %v1937_v54 = vand.u32 4294901760, %v1936_v21 }
 0x440   : > { %1938 = vmatmul.f32.gmra.mxu2 %v1937_v54  ;;  %2523 = vmatmul.f32.vlgmr.msra.gmra.mxu3 %v4938_v15 }
 0x442   : > { %v1915_v20 = vpop.f32.mrf.mxu2  ;;  %v5275_v58 = vpop.permute.xlu0 %1702 }
 0x443   : > { %v5261_v25 = vadd.f32 %v2088_v2, %v1915_v20  ;;  %v2092_v56 = vpop.f32.mrf.mxu3 }
 0x444   : > { %v5277_v6 = vpop.permute.xlu2 %1762 }
 0x448   : > { %2426 = vmatmul.f32.vlgmr.msra.gmra.mxu2 %v4938_v15  ;;  %2527 = vmatmul.f32.gmra.mxu3 %v4942_v57  ;;  %v1574_v15 = vld [vmem:[#allocation3 + $0x10] sm:$0xff] }
 0x449   : > { %v1590_v21 = vmul.f32 %v5037_v43, %v1574_v15  ;;  %v1580_v15 = vld [vmem:[#allocation3 + $0x40] sm:$0xff] }
 0x44a   : > { %v1923_v8 = vpop.f32.mrf.mxu2  ;;  %v5282_v2 = vpop.permute.xlu0 %1712 }
 0x44b   : > { %v5269_v30 = vadd.f32 %v2092_v56, %v1923_v8 }
 0x450   : > { %2430 = vmatmul.f32.gmra.mxu2 %v4942_v57  ;;  %2531 = vmatmul.f32.gmra.mxu3 %v4959_v51  ;;  %v1577_v57 = vld [vmem:[#allocation3 + $0x28] sm:$0xff] }
 0x451   : > { %v1593_v56 = vmul.f32 %v5169_v24, %v1577_v57  ;;  %v1583_v24 = vld [vmem:[#allocation3 + $0x58] sm:$0xff] }
 0x452   : > { %v5290_v43 = vpop.permute.xlu0 %1722 }
 0x458   : > { %2434 = vmatmul.f32.gmra.mxu2 %v4959_v51  ;;  %2535 = vmatmul.f32.gmra.mxu3 %v4968_v63 }
 0x45e   : > { %v1609_v54 = vpop.xlane.xlu2 %1608 }
 0x45f   : > { %v1638_v20 = vadd.f32 %v1609_v54, %v1590_v21 }
 0x460   : > { %2438 = vmatmul.f32.gmra.mxu2 %v4968_v63  ;;  %2539 = vmatmul.f32.gmra.mxu3 %v4976_v53  ;;  %v1596_v63 = vmul.f32 %v5086_v9, %v1580_v15  ;;  %v1586_v9 = vld [vmem:[#allocation3 + $0x70] sm:$0xff] }
 0x461   : > { %1655 = vst.msk [vmem:[#allocation3 + $0x10] sm:$0xff] %vm1652_vm13, %v1638_v20  ;;  %v5297_v20 = vpop.permute.xlu0 %1737 }
 0x466   : > { %v1615_v8 = vpop.xlane.xlu2 %1614 }
 0x467   : > { %v1641_v51 = vadd.f32 %v1615_v8, %v1593_v56 }
 0x468   : > { %2442 = vmatmul.f32.gmra.mxu2 %v4976_v53  ;;  %2543 = vmatmul.f32.gmra.mxu3 %v5006_v0  ;;  %v1599_v53 = vmul.f32 %v5090_v34, %v1583_v24  ;;  %v1572_v34 = vld [vmem:[#allocation3] sm:$0xff] }
 0x469   : > { %1658 = vst.msk [vmem:[#allocation3 + $0x28] sm:$0xff] %vm1652_vm13, %v1641_v51  ;;  %v5303_v8 = vpop.permute.xlu0 %1752 }
 0x46e   : > { %v1621_v21 = vpop.xlane.xlu2 %1620 }
 0x46f   : > { %v1644_v54 = vadd.f32 %v1621_v21, %v1596_v63 }
 0x470   : > { %2446 = vmatmul.f32.gmra.mxu2 %v5006_v0  ;;  %2547 = vmatmul.f32.gmra.mxu3 %v5028_v40  ;;  %v1602_v0 = vmul.f32 %v5093_v13, %v1586_v9  ;;  %v1575_v13 = vld [vmem:[#allocation3 + $0x18] sm:$0xff] }
 0x471   : > { %1661 = vst.msk [vmem:[#allocation3 + $0x40] sm:$0xff] %vm1652_vm13, %v1644_v54  ;;  %v1591_v54 = vmul.f32 %v5161_v61, %v1575_v13 }
 0x476   : > { %v1627_v57 = vpop.xlane.xlu2 %1626 }
 0x477   : > { %v1647_v56 = vadd.f32 %v1627_v57, %v1599_v53 }
 0x478   : > { %2450 = vmatmul.f32.gmra.mxu2 %v5028_v40  ;;  %2551 = vmatmul.f32.gmra.mxu3 %v5044_v32  ;;  %v1588_v40 = vmul.f32 %v5151_v35, %v1572_v34  ;;  %v1578_v35 = vld [vmem:[#allocation3 + $0x30] sm:$0xff] }
 0x479   : > { %1664 = vst.msk [vmem:[#allocation3 + $0x58] sm:$0xff] %vm1652_vm13, %v1647_v56  ;;  %v1594_v53 = vmul.f32 %v5063_v55, %v1578_v35  ;;  %v1584_v55 = vld [vmem:[#allocation3 + $0x60] sm:$0xff] }
 0x47e   : > { %v1633_v51 = vpop.xlane.xlu2 %1632 }
 0x47f   : > { %v1650_v15 = vadd.f32 %v1633_v51, %v1602_v0 }
 0x480   : > { %2454 = vmatmul.f32.gmra.mxu2 %v5044_v32  ;;  %2555 = vmatmul.f32.gmra.mxu3 %v5105_v36 }
 0x481   : > { %1667 = vst.msk [vmem:[#allocation3 + $0x70] sm:$0xff] %vm1652_vm13, %v1650_v15 }
 0x485   : > { %v1605_v63 = vpop.xlane.xlu0 %1604 }
 0x486   : > { %v1636_v21 = vadd.f32 %v1605_v63, %v1588_v40  ;;  %v2154_v40 = vpop.f32.mrf.mxu0 }
 0x488   : > { %1653 = vst.msk [vmem:[#allocation3] sm:$0xff] %vm1652_vm13, %v1636_v21  ;;  %2458 = vmatmul.f32.gmra.mxu2 %v5105_v36  ;;  %2559 = vmatmul.f32.gmra.mxu3 %v5108_v41  ;;  %v1581_v36 = vld [vmem:[#allocation3 + $0x48] sm:$0xff] }
 0x489   : > { %v1597_v61 = vmul.f32 %v5068_v47, %v1581_v36  ;;  %v1587_v47 = vld [vmem:[#allocation3 + $0x78] sm:$0xff]  ;;  %v1669_v36 = vld [vmem:[#allocation4 + $0x30] sm:$0xff] }
 0x48d   : > { %v1611_v24 = vpop.xlane.xlu0 %1610 }
 0x48e   : > { %v1639_v32 = vadd.f32 %v1611_v24, %v1591_v54  ;;  %v2159_v21 = vpop.f32.mrf.mxu0  ;;  %v2041_v54 = vadd.f32 %v5167_v3, %v5175_v33 }
 0x490   : > { %1656 = vst.msk [vmem:[#allocation3 + $0x18] sm:$0xff] %vm1652_vm13, %v1639_v32  ;;  %2462 = vmatmul.f32.gmra.mxu2 %v5108_v41  ;;  %2563 = vmatmul.f32.gmra.mxu3 %v5117_v52  ;;  %v1600_v41 = vmul.f32 %v5074_v10, %v1584_v55  ;;  %v2268_v10 = vpop.f32.mrf.mxu1 }
 0x495   : > { %v1617_v57 = vpop.xlane.xlu0 %1616 }
 0x496   : > { %v1642_v56 = vadd.f32 %v1617_v57, %v1594_v53  ;;  %v2155_v53 = vadd.f32 %v2154_v40, %v2041_v54 }
 0x498   : > { %1659 = vst.msk [vmem:[#allocation3 + $0x30] sm:$0xff] %vm1652_vm13, %v1642_v56  ;;  %2466 = vmatmul.f32.gmra.mxu2 %v5117_v52  ;;  %2567 = vmatmul.f32.gmra.mxu3 %v5126_v17  ;;  %v1603_v52 = vmul.f32 %v5155_v5, %v1587_v47  ;;  %v2274_v13 = vpop.f32.mrf.mxu1  ;;  %v2269_v56 = vadd.f32 %v2268_v10, %v2155_v53 }
 0x49d   : > { %v1623_v9 = vpop.xlane.xlu0 %1622 }
 0x49e   : > { %v1645_v0 = vadd.f32 %v1623_v9, %v1597_v61 }
 0x4a0   : > { %1662 = vst.msk [vmem:[#allocation3 + $0x48] sm:$0xff] %vm1652_vm13, %v1645_v0  ;;  %2470 = vmatmul.f32.gmra.mxu2 %v5126_v17  ;;  %2571 = vmatmul.f32.gmra.mxu3 %v5135_v31  ;;  %v5333_v17 = vpop.f32.mrf.mxu3  ;;  %v2280_v57 = vpop.f32.mrf.mxu1 }
 0x4a5   : > { %v1629_v51 = vpop.xlane.xlu0 %1628 }
 0x4a6   : > { %v1648_v15 = vadd.f32 %v1629_v51, %v1600_v41  ;;  %v1765_v41 = vmul.f32 %v5267_v7, %v1669_v36  ;;  %v2053_v7 = vadd.f32 %v5199_v19, %v5201_v44 }
 0x4a8   : > { %1665 = vst.msk [vmem:[#allocation3 + $0x60] sm:$0xff] %vm1652_vm13, %v1648_v15  ;;  %2474 = vmatmul.f32.gmra.mxu2 %v5135_v31  ;;  %2575 = vmatmul.f32.gmra.mxu3 %v5143_v27  ;;  %v5337_v31 = vpop.f32.mrf.mxu2  ;;  %v2286_v33 = vpop.f32.mrf.mxu1  ;;  %v2049_v15 = vadd.f32 %v5185_v50, %v5194_v37 }
 0x4ad   : > { %v1635_v34 = vpop.xlane.xlu0 %1634 }
 0x4ae   : > { %v1651_v63 = vadd.f32 %v1635_v34, %v1603_v52  ;;  %v1670_v52 = vld [vmem:[#allocation4] sm:$0xff] }
 0x4af   : > { %v1766_v10 = vmul.f32 %v5196_v26, %v1670_v52  ;;  %v2057_v26 = vadd.f32 %v5206_v29, %v5209_v11 }
 0x4b0   : > { %1668 = vst.msk [vmem:[#allocation3 + $0x78] sm:$0xff] %vm1652_vm13, %v1651_v63  ;;  %2478 = vmatmul.f32.gmra.mxu2 %v5143_v27  ;;  %2579 = vmatmul.f32.gmra.mxu3 %v5187_v16  ;;  %v2164_v27 = vpop.f32.mrf.mxu0  ;;  %v2292_v54 = vpop.f32.mrf.mxu1 }
 0x4b1   : > { %v2165_v40 = vadd.f32 %v2164_v27, %v2049_v15 }
 0x4b8   : > { %2482 = vmatmul.f32.gmra.mxu2 %v5187_v16  ;;  %2583 = vmatmul.f32.gmra.mxu3 %v5252_v39  ;;  %v2045_v16 = vadd.f32 %v5177_v60, %v5183_v45  ;;  %v2169_v0 = vpop.f32.mrf.mxu0 }
 0x4bb   : > { %v2100_v5 = vpop.f32.mrf.mxu3 }
 0x4c0   : > { %2486 = vmatmul.f32.gmra.mxu2 %v5252_v39  ;;  %v2160_v39 = vadd.f32 %v2159_v21, %v2045_v16  ;;  %v2174_v63 = vpop.f32.mrf.mxu0  ;;  %v2170_v16 = vadd.f32 %v2169_v0, %v2053_v7  ;;  %v2061_v0 = vadd.f32 %v5211_v22, %v5216_v4 }
 0x4c2   : > { %v2275_v47 = vadd.f32 %v2274_v13, %v2160_v39  ;;  %v2175_v39 = vadd.f32 %v2174_v63, %v2057_v26 }
 0x4c3   : > { %v1939_v24 = vpop.f32.mrf.mxu2  ;;  %v2524_v32 = vpop.f32.mrf.mxu3 }
 0x4c4   : > { %v5342_v35 = vadd.f32 %v2100_v5, %v1939_v24  ;;  %v2281_v24 = vadd.f32 %v2280_v57, %v2165_v40  ;;  %v2293_v15 = vadd.f32 %v2292_v54, %v2175_v39 }
 0x4cb   : > { %v2427_v61 = vpop.f32.mrf.mxu2  ;;  %v2528_v9 = vpop.f32.mrf.mxu3 }
 0x4cc   : > { %v2428_v55 = vadd.f32 %v2427_v61, %v2269_v56  ;;  %v2179_v56 = vpop.f32.mrf.mxu0  ;;  %v2298_v61 = vpop.f32.mrf.mxu1 }
 0x4ce   : > { %v2525_v3 = vadd.f32 %v2524_v32, %v2428_v55  ;;  %v1671_v32 = vld [vmem:[#allocation4 + $0x58] sm:$0xff] }
 0x4cf   : > { %v1767_v53 = vmul.f32 %v5238_v62, %v1671_v32  ;;  %v1672_v55 = vld [vmem:[#allocation4 + $0x18] sm:$0xff] }
 0x4d0   : > { %v2587_v51 = vadd.f32 %v2525_v3, %v1765_v41  ;;  %v1768_v41 = vmul.f32 %v5275_v58, %v1672_v55  ;;  %v2065_v58 = vadd.f32 %v5218_v49, %v5223_v12 }
 0x4d2   : > { %2603 = vst [vmem:[#allocation4 + $0x30] sm:$0xff] %v2587_v51 }
 0x4d3   : > { %v2431_v34 = vpop.f32.mrf.mxu2  ;;  %v2532_v60 = vpop.f32.mrf.mxu3 }
 0x4d4   : > { %v2432_v45 = vadd.f32 %v2431_v34, %v2275_v47  ;;  %v2184_v51 = vpop.f32.mrf.mxu0  ;;  %v1673_v47 = vld [vmem:[#allocation4 + $0x50] sm:$0xff]  ;;  %v2304_v52 = vpop.f32.mrf.mxu1 }
 0x4d5   : > { %v1769_v34 = vmul.f32 %v5246_v59, %v1673_v47  ;;  %v2185_v7 = vadd.f32 %v2184_v51, %v2065_v58  ;;  %v2069_v59 = vadd.f32 %v5225_v1, %v5230_v38  ;;  %v1677_v51 = vld [vmem:[#allocation4 + $0x40] sm:$0xff]  ;;  %v5767_v47 = vld [vmem:[#allocation39_spill] sm:$0xff] }
 0x4d6   : > { %v2529_v5 = vadd.f32 %v2528_v9, %v2432_v45  ;;  %v2287_v9 = vadd.f32 %v2286_v33, %v2170_v16 }
 0x4d8   : > { %v2588_v21 = vadd.f32 %v2529_v5, %v1766_v10  ;;  %v1674_v5 = vld [vmem:[#allocation4 + $0x68] sm:$0xff] }
 0x4da   : > { %2604 = vst [vmem:[#allocation4] sm:$0xff] %v2588_v21 }
 0x4db   : > { %v2435_v50 = vpop.f32.mrf.mxu2  ;;  %v2536_v37 = vpop.f32.mrf.mxu3 }
 0x4dc   : > { %v2436_v13 = vadd.f32 %v2435_v50, %v2281_v24  ;;  %v2189_v63 = vpop.f32.mrf.mxu0  ;;  %v2310_v54 = vpop.f32.mrf.mxu1  ;;  %v1770_v24 = vmul.f32 %v5282_v2, %v1674_v5 }
 0x4de   : > { %v2533_v27 = vadd.f32 %v2532_v60, %v2436_v13  ;;  %v2180_v60 = vadd.f32 %v2179_v56, %v2061_v0  ;;  %v2305_v13 = vadd.f32 %v2304_v52, %v2185_v7 }
 0x4e0   : > { %v2589_v36 = vadd.f32 %v2533_v27, %v1767_v53  ;;  %v2299_v10 = vadd.f32 %v2298_v61, %v2180_v60  ;;  %v1675_v53 = vld [vmem:[#allocation4 + $0x8] sm:$0xff]  ;;  %v2190_v27 = vadd.f32 %v2189_v63, %v2069_v59 }
 0x4e1   : > { %v1771_v56 = vmul.f32 %v5256_v18, %v1675_v53  ;;  %v1680_v53 = vld [vmem:[#allocation4 + $0x38] sm:$0xff] }
 0x4e2   : > { %2605 = vst [vmem:[#allocation4 + $0x58] sm:$0xff] %v2589_v36  ;;  %v2311_v2 = vadd.f32 %v2310_v54, %v2190_v27 }
 0x4e3   : > { %v2439_v19 = vpop.f32.mrf.mxu2  ;;  %v2540_v44 = vpop.f32.mrf.mxu3 }
 0x4e4   : > { %v2440_v57 = vadd.f32 %v2439_v19, %v2287_v9  ;;  %v2316_v36 = vpop.f32.mrf.mxu1  ;;  %v1676_v9 = vld [vmem:[#allocation4 + $0x48] sm:$0xff] }
 0x4e6   : > { %v2537_v3 = vadd.f32 %v2536_v37, %v2440_v57  ;;  %v2194_v37 = vpop.f32.mrf.mxu0  ;;  %v1772_v57 = vmul.f32 %v5290_v43, %v1676_v9  ;;  %v1678_v43 = vld [vmem:[#allocation4 + $0x20] sm:$0xff] }
 0x4e7   : > { %v2195_v1 = vadd.f32 %v2194_v37, %v5236_v42  ;;  %v1774_v58 = vmul.f32 %v5263_v28, %v1678_v43  ;;  %v1681_v9 = vld [vmem:[#allocation4 + $0x60] sm:$0xff] }
 0x4e8   : > { %v2590_v62 = vadd.f32 %v2537_v3, %v1768_v41 }
 0x4e9   : > { %v2317_v18 = vadd.f32 %v2316_v36, %v2195_v1 }
 0x4ea   : > { %2606 = vst [vmem:[#allocation4 + $0x18] sm:$0xff] %v2590_v62 }
 0x4eb   : > { %v2443_v29 = vpop.f32.mrf.mxu2  ;;  %v2544_v11 = vpop.f32.mrf.mxu3 }
 0x4ec   : > { %v2444_v33 = vadd.f32 %v2443_v29, %v2293_v15  ;;  %v2322_v41 = vpop.f32.mrf.mxu1  ;;  %v1773_v29 = vmul.f32 %v5767_v47, %v1677_v51 }
 0x4ee   : > { %v2541_v45 = vadd.f32 %v2540_v44, %v2444_v33  ;;  %v2199_v38 = vpop.f32.mrf.mxu0 }
 0x4f0   : > { %v2591_v40 = vadd.f32 %v2541_v45, %v1769_v34 }
 0x4f2   : > { %2607 = vst [vmem:[#allocation4 + $0x50] sm:$0xff] %v2591_v40 }
 0x4f3   : > { %v2447_v22 = vpop.f32.mrf.mxu2  ;;  %v2548_v4 = vpop.f32.mrf.mxu3 }
 0x4f4   : > { %v2448_v21 = vadd.f32 %v2447_v22, %v2299_v10  ;;  %v2328_v60 = vpop.f32.mrf.mxu1 }
 0x4f6   : > { %v2545_v32 = vadd.f32 %v2544_v11, %v2448_v21  ;;  %v2200_v11 = vadd.f32 %v2199_v38, %v5243_v14  ;;  %v2204_v33 = vpop.f32.mrf.mxu0  ;;  %v1679_v14 = vld [vmem:[#allocation4 + $0x10] sm:$0xff] }
 0x4f7   : > { %v2205_v10 = vadd.f32 %v2204_v33, %v5250_v23  ;;  %v1775_v59 = vmul.f32 %v5297_v20, %v1679_v14 }
 0x4f8   : > { %v2592_v50 = vadd.f32 %v2545_v32, %v1770_v24  ;;  %v2323_v42 = vadd.f32 %v2322_v41, %v2200_v11 }
 0x4f9   : > { %v2329_v21 = vadd.f32 %v2328_v60, %v2205_v10 }
 0x4fa   : > { %2608 = vst [vmem:[#allocation4 + $0x68] sm:$0xff] %v2592_v50 }
 0x4fb   : > { %v2451_v49 = vpop.f32.mrf.mxu2  ;;  %v2552_v12 = vpop.f32.mrf.mxu3 }
 0x4fc   : > { %v2452_v16 = vadd.f32 %v2451_v49, %v2305_v13  ;;  %v2334_v24 = vpop.f32.mrf.mxu1 }
 0x4fe   : > { %v2549_v26 = vadd.f32 %v2548_v4, %v2452_v16  ;;  %v2209_v4 = vpop.f32.mrf.mxu0  ;;  %v5768_v16 = vld [vmem:[#allocation40_spill] sm:$0xff] }
 0x4ff   : > { %v2210_v50 = vadd.f32 %v2209_v4, %v5258_v48 }
 0x500   : > { %v2593_v61 = vadd.f32 %v2549_v26, %v1771_v56  ;;  %v1776_v56 = vmul.f32 %v5768_v16, %v1680_v53 }
 0x501   : > { %v2335_v28 = vadd.f32 %v2334_v24, %v2210_v50 }
 0x502   : > { %2609 = vst [vmem:[#allocation4 + $0x8] sm:$0xff] %v2593_v61 }
 0x503   : > { %v2455_v55 = vpop.f32.mrf.mxu2  ;;  %v2556_v19 = vpop.f32.mrf.mxu3 }
 0x504   : > { %v2456_v44 = vadd.f32 %v2455_v55, %v2311_v2  ;;  %v2340_v26 = vpop.f32.mrf.mxu1 }
 0x506   : > { %v2553_v39 = vadd.f32 %v2552_v12, %v2456_v44  ;;  %v2214_v23 = vpop.f32.mrf.mxu0  ;;  %v1777_v44 = vmul.f32 %v5271_v46, %v1681_v9 }
 0x507   : > { %v2215_v27 = vadd.f32 %v2214_v23, %v5261_v25  ;;  %v2097_v25 = vadd.f32 %v5333_v17, %v5337_v31  ;;  %v5769_v17 = vld [vmem:[#allocation43_spill] sm:$0xff] }
 0x508   : > { %v2594_v3 = vadd.f32 %v2553_v39, %v1772_v57 }
 0x509   : > { %v2341_v48 = vadd.f32 %v2340_v26, %v2215_v27 }
 0x50a   : > { %2610 = vst [vmem:[#allocation4 + $0x48] sm:$0xff] %v2594_v3 }
 0x50b   : > { %v2459_v62 = vpop.f32.mrf.mxu2  ;;  %v2560_v0 = vpop.f32.mrf.mxu3 }
 0x50c   : > { %v2460_v15 = vadd.f32 %v2459_v62, %v2317_v18  ;;  %v2346_v39 = vpop.f32.mrf.mxu1  ;;  %v1682_v18 = vld [vmem:[#allocation4 + $0x70] sm:$0xff] }
 0x50e   : > { %v2557_v52 = vadd.f32 %v2556_v19, %v2460_v15  ;;  %v2219_v19 = vpop.f32.mrf.mxu0  ;;  %v1778_v15 = vmul.f32 %v5303_v8, %v1682_v18 }
 0x50f   : > { %v2220_v38 = vadd.f32 %v2219_v19, %v5269_v30 }
 0x510   : > { %v2595_v34 = vadd.f32 %v2557_v52, %v1773_v29  ;;  %v1683_v52 = vld [vmem:[#allocation4 + $0x78] sm:$0xff] }
 0x511   : > { %v2347_v3 = vadd.f32 %v2346_v39, %v2220_v38  ;;  %v1779_v31 = vmul.f32 %v5769_v17, %v1683_v52 }
 0x512   : > { %2611 = vst [vmem:[#allocation4 + $0x40] sm:$0xff] %v2595_v34 }
 0x513   : > { %v2463_v45 = vpop.f32.mrf.mxu2  ;;  %v2564_v40 = vpop.f32.mrf.mxu3 }
 0x514   : > { %v2464_v63 = vadd.f32 %v2463_v45, %v2323_v42  ;;  %v2352_v11 = vpop.f32.mrf.mxu1 }
 0x516   : > { %v2561_v5 = vadd.f32 %v2560_v0, %v2464_v63  ;;  %v2224_v0 = vpop.f32.mrf.mxu0 }
 0x517   : > { %v2225_v47 = vadd.f32 %v2224_v0, %v2097_v25 }
 0x518   : > { %v2596_v22 = vadd.f32 %v2561_v5, %v1774_v58  ;;  %v1684_v58 = vld [vmem:[#allocation4 + $0x28] sm:$0xff] }
 0x519   : > { %v2353_v30 = vadd.f32 %v2352_v11, %v2225_v47  ;;  %v1780_v4 = vmul.f32 %v5277_v6, %v1684_v58 }
 0x51a   : > { %2612 = vst [vmem:[#allocation4 + $0x20] sm:$0xff] %v2596_v22 }
 0x51b   : > { %v2467_v54 = vpop.f32.mrf.mxu2  ;;  %v2568_v32 = vpop.f32.mrf.mxu3 }
 0x51c   : > { %v2468_v7 = vadd.f32 %v2467_v54, %v2329_v21  ;;  %v2358_v63 = vpop.f32.mrf.mxu1 }
 0x51e   : > { %v2565_v37 = vadd.f32 %v2564_v40, %v2468_v7  ;;  %v2229_v42 = vpop.f32.mrf.mxu0 }
 0x51f   : > { %v2230_v43 = vadd.f32 %v2229_v42, %v5342_v35 }
 0x520   : > { %v2597_v13 = vadd.f32 %v2565_v37, %v1775_v59 }
 0x521   : > { %v2359_v8 = vadd.f32 %v2358_v63, %v2230_v43 }
 0x522   : > { %2613 = vst [vmem:[#allocation4 + $0x10] sm:$0xff] %v2597_v13 }
 0x523   : > { %v2471_v49 = vpop.f32.mrf.mxu2  ;;  %v2572_v61 = vpop.f32.mrf.mxu3 }
 0x524   : > { %v2472_v12 = vadd.f32 %v2471_v49, %v2335_v28 }
 0x526   : > { %v2569_v36 = vadd.f32 %v2568_v32, %v2472_v12 }
 0x528   : > { %v2598_v2 = vadd.f32 %v2569_v36, %v1776_v56 }
 0x52a   : > { %2614 = vst [vmem:[#allocation4 + $0x38] sm:$0xff] %v2598_v2 }
 0x52b   : > { %v2475_v20 = vpop.f32.mrf.mxu2  ;;  %v2576_v41 = vpop.f32.mrf.mxu3 }
 0x52c   : > { %v2476_v55 = vadd.f32 %v2475_v20, %v2341_v48 }
 0x52e   : > { %v2573_v1 = vadd.f32 %v2572_v61, %v2476_v55 }
 0x530   : > { %v2599_v57 = vadd.f32 %v2573_v1, %v1777_v44 }
 0x532   : > { %2615 = vst [vmem:[#allocation4 + $0x60] sm:$0xff] %v2599_v57 }
 0x533   : > { %v2479_v51 = vpop.f32.mrf.mxu2  ;;  %v2580_v33 = vpop.f32.mrf.mxu3 }
 0x534   : > { %v2480_v62 = vadd.f32 %v2479_v51, %v2347_v3 }
 0x536   : > { %v2577_v29 = vadd.f32 %v2576_v41, %v2480_v62 }
 0x538   : > { %v2600_v46 = vadd.f32 %v2577_v29, %v1778_v15 }
 0x53a   : > { %2616 = vst [vmem:[#allocation4 + $0x70] sm:$0xff] %v2600_v46 }
 0x53b   : > { %v2483_v34 = vpop.f32.mrf.mxu2  ;;  %v2584_v22 = vpop.f32.mrf.mxu3 }
 0x53c   : > { %v2484_v60 = vadd.f32 %v2483_v34, %v2353_v30 }
 0x53e   : > { %v2581_v45 = vadd.f32 %v2580_v33, %v2484_v60 }
 0x540   : > { %v2601_v40 = vadd.f32 %v2581_v45, %v1779_v31 }
 0x542   : > { %2617 = vst [vmem:[#allocation4 + $0x78] sm:$0xff] %v2601_v40 }
 0x543   : > { %v2487_v10 = vpop.f32.mrf.mxu2 }
 0x544   : > { %v2488_v5 = vadd.f32 %v2487_v10, %v2359_v8 }
 0x546   : > { %v2585_v21 = vadd.f32 %v2584_v22, %v2488_v5 }
 0x548   : > { %v2602_v14 = vadd.f32 %v2585_v21, %v1780_v4 }
 0x54a   : > { %2618 = vst [vmem:[#allocation4 + $0x28] sm:$0xff] %v2602_v14 }
 0x54b PF: > { %s5770_s12 = sld [smem:[#allocation18_spill]] }
 0x551   : > { %p3195_p8 = scmp.ne.s32.totalorder %s5770_s12, 1 }
 0x553   : > { %2638 = sbr.rel (%p3195_p8) target bundleno = 1546 (0x60a), region = 56 }
 0x558   : > { %v2659_v54 = vld [vmem:[#allocation3 + $0x20] sm:$0xff]  ;;  %v2657_v35 = vld [vmem:[#allocation3 + $0x10] sm:$0xff]  ;;  %v3683_v24 = vmov 0   ;;  %v2660_v32 = vld [vmem:[#allocation3 + $0x28] sm:$0xff] }
 0x559   : > { %v2655_v7 = vld [vmem:[#allocation3] sm:$0xff]  ;;  %3410 = vset.pattern.permute.xlu2 %v3683_v24  ;;  %3409 = vset.pattern.permute.xlu1 %v3683_v24  ;;  %v2658_v50 = vld [vmem:[#allocation3 + $0x18] sm:$0xff]  ;;  %v2656_v6 = vld [vmem:[#allocation3 + $0x8] sm:$0xff] }
 0x55a   : > { %3408 = vset.pattern.permute.xlu0 %v3683_v24  ;;  %2693 = vperm.xlu2 %3410, %v2659_v54   ;;  %v2663_v59 = vld [vmem:[#allocation3 + $0x40] sm:$0xff]  ;;  %v2662_v37 = vld [vmem:[#allocation3 + $0x38] sm:$0xff]  ;;  %v2661_v13 = vld [vmem:[#allocation3 + $0x30] sm:$0xff] }
 0x55b   : > { %2683 = vperm.xlu1 %3409, %v2657_v35   ;;  %2673 = vperm.xlu0 %3408, %v2655_v7   ;;  %v2666_v28 = vld [vmem:[#allocation3 + $0x58] sm:$0xff]  ;;  %v2665_v53 = vld [vmem:[#allocation3 + $0x50] sm:$0xff]  ;;  %v2664_v23 = vld [vmem:[#allocation3 + $0x48] sm:$0xff] }
 0x55c   : > { %v2669_v49 = vld [vmem:[#allocation3 + $0x70] sm:$0xff]  ;;  %v2668_v12 = vld [vmem:[#allocation3 + $0x68] sm:$0xff]  ;;  %v2667_v16 = vld [vmem:[#allocation3 + $0x60] sm:$0xff] }
 0x55d   : > { %v2670_v56 = vld [vmem:[#allocation3 + $0x78] sm:$0xff]  ;;  %v2643_v38 = vld [vmem:[#allocation4 + $0x50] sm:$0xff]  ;;  %v2644_v29 = vld [vmem:[#allocation4 + $0x68] sm:$0xff] }
 0x55e   : > { %v2647_v58 = vld [vmem:[#allocation4 + $0x40] sm:$0xff] }
 0x562   : > { %2698 = vperm.xlu2 %3410, %v2660_v32  }
 0x563   : > { %2688 = vperm.xlu1 %3409, %v2658_v50   ;;  %2678 = vperm.xlu0 %3408, %v2656_v6  }
 0x56a   : > { %2713 = vperm.xlu2 %3410, %v2663_v59  }
 0x56b   : > { %2708 = vperm.xlu1 %3409, %v2662_v37   ;;  %2703 = vperm.xlu0 %3408, %v2661_v13  }
 0x572   : > { %2728 = vperm.xlu2 %3410, %v2666_v28  }
 0x573   : > { %2723 = vperm.xlu1 %3409, %v2665_v53   ;;  %2718 = vperm.xlu0 %3408, %v2664_v23  }
 0x57a   : > { %2743 = vperm.xlu2 %3410, %v2669_v49  }
 0x57b   : > { %2738 = vperm.xlu1 %3409, %v2668_v12   ;;  %2733 = vperm.xlu0 %3408, %v2667_v16  }
 0x583   : > { %2748 = vperm.xlu0 %3408, %v2670_v56  }
 0x5b4   : > { %v2694_v27 = vpop.permute.xlu2 %2693 }
 0x5b5   : > { %3411 = vrcp.f32 %v2694_v27  ;;  %v2822_v2 = vand.u32 2147483648, %v2694_v27  ;;  %vm2816_vm3 = vweird.f32 %v2694_v27  ;;  %v2820_v9 = vand.u32 2147483647, %v2694_v27 }
 0x5b7   : > { %v2823_v55 = vor.u32 1.1754944e-38, %v2822_v2  ;;  %vm2821_vm6 = vcmp.eq.f32.partialorder %v2820_v9, 8.507059e+37 }
 0x5bb   : > { %v3412_v36 = vpop.eup %3411 }
 0x5bc   : > { %v2812_v26 = vmul.f32 %v3412_v36, %v2694_v27  ;;  %v2699_v61 = vpop.permute.xlu2 %2698  ;;  %vm2817_vm4 = vweird.f32 %v3412_v36 }
 0x5bd   : > { %3413 = vrcp.f32 %v2699_v61  ;;  %vm2818_vm5 = vmor %vm2816_vm3, %vm2817_vm4  ;;  %vm2831_vm7 = vweird.f32 %v2699_v61  ;;  %v2837_v25 = vand.u32 2147483648, %v2699_v61  ;;  %v2835_v51 = vand.u32 2147483647, %v2699_v61 }
 0x5be   : > { %v2813_v48 = vsub.f32 1.0, %v2812_v26 }
 0x5bf   : > { %v2838_v0 = vor.u32 1.1754944e-38, %v2837_v25  ;;  %vm2836_vm10 = vcmp.eq.f32.partialorder %v2835_v51, 8.507059e+37 }
 0x5c0   : > { %v2814_v20 = vmul.f32 %v3412_v36, %v2813_v48 }
 0x5c2   : > { %v2815_v19 = vadd.f32 %v3412_v36, %v2814_v20 }
 0x5c3   : > { %v3414_v44 = vpop.eup %3413 }
 0x5c4   : > { %v2819_v1 = vsel %vm2818_vm5, %v3412_v36, %v2815_v19  ;;  %v2827_v57 = vmul.f32 %v3414_v44, %v2699_v61  ;;  %v2714_v39 = vpop.permute.xlu2 %2713  ;;  %vm2832_vm8 = vweird.f32 %v3414_v44  ;;  %v2650_v61 = vld [vmem:[#allocation4 + $0x38] sm:$0xff] }
 0x5c5   : > { %v2824_v41 = vsel %vm2821_vm6, %v2823_v55, %v2819_v1  ;;  %3415 = vrcp.f32 %v2714_v39  ;;  %vm2833_vm9 = vmor %vm2831_vm7, %vm2832_vm8  ;;  %vm2876_vm11 = vweird.f32 %v2714_v39  ;;  %v2880_v33 = vand.u32 2147483647, %v2714_v39  ;;  %v2641_v55 = vld [vmem:[#allocation4 + $0x58] sm:$0xff] }
 0x5c6   : > { %v2825_v3 = vmul.f32 %v2824_v41, %v2643_v38  ;;  %v2828_v18 = vsub.f32 1.0, %v2827_v57  ;;  %v2882_v34 = vand.u32 2147483648, %v2714_v39 }
 0x5c7   : > { %vm2881_vm14 = vcmp.eq.f32.partialorder %v2880_v33, 8.507059e+37 }
 0x5c8   : > { %2995 = vst [vmem:[%s3945_s19 + $0x20] sm:$0xff] %v2825_v3  ;;  %v2829_v62 = vmul.f32 %v3414_v44, %v2828_v18  ;;  %v2883_v45 = vor.u32 1.1754944e-38, %v2882_v34 }
 0x5ca   : > { %v2830_v15 = vadd.f32 %v3414_v44, %v2829_v62 }
 0x5cb   : > { %v3416_v47 = vpop.eup %3415 }
 0x5cc   : > { %v2834_v46 = vsel %vm2833_vm9, %v3414_v44, %v2830_v15  ;;  %v2872_v11 = vmul.f32 %v3416_v47, %v2714_v39  ;;  %v2729_v30 = vpop.permute.xlu2 %2728  ;;  %vm2877_vm12 = vweird.f32 %v3416_v47 }
 0x5cd   : > { %v2839_v52 = vsel %vm2836_vm10, %v2838_v0, %v2834_v46  ;;  %3417 = vrcp.f32 %v2729_v30  ;;  %v2684_v60 = vpop.permute.xlu1 %2683  ;;  %v5385_v42 = vpop.permute.xlu0 %2673  ;;  %vm2878_vm13 = vmor %vm2876_vm11, %vm2877_vm12  ;;  %v2925_v40 = vand.u32 2147483647, %v2729_v30  ;;  %vm2921_vm15 = vweird.f32 %v2729_v30  ;;  %v2639_v0 = vld [vmem:[#allocation4 + $0x30] sm:$0xff] }
 0x5ce   : > { %v2840_v17 = vmul.f32 %v2839_v52, %v2644_v29  ;;  %v2873_v31 = vsub.f32 1.0, %v2872_v11  ;;  %3419 = vrcp.f32 %v2684_v60  ;;  %v2927_v4 = vand.u32 2147483648, %v2729_v30 }
 0x5cf   : > { %3421 = vrcp.f32 %v5385_v42  ;;  %vm5392_vm0 = vcmp.eq.f32.partialorder %v2925_v40, 8.507059e+37  ;;  %vm2786_vm1 = vweird.f32 %v2684_v60  ;;  %v2790_v59 = vand.u32 2147483647, %v2684_v60 }
 0x5d0   : > { %2996 = vst [vmem:[%s3945_s19 + $0x28] sm:$0xff] %v2840_v17  ;;  %v2874_v43 = vmul.f32 %v3416_v47, %v2873_v31  ;;  %v2792_v13 = vand.u32 2147483648, %v2684_v60  ;;  %v2760_v53 = vand.u32 2147483647, %v5385_v42  ;;  %v2762_v49 = vand.u32 2147483648, %v5385_v42 }
 0x5d1   : > { %v2928_v12 = vor.u32 1.1754944e-38, %v2927_v4  ;;  %vm5406_vm4 = vcmp.eq.f32.partialorder %v2790_v59, 8.507059e+37  ;;  %vm2756_vm5 = vweird.f32 %v5385_v42 }
 0x5d2   : > { %v2875_v63 = vadd.f32 %v3416_v47, %v2874_v43  ;;  %v2793_v48 = vor.u32 1.1754944e-38, %v2792_v13  ;;  %vm5415_vm9 = vcmp.eq.f32.partialorder %v2760_v53, 8.507059e+37  ;;  %v2763_v44 = vor.u32 1.1754944e-38, %v2762_v49  ;;  %v2640_v53 = vld [vmem:[#allocation4] sm:$0xff] }
 0x5d3   : > { %v3418_v8 = vpop.eup %3417 }
 0x5d4   : > { %v3420_v10 = vpop.eup %3419  ;;  %v2879_v5 = vsel %vm2878_vm13, %v3416_v47, %v2875_v63  ;;  %v2917_v22 = vmul.f32 %v3418_v8, %v2729_v30  ;;  %v5390_v21 = vpop.permute.xlu2 %2743  ;;  %vm2922_vm2 = vweird.f32 %v3418_v8  ;;  %v2653_v63 = vld [vmem:[#allocation4 + $0x78] sm:$0xff] }
 0x5d5   : > { %v2884_v14 = vsel %vm2881_vm14, %v2883_v45, %v2879_v5  ;;  %v2782_v35 = vmul.f32 %v3420_v10, %v2684_v60  ;;  %3423 = vrcp.f32 %v5390_v21  ;;  %v5397_v7 = vpop.permute.xlu1 %2688  ;;  %v5399_v24 = vpop.permute.xlu0 %2678  ;;  %vm2787_vm3 = vweird.f32 %v3420_v10  ;;  %vm2923_vm6 = vmor %vm2921_vm15, %vm2922_vm2 }
 0x5d6   : > { %v3422_v32 = vpop.eup %3421  ;;  %v2885_v50 = vmul.f32 %v2884_v14, %v2647_v58  ;;  %v2918_v6 = vsub.f32 1.0, %v2917_v22  ;;  %3425 = vrcp.f32 %v5397_v7  ;;  %vm2788_vm8 = vmor %vm2786_vm1, %vm2787_vm3  ;;  %v2970_v41 = vand.u32 2147483647, %v5390_v21 }
 0x5d7   : > { %v2783_v37 = vsub.f32 1.0, %v2782_v35  ;;  %v2752_v28 = vmul.f32 %v3422_v32, %v5385_v42  ;;  %3427 = vrcp.f32 %v5399_v24  ;;  %vm2757_vm7 = vweird.f32 %v3422_v32 }
 0x5d8   : > { %2999 = vst [vmem:[%s3945_s19 + $0x40] sm:$0xff] %v2885_v50  ;;  %v2919_v23 = vmul.f32 %v3418_v8, %v2918_v6  ;;  %vm2758_vm10 = vmor %vm2756_vm5, %vm2757_vm7  ;;  %v2972_v47 = vand.u32 2147483648, %v5390_v21  ;;  %vm2966_vm11 = vweird.f32 %v5390_v21  ;;  %vm5440_vm13 = vcmp.eq.f32.partialorder %v2970_v41, 8.507059e+37  ;;  %v2642_v6 = vld [vmem:[#allocation4 + $0x18] sm:$0xff] }
 0x5d9   : > { %v2784_v16 = vmul.f32 %v3420_v10, %v2783_v37  ;;  %v2753_v56 = vsub.f32 1.0, %v2752_v28  ;;  %v2805_v45 = vand.u32 2147483647, %v5397_v7  ;;  %v2807_v40 = vand.u32 2147483648, %v5397_v7 }
 0x5da   : > { %v2920_v27 = vadd.f32 %v3418_v8, %v2919_v23  ;;  %v2973_v43 = vor.u32 1.1754944e-38, %v2972_v47  ;;  %v2775_v5 = vand.u32 2147483647, %v5399_v24  ;;  %v2777_v22 = vand.u32 2147483648, %v5399_v24 }
 0x5db   : > { %v3424_v26 = vpop.eup %3423  ;;  %v2785_v2 = vadd.f32 %v3420_v10, %v2784_v16  ;;  %v2754_v9 = vmul.f32 %v3422_v32, %v2753_v56  ;;  %vm2771_vm3 = vweird.f32 %v5399_v24 }
 0x5dc   : > { %v2924_v20 = vsel %vm2923_vm6, %v3418_v8, %v2920_v27  ;;  %v2962_v38 = vmul.f32 %v3424_v26, %v5390_v21  ;;  %v3426_v18 = vpop.eup %3425  ;;  %vm2967_vm12 = vweird.f32 %v3424_v26  ;;  %vm2776_vm6 = vcmp.eq.f32.partialorder %v2775_v5, 8.507059e+37 }
 0x5dd   : > { %v2929_v1 = vsel %vm5392_vm0, %v2928_v12, %v2924_v20  ;;  %v2789_v57 = vsel %vm2788_vm8, %v3420_v10, %v2785_v2  ;;  %v2755_v39 = vadd.f32 %v3422_v32, %v2754_v9  ;;  %v5423_v25 = vpop.permute.xlu1 %2708  ;;  %v5425_v3 = vpop.permute.xlu0 %2703  ;;  %v2797_v11 = vmul.f32 %v3426_v18, %v5397_v7  ;;  %vm2968_vm14 = vmor %vm2966_vm11, %vm2967_vm12 }
 0x5de   : > { %v2930_v51 = vmul.f32 %v2929_v1, %v2650_v61  ;;  %v2794_v62 = vsel %vm5406_vm4, %v2793_v48, %v2789_v57  ;;  %v2963_v15 = vsub.f32 1.0, %v2962_v38  ;;  %v3428_v30 = vpop.eup %3427  ;;  %3429 = vrcp.f32 %v5423_v25 }
 0x5df   : > { %v2795_v29 = vmul.f32 %v2794_v62, %v2641_v55  ;;  %v2759_v46 = vsel %vm2758_vm10, %v3422_v32, %v2755_v39  ;;  %v2798_v42 = vsub.f32 1.0, %v2797_v11  ;;  %v2767_v17 = vmul.f32 %v3428_v30, %v5399_v24  ;;  %v2646_v39 = vld [vmem:[#allocation4 + $0x48] sm:$0xff] }
 0x5e0   : > { %3002 = vst [vmem:[%s3945_s19 + $0x58] sm:$0xff] %v2930_v51  ;;  %v2764_v52 = vsel %vm5415_vm9, %v2763_v44, %v2759_v46  ;;  %v2964_v33 = vmul.f32 %v3424_v26, %v2963_v15  ;;  %vm2802_vm15 = vweird.f32 %v3426_v18  ;;  %3431 = vrcp.f32 %v5425_v3 }
 0x5e1   : > { %2993 = vst [vmem:[%s3945_s19 + $0x10] sm:$0xff] %v2795_v29  ;;  %v2765_v34 = vmul.f32 %v2764_v52, %v2639_v0  ;;  %v2799_v8 = vmul.f32 %v3426_v18, %v2798_v42  ;;  %v2768_v58 = vsub.f32 1.0, %v2767_v17  ;;  %vm2801_vm0 = vweird.f32 %v5397_v7  ;;  %v2645_v52 = vld [vmem:[#allocation4 + $0x8] sm:$0xff] }
 0x5e2   : > { %v2965_v31 = vadd.f32 %v3424_v26, %v2964_v33  ;;  %vm2772_vm1 = vweird.f32 %v3428_v30  ;;  %vm2803_vm2 = vmor %vm2801_vm0, %vm2802_vm15  ;;  %v2808_v7 = vor.u32 1.1754944e-38, %v2807_v40  ;;  %vm2806_vm4 = vcmp.eq.f32.partialorder %v2805_v45, 8.507059e+37 }
 0x5e3   : > { %2991 = vst [vmem:[%s3945_s19] sm:$0xff] %v2765_v34  ;;  %v2800_v14 = vadd.f32 %v3426_v18, %v2799_v8  ;;  %v2769_v54 = vmul.f32 %v3428_v30, %v2768_v58  ;;  %vm2773_vm5 = vmor %vm2771_vm3, %vm2772_vm1  ;;  %v2778_v23 = vor.u32 1.1754944e-38, %v2777_v22  ;;  %v2865_v49 = vand.u32 2147483647, %v5423_v25 }
 0x5e4   : > { %v2969_v10 = vsel %vm2968_vm14, %v3424_v26, %v2965_v31  ;;  %v3430_v32 = vpop.eup %3429  ;;  %v2867_v36 = vand.u32 2147483648, %v5423_v25  ;;  %v2850_v48 = vand.u32 2147483647, %v5425_v3  ;;  %vm2861_vm8 = vweird.f32 %v5423_v25 }
 0x5e5   : > { %v2974_v4 = vsel %vm5440_vm13, %v2973_v43, %v2969_v10  ;;  %v5456_v21 = vpop.permute.xlu1 %2723  ;;  %v5458_v35 = vpop.permute.xlu0 %2718  ;;  %v2804_v59 = vsel %vm2803_vm2, %v3426_v18, %v2800_v14  ;;  %v2770_v37 = vadd.f32 %v3428_v30, %v2769_v54  ;;  %v2857_v13 = vmul.f32 %v3430_v32, %v5423_v25 }
 0x5e6   : > { %v2975_v50 = vmul.f32 %v2974_v4, %v2653_v63  ;;  %3433 = vrcp.f32 %v5456_v21  ;;  %v2809_v28 = vsel %vm2806_vm4, %v2808_v7, %v2804_v59  ;;  %v3432_v12 = vpop.eup %3431  ;;  %vm2862_vm7 = vweird.f32 %v3430_v32  ;;  %v2649_v63 = vld [vmem:[#allocation4 + $0x10] sm:$0xff] }
 0x5e7   : > { %v2810_v16 = vmul.f32 %v2809_v28, %v2642_v6  ;;  %v2774_v24 = vsel %vm2773_vm5, %v3428_v30, %v2770_v37  ;;  %v2858_v56 = vsub.f32 1.0, %v2857_v13  ;;  %3435 = vrcp.f32 %v5458_v35  ;;  %vm2863_vm11 = vmor %vm2861_vm8, %vm2862_vm7 }
 0x5e8   : > { %3005 = vst [vmem:[%s3945_s19 + $0x70] sm:$0xff] %v2975_v50  ;;  %v2779_v27 = vsel %vm2776_vm6, %v2778_v23, %v2774_v24  ;;  %v2842_v26 = vmul.f32 %v3432_v12, %v5425_v3  ;;  %v2852_v55 = vand.u32 2147483648, %v5425_v3  ;;  %vm5475_vm9 = vcmp.eq.f32.partialorder %v2865_v49, 8.507059e+37  ;;  %v2652_v23 = vld [vmem:[#allocation4 + $0x70] sm:$0xff] }
 0x5e9   : > { %2994 = vst [vmem:[%s3945_s19 + $0x18] sm:$0xff] %v2810_v16  ;;  %v2780_v61 = vmul.f32 %v2779_v27, %v2640_v53  ;;  %v2859_v2 = vmul.f32 %v3430_v32, %v2858_v56  ;;  %vm2846_vm10 = vweird.f32 %v5425_v3  ;;  %v2868_v41 = vor.u32 1.1754944e-38, %v2867_v36 }
 0x5ea   : > { %v2843_v20 = vsub.f32 1.0, %v2842_v26  ;;  %vm2847_vm12 = vweird.f32 %v3432_v12  ;;  %vm5486_vm13 = vcmp.eq.f32.partialorder %v2850_v48, 8.507059e+37  ;;  %v2912_v15 = vand.u32 2147483648, %v5456_v21 }
 0x5eb   : > { %2992 = vst [vmem:[%s3945_s19 + $0x8] sm:$0xff] %v2780_v61  ;;  %v2860_v19 = vadd.f32 %v3430_v32, %v2859_v2  ;;  %v2853_v46 = vor.u32 1.1754944e-38, %v2852_v55  ;;  %vm2848_vm14 = vmor %vm2846_vm10, %vm2847_vm12  ;;  %v2910_v34 = vand.u32 2147483647, %v5456_v21  ;;  %vm2906_vm0 = vweird.f32 %v5456_v21  ;;  %v2651_v55 = vld [vmem:[#allocation4 + $0x60] sm:$0xff] }
 0x5ec   : > { %v3434_v9 = vpop.eup %3433  ;;  %v2844_v25 = vmul.f32 %v3432_v12, %v2843_v20  ;;  %v2913_v43 = vor.u32 1.1754944e-38, %v2912_v15  ;;  %v2897_v3 = vand.u32 2147483648, %v5458_v35  ;;  %v2895_v58 = vand.u32 2147483647, %v5458_v35 }
 0x5ed   : > { %v2902_v38 = vmul.f32 %v3434_v9, %v5456_v21  ;;  %v5481_v1 = vpop.permute.xlu1 %2738  ;;  %v5483_v57 = vpop.permute.xlu0 %2733  ;;  %v2864_v51 = vsel %vm2863_vm11, %v3430_v32, %v2860_v19  ;;  %vm2907_vm15 = vweird.f32 %v3434_v9  ;;  %vm2911_vm3 = vcmp.eq.f32.partialorder %v2910_v34, 8.507059e+37  ;;  %v2648_v21 = vld [vmem:[#allocation4 + $0x20] sm:$0xff] }
 0x5ee   : > { %3437 = vrcp.f32 %v5481_v1  ;;  %v3436_v18 = vpop.eup %3435  ;;  %v2869_v47 = vsel %vm5475_vm9, %v2868_v41, %v2864_v51  ;;  %v2845_v29 = vadd.f32 %v3432_v12, %v2844_v25  ;;  %vm2908_vm1 = vmor %vm2906_vm0, %vm2907_vm15  ;;  %vm2891_vm4 = vweird.f32 %v5458_v35  ;;  %v2654_v51 = vld [vmem:[#allocation4 + $0x28] sm:$0xff] }
 0x5ef   : > { %v2903_v0 = vsub.f32 1.0, %v2902_v38  ;;  %v2887_v11 = vmul.f32 %v3436_v18, %v5458_v35  ;;  %v2870_v30 = vmul.f32 %v2869_v47, %v2646_v39  ;;  %3439 = vrcp.f32 %v5483_v57 }
 0x5f0   : > { %v2849_v60 = vsel %vm2848_vm14, %v3432_v12, %v2845_v29  ;;  %vm2892_vm2 = vweird.f32 %v3436_v18  ;;  %v2898_v32 = vor.u32 1.1754944e-38, %v2897_v3  ;;  %vm2896_vm6 = vcmp.eq.f32.partialorder %v2895_v58, 8.507059e+37 }
 0x5f1   : > { %v2904_v33 = vmul.f32 %v3434_v9, %v2903_v0  ;;  %v2888_v42 = vsub.f32 1.0, %v2887_v11  ;;  %2998 = vst [vmem:[%s3945_s19 + $0x38] sm:$0xff] %v2870_v30  ;;  %v2854_v17 = vsel %vm5486_vm13, %v2853_v46, %v2849_v60  ;;  %vm2893_vm5 = vmor %vm2891_vm4, %vm2892_vm2  ;;  %v2955_v59 = vand.u32 2147483647, %v5481_v1 }
 0x5f2   : > { %v2855_v40 = vmul.f32 %v2854_v17, %v2645_v52  ;;  %v2957_v37 = vand.u32 2147483648, %v5481_v1  ;;  %vm2951_vm8 = vweird.f32 %v5481_v1  ;;  %v2940_v56 = vand.u32 2147483647, %v5483_v57 }
 0x5f3   : > { %v2905_v31 = vadd.f32 %v3434_v9, %v2904_v33  ;;  %v2889_v8 = vmul.f32 %v3436_v18, %v2888_v42  ;;  %vm2956_vm10 = vcmp.eq.f32.partialorder %v2955_v59, 8.507059e+37  ;;  %v2942_v27 = vand.u32 2147483648, %v5483_v57 }
 0x5f4   : > { %v3438_v45 = vpop.eup %3437  ;;  %2997 = vst [vmem:[%s3945_s19 + $0x30] sm:$0xff] %v2855_v40  ;;  %v2958_v24 = vor.u32 1.1754944e-38, %v2957_v37  ;;  %vm2936_vm12 = vweird.f32 %v5483_v57  ;;  %vm2941_vm14 = vcmp.eq.f32.partialorder %v2940_v56, 8.507059e+37 }
 0x5f5   : > { %v2909_v10 = vsel %vm2908_vm1, %v3434_v9, %v2905_v31  ;;  %v2947_v5 = vmul.f32 %v3438_v45, %v5481_v1  ;;  %v2749_v22 = vpop.permute.xlu0 %2748  ;;  %v2890_v14 = vadd.f32 %v3436_v18, %v2889_v8  ;;  %v3440_v6 = vpop.eup %3439  ;;  %vm2952_vm7 = vweird.f32 %v3438_v45 }
 0x5f6   : > { %v2914_v4 = vsel %vm2911_vm3, %v2913_v43, %v2909_v10  ;;  %3441 = vrcp.f32 %v2749_v22  ;;  %v2932_v35 = vmul.f32 %v3440_v6, %v5483_v57  ;;  %vm2953_vm9 = vmor %vm2951_vm8, %vm2952_vm7  ;;  %vm2937_vm11 = vweird.f32 %v3440_v6 }
 0x5f7   : > { %v2915_v54 = vmul.f32 %v2914_v4, %v2649_v63  ;;  %v2948_v50 = vsub.f32 1.0, %v2947_v5  ;;  %v2894_v7 = vsel %vm2893_vm5, %v3436_v18, %v2890_v14  ;;  %vm2938_vm13 = vmor %vm2936_vm12, %vm2937_vm11  ;;  %v2943_v19 = vor.u32 1.1754944e-38, %v2942_v27 }
 0x5f8   : > { %v2899_v13 = vsel %vm2896_vm6, %v2898_v32, %v2894_v7  ;;  %v2933_v12 = vsub.f32 1.0, %v2932_v35  ;;  %v2987_v44 = vand.u32 2147483648, %v2749_v22  ;;  %v2985_v39 = vand.u32 2147483647, %v2749_v22 }
 0x5f9   : > { %3001 = vst [vmem:[%s3945_s19 + $0x50] sm:$0xff] %v2915_v54  ;;  %v2949_v28 = vmul.f32 %v3438_v45, %v2948_v50  ;;  %v2900_v53 = vmul.f32 %v2899_v13, %v2648_v21  ;;  %vm2981_vm0 = vweird.f32 %v2749_v22 }
 0x5fa   : > { %v2934_v26 = vmul.f32 %v3440_v6, %v2933_v12  ;;  %v2988_v57 = vor.u32 1.1754944e-38, %v2987_v44  ;;  %vm2986_vm2 = vcmp.eq.f32.partialorder %v2985_v39, 8.507059e+37 }
 0x5fb   : > { %v2950_v49 = vadd.f32 %v3438_v45, %v2949_v28  ;;  %3000 = vst [vmem:[%s3945_s19 + $0x48] sm:$0xff] %v2900_v53 }
 0x5fc   : > { %v3442_v16 = vpop.eup %3441  ;;  %v2935_v9 = vadd.f32 %v3440_v6, %v2934_v26 }
 0x5fd   : > { %v2954_v36 = vsel %vm2953_vm9, %v3438_v45, %v2950_v49  ;;  %v2977_v61 = vmul.f32 %v3442_v16, %v2749_v22  ;;  %vm2982_vm15 = vweird.f32 %v3442_v16 }
 0x5fe   : > { %v2959_v2 = vsel %vm2956_vm10, %v2958_v24, %v2954_v36  ;;  %v2939_v38 = vsel %vm2938_vm13, %v3440_v6, %v2935_v9  ;;  %vm2983_vm1 = vmor %vm2981_vm0, %vm2982_vm15 }
 0x5ff   : > { %v2960_v48 = vmul.f32 %v2959_v2, %v2652_v23  ;;  %v2978_v20 = vsub.f32 1.0, %v2977_v61  ;;  %v2944_v41 = vsel %vm2941_vm14, %v2943_v19, %v2939_v38 }
 0x600   : > { %v2945_v25 = vmul.f32 %v2944_v41, %v2651_v55 }
 0x601   : > { %3004 = vst [vmem:[%s3945_s19 + $0x68] sm:$0xff] %v2960_v48  ;;  %v2979_v1 = vmul.f32 %v3442_v16, %v2978_v20 }
 0x602   : > { %3003 = vst [vmem:[%s3945_s19 + $0x60] sm:$0xff] %v2945_v25 }
 0x603   : > { %v2980_v18 = vadd.f32 %v3442_v16, %v2979_v1 }
 0x605   : > { %v2984_v62 = vsel %vm2983_vm1, %v3442_v16, %v2980_v18 }
 0x606   : > { %v2989_v0 = vsel %vm2986_vm2, %v2988_v57, %v2984_v62 }
 0x607   : > { %v2990_v15 = vmul.f32 %v2989_v0, %v2654_v51 }
 0x609   : > { %3006 = vst [vmem:[%s3945_s19 + $0x78] sm:$0xff] %v2990_v15 }
 0x60a PF: > { %s5783_s5 = sld [smem:[#allocation19_spill]]  ;;  %s3022_s9 = sshll.u32 %s3945_s19, 4  ;;  %s3023_s9 = int_to_ptr.vmem [resolvable:$true] %s3022_s9 }
 0x60b   : > { %s5784_s10 = sld [smem:[#allocation20_spill]]  ;;  %s3008_s18 = scalar_lea.sflag [#allocation7], %s3925_s22 }
 0x60c   : > { %s5786_s27 = sld [smem:[#allocation53_spill]] }
 0x610   : > { %s3197_s28 = sshll.u32 %s5783_s5, 4 }
 0x611   : > { %s3198_s11 = sshll.u32 %s5784_s10, 5 }
 0x612   : > { %s3019_s29 = sadd.s32 %s3198_s11, %s3197_s28  ;;  %s3553_s19 = scalar_lea.hbm %s5786_s27, 2048 }
 0x613   : > { %s3199_s3 = sshll.u32 %s3019_s29, 3 }
 0x614   : > { %s3021_s20 = scalar_lea.hbm %s5786_s27, %s3199_s3 }
 0x615   : > { %s3024_s2 = sshll.u32 %s3021_s20, 4  ;;  %s3025_s2 = int_to_ptr.hbm [resolvable:$true] %s3024_s2 }
 0x616   : > { %s3547_s4 = sshra.s32 %s3025_s2, 4  ;;  %s3548_s4 = int_to_ptr.hbm [resolvable:$true] %s3547_s4 }
 0x617   : > { %s3549_s30 = scalar_lea.hbm %s3548_s4, 128  ;;  %p3554_p9 = scmp.lt.s32.totalorder %s3548_s4, %s5786_s27 }
 0x618   : > { %p3550_p11 = scmp.ne.s32.totalorder %s3548_s4, %s3549_s30  ;;  %p3555_p1 = scmp.lt.s32.totalorder %s3553_s19, %s3549_s30 }
 0x61a   : > { %p3551_p4 = pnand %p3550_p11, %p3874_p0  ;;  %p3556_p10 = por %p3555_p1, %p3554_p9 }
 0x61c   : > { %p3552_p5 = pneg %p3551_p4 }
 0x61e   : > { %p3557_p12 = pnand %p3556_p10, %p3552_p5 }
 0x620   : > { %3560 = shalt.err (!%p3557_p12)
}
 0x621   : > { %s3684_s22 = smov 128   ;;  %s3685_s5 = smov 8  }
 0x622   : > { %3208 = dma.vmem_to_hbm [thread:$0]  (%p3874_p0), %s3023_s9, 2048, %s3025_s2, %s3008_s18, %s3684_s22, %s3684_s22, %s3685_s5  }
 0x623 PF: > { %s5787_s10 = sld [smem:[#allocation16_spill]]  ;;  %p3225_p3 = scmp.ge.s32.totalorder %s3675_s24, 2 }
 0x625   : > { %p3221_p13 = pnand %p3225_p3, %p3885_p2 }
 0x627   : > { %p3222_p7 = pneg %p3221_p13 }
 0x629   : > { %s3039_s11 = sand.u32 1, %s5787_s10  }
 0x62a   : > { %s3040_s29 = scalar_lea.sflag [#allocation7], %s3039_s11 }
 0x62b   : > { %3622 = dma.done.wait (%p3222_p7), %s3040_s29, 2048  }
 0x62c   : > { %3624 = vsyncadd (%p3222_p7), %s3040_s29, 4294965248  ;;  %s22_s24 = sadd.s32 1, %s3675_s24   ;;  %s5790_s12 = sld [smem:[#allocation15_spill]] }
 0x62d   : > { %p5541_p6 = scmp.ge.s32.totalorder %s22_s24, 34   ;;  %s5791_s7 = sld [smem:[#allocation17_spill]] }
 0x62e   : > { %s5792_s9 = smov %s3897_s15  ;;  %s5793_s19 = sld [smem:[#allocation21_spill]] }
 0x62f   : > { %s5794_s22 = sld [smem:[#allocation26_spill]]  ;;  %s5796_s13 = smov %s3635_s14 }
 0x630   : > { %s5795_s8 = sld [smem:[#allocation28_spill]]  ;;  %s5797_s14 = smov %s3902_s25 }
 0x631   : > { %s5799_s16 = smov %s3647_s17  ;;  %s5800_s17 = smov %s5792_s9 }
 0x632   : > { %s5801_s18 = smov %s3663_s21  ;;  %s5802_s20 = smov %s3671_s23 }
 0x633   : > { %s5798_s15 = smov %s5791_s7  ;;  %s5803_s21 = smov %s5806_s26 }
 0x634   :  { %21 = sbr.rel (!%p5541_p6) target bundleno = 16 (0x10), region = 113 }
 0x636   : > { %s5804_s23 = smov %s5795_s8 }
 0x639   :  { %3046 = vsyncpa [#allocation6], 1 }
 0x63a   :  { %3048 = vsyncpa [#allocation6 + $0x1], 1 }
 0x63b   :  { %3049 = vsyncpa [#allocation9], 1 }
 0x63c   :  { %3051 = vsyncpa [#allocation9 + $0x1], 1 }
 0x63d   :  { %3052 = vsyncpa [#allocation7], 1 }
 0x63e   :  { %3054 = vsyncpa [#allocation7 + $0x1], 1 }

</bundles_post_ra>
